<compile_context>
chip_gen: v5e
topology: v5e:2x2
jax: 0.10.0
libtpu: 0.0.40
codegen_flags: <defaults>
</compile_context>

<pallas_src>
import functools

import numpy as np
import jax
import jax.numpy as jnp
from jax import lax
from jax.experimental import pallas as pl
from jax.experimental.pallas import tpu as pltpu


def _vecint_kernel(v_ref, grid_ref, out_ref, *, D, H, W, Vp, vt, n_tiles, scale):
    """All nsteps squaring steps for one batch element (grid = (N, nsteps)).

    v_ref: (1, 3, Vp) velocity field, grid_ref: (3, Vp) identity grid, out_ref: (1, 3, Vp)
    resident output block that carries the integrated field across the step axis.
    """
    C = 3
    HW = H * W
    s = pl.program_id(1)

    # First step for this batch element: load + scale the velocity into the resident block.
    @pl.when(s == 0)
    def _():
        out_ref[0] = v_ref[0] * scale

    # ---- per-step setup: corner-shifted, stacked bf16 LHS for the one-hot gather -------
    # rolled_k[c, j] = field[c, (j + off_k) mod Vp].  The mod-Vp wrap is only ever read by
    # zero-weight (out-of-bounds) corners, so it is harmless.  Built ONCE per step from
    # cheap static slices of the resident field (the tile loop below is in-kernel).
    offsets = [dd * HW + hh * W + ww for dd in (0, 1) for hh in (0, 1) for ww in (0, 1)]
    rolled = []
    for off in offsets:
        if off == 0:
            rolled.append(out_ref[0])
        else:
            rolled.append(jnp.concatenate(
                [out_ref[0, :, off:Vp], out_ref[0, :, 0:off]], axis=1))
    lhs32 = jnp.concatenate(rolled, axis=0)                         # [24, Vp] f32
    # Exact-to-~f32 3-term bfloat16 split (hi/mid/lo): 3 one-pass bf16 MXU streams of the
    # one-hot instead of the 6-pass f32 HIGHEST emulation the old kernel used 8x over.
    hi = lhs32.astype(jnp.bfloat16)
    r1 = lhs32 - hi.astype(jnp.float32)
    mid = r1.astype(jnp.bfloat16)
    lo = (r1 - mid.astype(jnp.float32)).astype(jnp.bfloat16)
    lhs = jnp.concatenate([hi, mid, lo], axis=0)                    # [72, Vp] bf16

    def tile_body(t, carry):
        start = pl.multiple_of(t * vt, vt)                          # lane-aligned
        flow = out_ref[0, :, pl.ds(start, vt)]                      # [3, vt] old field
        coords = grid_ref[:, pl.ds(start, vt)] + flow               # sample positions
        cd, ch, cw = coords[0:1], coords[1:2], coords[2:3]
        d0 = jnp.floor(cd)
        h0 = jnp.floor(ch)
        w0 = jnp.floor(cw)
        fd, fh, fw = cd - d0, ch - h0, cw - w0
        d0i = d0.astype(jnp.int32)
        h0i = h0.astype(jnp.int32)
        w0i = w0.astype(jnp.int32)

        # ---- corner weights (trilinear * zero-padding in-bounds mask), hoisted compares --
        in_d = ((d0i >= 0) & (d0i <= D - 1), (d0i >= -1) & (d0i <= D - 2))
        in_h = ((h0i >= 0) & (h0i <= H - 1), (h0i >= -1) & (h0i <= H - 2))
        in_w = ((w0i >= 0) & (w0i <= W - 1), (w0i >= -1) & (w0i <= W - 2))
        wd = (1.0 - fd, fd)
        wh = (1.0 - fh, fh)
        wwf = (1.0 - fw, fw)
        wlist = [jnp.where(in_d[dd] & in_h[hh] & in_w[ww], wd[dd] * wh[hh] * wwf[ww], 0.0)
                 for dd in (0, 1) for hh in (0, 1) for ww in (0, 1)]   # 8 x [1, vt] f32

        # ---- base-corner flat index, clamped + wrapped mod Vp (matches the roll modulus).
        # Clamping to [-1, dim-1] only changes columns whose corners are ALL out of bounds
        # on that axis (weight 0), and whenever a corner weight is nonzero the wrapped
        # index composes with the corner shift to the true source voxel.
        flat = (jnp.clip(d0i, -1, D - 1) * HW
                + jnp.clip(h0i, -1, H - 1) * W
                + jnp.clip(w0i, -1, W - 1))
        flat = jnp.where(flat < 0, flat + Vp, flat)                 # [1, vt] in [0, Vp)

        # ---- single bf16 one-hot + ONE fused MXU gather for all 8 corners ---------------
        j_src = lax.broadcasted_iota(jnp.int32, (Vp, vt), 0)
        onehot = (j_src == flat).astype(jnp.float32).astype(jnp.bfloat16)   # [Vp, vt]
        g = jnp.dot(lhs, onehot, preferred_element_type=jnp.float32)        # [72, vt]
        g24 = g[0:24] + g[24:48] + g[48:72]                 # exact hi+mid+lo, [24, vt]

        warp = wlist[0] * g24[0:3]                          # tiny [3, vt] weighted sum
        for k in range(1, 8):
            warp = warp + wlist[k] * g24[3 * k:3 * k + 3]

        # v + warp(v, v): each tile overwrites only its own (already-read) columns and the
        # gather uses the pre-step `lhs` snapshot, so the in-place update is safe.
        out_ref[0, :, pl.ds(start, vt)] = flow + warp
        return carry

    lax.fori_loop(0, n_tiles, tile_body, 0, unroll=(n_tiles <= 8))


def _pick_tile(Vp):
    # Lane-dense output tiles; bigger tiles amortize per-tile setup (coords, weights,
    # one-hot).  Budget the [Vp, vt]-scale live intermediates (~6 B/elem: int32 iota +
    # bf16 one-hot) so we stay well inside scoped VMEM even on v7x (64 MiB physical).
    budget = 12 * 1024 * 1024
    for vt in (1024, 512, 256, 128):
        if Vp % vt == 0 and 6 * Vp * vt <= budget:
            return vt
    return 128


@functools.partial(jax.jit, static_argnums=(1,))
def vec_int(vec, nsteps):
    """VecInt.forward: integrate the stationary velocity field `vec` (NCDHW, C == 3)."""
    N, C, D, H, W = vec.shape
    assert C == 3, "channels must equal the number of spatial dims (3)"
    assert min(D, H, W) >= 2
    if nsteps == 0:
        return vec

    V = D * H * W
    Vp = ((V + 127) // 128) * 128                     # lane-pad the flattened volume
    vt = _pick_tile(Vp)
    n_tiles = Vp // vt

    # Rough resident-VMEM estimate: in/out blocks + stacked LHS temporaries + one-hot/iota.
    est = 128 * Vp + 400 * Vp + 6 * Vp * vt
    if est > 40 * 2 ** 20:
        # TODO(synk): for realistic registration volumes the O(Vp*vt) one-hot is the wrong
        # algorithm; bound the gather window per tile (post-scaling displacements are tiny)
        # or K-block the one-hot matmul with accumulation, and fall back to a per-step
        # tiled pallas_call when the whole field no longer fits VMEM.
        raise NotImplementedError("volume too large for the resident-field VecInt kernel")

    v = vec.reshape(N, C, V).astype(jnp.float32)
    # Flattened identity grid (d-major).  Padded lanes get an out-of-bounds sentinel so
    # their sample weights are exactly zero (padded columns stay 0 and are sliced off).
    gd, gh, gw = jnp.meshgrid(jnp.arange(D, dtype=jnp.float32),
                              jnp.arange(H, dtype=jnp.float32),
                              jnp.arange(W, dtype=jnp.float32), indexing="ij")
    grid3 = jnp.stack([gd, gh, gw]).reshape(3, V)
    if Vp != V:
        v = jnp.pad(v, ((0, 0), (0, 0), (0, Vp - V)))
        grid3 = jnp.pad(grid3, ((0, 0), (0, Vp - V)), constant_values=-100.0)

    out = pl.pallas_call(
        functools.partial(_vecint_kernel, D=D, H=H, W=W, Vp=Vp, vt=vt,
                          n_tiles=n_tiles, scale=1.0 / 2 ** nsteps),
        out_shape=jax.ShapeDtypeStruct((N, C, Vp), jnp.float32),
        grid=(N, nsteps),
        in_specs=[pl.BlockSpec((1, C, Vp), lambda n, s: (n, 0, 0)),
                  pl.BlockSpec((C, Vp), lambda n, s: (0, 0))],
        out_specs=pl.BlockSpec((1, C, Vp), lambda n, s: (n, 0, 0)),
        compiler_params=pltpu.CompilerParams(
            dimension_semantics=("parallel", "arbitrary"),
            vmem_limit_bytes=48 * 2 ** 20),
    )(v, grid3)

    return out[:, :, :V].reshape(N, C, D, H, W)


# ----------------------- pure-JAX reference (for verification) -----------------------

def _warp_ref(v):
    C, D, H, W = v.shape
    gd, gh, gw = jnp.meshgrid(jnp.arange(D, dtype=jnp.float32),
                              jnp.arange(H, dtype=jnp.float32),
                              jnp.arange(W, dtype=jnp.float32), indexing="ij")
    cd = gd + v[0]; ch = gh + v[1]; cw = gw + v[2]
    d0 = jnp.floor(cd); h0 = jnp.floor(ch); w0 = jnp.floor(cw)
    fd = cd - d0;       fh = ch - h0;       fw = cw - w0
    d0i = d0.astype(jnp.int32); h0i = h0.astype(jnp.int32); w0i = w0.astype(jnp.int32)
    out = jnp.zeros_like(v)
    for dd, wd in ((d0i, 1.0 - fd), (d0i + 1, fd)):
        for hh, wh in ((h0i, 1.0 - fh), (h0i + 1, fh)):
            for ww, wwt in ((w0i, 1.0 - fw), (w0i + 1, fw)):
                inb = ((dd >= 0) & (dd <= D - 1) &
                       (hh >= 0) & (hh <= H - 1) &
                       (ww >= 0) & (ww <= W - 1)).astype(v.dtype)
                vals = v[:, jnp.clip(dd, 0, D - 1),
                            jnp.clip(hh, 0, H - 1),
                            jnp.clip(ww, 0, W - 1)]
                out = out + (wd * wh * wwt * inb)[None] * vals
    return out


def vec_int_ref(vec, nsteps):
    v = vec * (1.0 / 2 ** nsteps)
    for _ in range(nsteps):
        v = v + jax.vmap(_warp_ref)(v)
    return v


if __name__ == "__main__":
    # Test 1: the module's shipped configuration (8^3 volume), moderate displacements.
    N, C, D, H, W = 2, 3, 8, 8, 8
    nsteps = 4
    key = jax.random.PRNGKey(0)
    vec = jax.random.normal(key, (N, C, D, H, W), dtype=jnp.float32) * 2.0
    out = jax.block_until_ready(vec_int(vec, nsteps))
    ref = jax.block_until_ready(vec_int_ref(vec, nsteps))
    np.testing.assert_allclose(np.asarray(out), np.asarray(ref), rtol=1e-4, atol=2e-5)

    # Test 2: non-128-multiple volume (exercises lane padding) with large displacements
    # that leave the volume (exercises the zero-padding / clamp+wrap path on all faces).
    vec2 = jax.random.normal(jax.random.PRNGKey(1), (1, 3, 2, 4, 8), jnp.float32) * 6.0
    out2 = jax.block_until_ready(vec_int(vec2, 2))
    ref2 = jax.block_until_ready(vec_int_ref(vec2, 2))
    np.testing.assert_allclose(np.asarray(out2), np.asarray(ref2), rtol=1e-4, atol=2e-5)

    print("KERNEL_OK")
</pallas_src>

<mosaic_0001>
module attributes {stable_mosaic.version = 11 : i64} {
  func.func @_vecint_kernel(%arg0: i32, %arg1: i32, %arg2: memref<1x3x512xf32, #tpu.memory_space<vmem>>, %arg3: memref<3x512xf32, #tpu.memory_space<vmem>>, %arg4: memref<1x3x512xf32, #tpu.memory_space<vmem>>) attributes {dimension_semantics = [#tpu.dimension_semantics<parallel>, #tpu.dimension_semantics<arbitrary>], iteration_bounds = array<i64: 2, 4>, scalar_prefetch = 0 : i64, scratch_operands = 0 : i64, tpu.core_type = #tpu.core_type<tc>, window_params = [{transform_indices = @transform_0, window_bounds = array<i64: 1, 3, 512>}, {pipeline_mode = #tpu.pipeline_mode<synchronous>, transform_indices = @transform_1, window_bounds = array<i64: 3, 512>}, {transform_indices = @transform_2, window_bounds = array<i64: 1, 3, 512>}]} {
    %c0_i32 = arith.constant 0 : i32
    %0 = arith.cmpi eq, %arg1, %c0_i32 : i32
    %1 = arith.extui %0 : i1 to i32
    %c0_i32_0 = arith.constant 0 : i32
    %2 = arith.cmpi ne, %1, %c0_i32_0 : i32
    scf.if %2 {
      %c0_72 = arith.constant 0 : index
      %c0_73 = arith.constant 0 : index
      %c0_74 = arith.constant 0 : index
      %224 = vector.load %arg2[%c0_72, %c0_73, %c0_74] : memref<1x3x512xf32, #tpu.memory_space<vmem>>, vector<1x3x512xf32>
      %225 = vector.shape_cast %224 : vector<1x3x512xf32> to vector<3x512xf32>
      %cst_75 = arith.constant 6.250000e-02 : f32
      %226 = vector.broadcast %cst_75 : f32 to vector<3x512xf32>
      %227 = arith.mulf %225, %226 : vector<3x512xf32>
      %c0_76 = arith.constant 0 : index
      %c0_77 = arith.constant 0 : index
      %c0_78 = arith.constant 0 : index
      %228 = vector.load %arg4[%c0_76, %c0_77, %c0_78] : memref<1x3x512xf32, #tpu.memory_space<vmem>>, vector<1x3x512xf32>
      %229 = vector.shape_cast %228 : vector<1x3x512xf32> to vector<3x512xf32>
      %230 = vector.shape_cast %227 : vector<3x512xf32> to vector<1x3x512xf32>
      tpu.vector_store %arg4[%c0_76, %c0_77, %c0_78], %230 {strides = array<i32>} : memref<1x3x512xf32, #tpu.memory_space<vmem>>, vector<1x3x512xf32>,
    } else {
    }
    %c0 = arith.constant 0 : index
    %c0_1 = arith.constant 0 : index
    %c0_2 = arith.constant 0 : index
    %3 = vector.load %arg4[%c0, %c0_1, %c0_2] : memref<1x3x512xf32, #tpu.memory_space<vmem>>, vector<1x3x512xf32>
    %4 = vector.shape_cast %3 : vector<1x3x512xf32> to vector<3x512xf32>
    %c0_3 = arith.constant 0 : index
    %c0_4 = arith.constant 0 : index
    %c1 = arith.constant 1 : index
    %5 = vector.load %arg4[%c0_3, %c0_4, %c1] : memref<1x3x512xf32, #tpu.memory_space<vmem>>, vector<1x3x511xf32>
    %6 = vector.shape_cast %5 : vector<1x3x511xf32> to vector<3x511xf32>
    %c0_5 = arith.constant 0 : index
    %c0_6 = arith.constant 0 : index
    %c0_7 = arith.constant 0 : index
    %7 = vector.load %arg4[%c0_5, %c0_6, %c0_7] : memref<1x3x512xf32, #tpu.memory_space<vmem>>, vector<1x3x1xf32>
    %8 = vector.shape_cast %7 : vector<1x3x1xf32> to vector<3x1xf32>
    %9 = tpu.concatenate %6, %8 in 1 : vector<3x511xf32>, vector<3x1xf32> -> vector<3x512xf32>
    %c0_8 = arith.constant 0 : index
    %c0_9 = arith.constant 0 : index
    %c8 = arith.constant 8 : index
    %10 = vector.load %arg4[%c0_8, %c0_9, %c8] : memref<1x3x512xf32, #tpu.memory_space<vmem>>, vector<1x3x504xf32>
    %11 = vector.shape_cast %10 : vector<1x3x504xf32> to vector<3x504xf32>
    %c0_10 = arith.constant 0 : index
    %c0_11 = arith.constant 0 : index
    %c0_12 = arith.constant 0 : index
    %12 = vector.load %arg4[%c0_10, %c0_11, %c0_12] : memref<1x3x512xf32, #tpu.memory_space<vmem>>, vector<1x3x8xf32>
    %13 = vector.shape_cast %12 : vector<1x3x8xf32> to vector<3x8xf32>
    %14 = tpu.concatenate %11, %13 in 1 : vector<3x504xf32>, vector<3x8xf32> -> vector<3x512xf32>
    %c0_13 = arith.constant 0 : index
    %c0_14 = arith.constant 0 : index
    %c9 = arith.constant 9 : index
    %15 = vector.load %arg4[%c0_13, %c0_14, %c9] : memref<1x3x512xf32, #tpu.memory_space<vmem>>, vector<1x3x503xf32>
    %16 = vector.shape_cast %15 : vector<1x3x503xf32> to vector<3x503xf32>
    %c0_15 = arith.constant 0 : index
    %c0_16 = arith.constant 0 : index
    %c0_17 = arith.constant 0 : index
    %17 = vector.load %arg4[%c0_15, %c0_16, %c0_17] : memref<1x3x512xf32, #tpu.memory_space<vmem>>, vector<1x3x9xf32>
    %18 = vector.shape_cast %17 : vector<1x3x9xf32> to vector<3x9xf32>
    %19 = tpu.concatenate %16, %18 in 1 : vector<3x503xf32>, vector<3x9xf32> -> vector<3x512xf32>
    %c0_18 = arith.constant 0 : index
    %c0_19 = arith.constant 0 : index
    %c64 = arith.constant 64 : index
    %20 = vector.load %arg4[%c0_18, %c0_19, %c64] : memref<1x3x512xf32, #tpu.memory_space<vmem>>, vector<1x3x448xf32>
    %21 = vector.shape_cast %20 : vector<1x3x448xf32> to vector<3x448xf32>
    %c0_20 = arith.constant 0 : index
    %c0_21 = arith.constant 0 : index
    %c0_22 = arith.constant 0 : index
    %22 = vector.load %arg4[%c0_20, %c0_21, %c0_22] : memref<1x3x512xf32, #tpu.memory_space<vmem>>, vector<1x3x64xf32>
    %23 = vector.shape_cast %22 : vector<1x3x64xf32> to vector<3x64xf32>
    %24 = tpu.concatenate %21, %23 in 1 : vector<3x448xf32>, vector<3x64xf32> -> vector<3x512xf32>
    %c0_23 = arith.constant 0 : index
    %c0_24 = arith.constant 0 : index
    %c65 = arith.constant 65 : index
    %25 = vector.load %arg4[%c0_23, %c0_24, %c65] : memref<1x3x512xf32, #tpu.memory_space<vmem>>, vector<1x3x447xf32>
    %26 = vector.shape_cast %25 : vector<1x3x447xf32> to vector<3x447xf32>
    %c0_25 = arith.constant 0 : index
    %c0_26 = arith.constant 0 : index
    %c0_27 = arith.constant 0 : index
    %27 = vector.load %arg4[%c0_25, %c0_26, %c0_27] : memref<1x3x512xf32, #tpu.memory_space<vmem>>, vector<1x3x65xf32>
    %28 = vector.shape_cast %27 : vector<1x3x65xf32> to vector<3x65xf32>
    %29 = tpu.concatenate %26, %28 in 1 : vector<3x447xf32>, vector<3x65xf32> -> vector<3x512xf32>
    %c0_28 = arith.constant 0 : index
    %c0_29 = arith.constant 0 : index
    %c72 = arith.constant 72 : index
    %30 = vector.load %arg4[%c0_28, %c0_29, %c72] : memref<1x3x512xf32, #tpu.memory_space<vmem>>, vector<1x3x440xf32>
    %31 = vector.shape_cast %30 : vector<1x3x440xf32> to vector<3x440xf32>
    %c0_30 = arith.constant 0 : index
    %c0_31 = arith.constant 0 : index
    %c0_32 = arith.constant 0 : index
    %32 = vector.load %arg4[%c0_30, %c0_31, %c0_32] : memref<1x3x512xf32, #tpu.memory_space<vmem>>, vector<1x3x72xf32>
    %33 = vector.shape_cast %32 : vector<1x3x72xf32> to vector<3x72xf32>
    %34 = tpu.concatenate %31, %33 in 1 : vector<3x440xf32>, vector<3x72xf32> -> vector<3x512xf32>
    %c0_33 = arith.constant 0 : index
    %c0_34 = arith.constant 0 : index
    %c73 = arith.constant 73 : index
    %35 = vector.load %arg4[%c0_33, %c0_34, %c73] : memref<1x3x512xf32, #tpu.memory_space<vmem>>, vector<1x3x439xf32>
    %36 = vector.shape_cast %35 : vector<1x3x439xf32> to vector<3x439xf32>
    %c0_35 = arith.constant 0 : index
    %c0_36 = arith.constant 0 : index
    %c0_37 = arith.constant 0 : index
    %37 = vector.load %arg4[%c0_35, %c0_36, %c0_37] : memref<1x3x512xf32, #tpu.memory_space<vmem>>, vector<1x3x73xf32>
    %38 = vector.shape_cast %37 : vector<1x3x73xf32> to vector<3x73xf32>
    %39 = tpu.concatenate %36, %38 in 1 : vector<3x439xf32>, vector<3x73xf32> -> vector<3x512xf32>
    %40 = tpu.concatenate %4, %9, %14, %19, %24, %29, %34, %39 in 0 : vector<3x512xf32>, vector<3x512xf32>, vector<3x512xf32>, vector<3x512xf32>, vector<3x512xf32>, vector<3x512xf32>, vector<3x512xf32>, vector<3x512xf32> -> vector<24x512xf32>
    %41 = arith.truncf %40 : vector<24x512xf32> to vector<24x512xbf16>
    %42 = arith.extf %41 : vector<24x512xbf16> to vector<24x512xf32>
    %43 = arith.subf %40, %42 : vector<24x512xf32>
    %44 = arith.truncf %43 : vector<24x512xf32> to vector<24x512xbf16>
    %45 = arith.extf %44 : vector<24x512xbf16> to vector<24x512xf32>
    %46 = arith.subf %43, %45 : vector<24x512xf32>
    %47 = arith.truncf %46 : vector<24x512xf32> to vector<24x512xbf16>
    %48 = tpu.concatenate %41, %44, %47 in 0 : vector<24x512xbf16>, vector<24x512xbf16>, vector<24x512xbf16> -> vector<72x512xbf16>
    %c0_i32_38 = arith.constant 0 : i32
    %c512_i32 = arith.constant 512 : i32
    %49 = arith.muli %c0_i32_38, %c512_i32 : i32
    %50 = tpu.assume_multiple %49, 512 : i32
    %c0_39 = arith.constant 0 : index
    %c0_40 = arith.constant 0 : index
    %51 = arith.index_cast %50 : i32 to index
    %52 = vector.load %arg4[%c0_39, %c0_40, %51] : memref<1x3x512xf32, #tpu.memory_space<vmem>>, vector<1x3x512xf32>
    %53 = vector.shape_cast %52 : vector<1x3x512xf32> to vector<3x512xf32>
    %c0_41 = arith.constant 0 : index
    %54 = arith.index_cast %50 : i32 to index
    %55 = vector.load %arg3[%c0_41, %54] : memref<3x512xf32, #tpu.memory_space<vmem>>, vector<3x512xf32>
    %56 = arith.addf %55, %53 : vector<3x512xf32>
    %57 = vector.extract_strided_slice %56 {offsets = [0, 0], sizes = [1, 512], strides = [1, 1]} : vector<3x512xf32> to vector<1x512xf32>
    %58 = vector.extract_strided_slice %56 {offsets = [1, 0], sizes = [1, 512], strides = [1, 1]} : vector<3x512xf32> to vector<1x512xf32>
    %59 = vector.extract_strided_slice %56 {offsets = [2, 0], sizes = [1, 512], strides = [1, 1]} : vector<3x512xf32> to vector<1x512xf32>
    %60 = math.floor %57 : vector<1x512xf32>
    %61 = math.floor %58 : vector<1x512xf32>
    %62 = math.floor %59 : vector<1x512xf32>
    %63 = arith.subf %57, %60 : vector<1x512xf32>
    %64 = arith.subf %58, %61 : vector<1x512xf32>
    %65 = arith.subf %59, %62 : vector<1x512xf32>
    %66 = arith.fptosi %60 : vector<1x512xf32> to vector<1x512xi32>
    %67 = arith.fptosi %61 : vector<1x512xf32> to vector<1x512xi32>
    %68 = arith.fptosi %62 : vector<1x512xf32> to vector<1x512xi32>
    %c0_i32_42 = arith.constant 0 : i32
    %69 = vector.broadcast %c0_i32_42 : i32 to vector<1x512xi32>
    %70 = arith.cmpi sge, %66, %69 : vector<1x512xi32>
    %c7_i32 = arith.constant 7 : i32
    %71 = vector.broadcast %c7_i32 : i32 to vector<1x512xi32>
    %72 = arith.cmpi sle, %66, %71 : vector<1x512xi32>
    %73 = arith.andi %70, %72 : vector<1x512xi1>
    %c-1_i32 = arith.constant -1 : i32
    %74 = vector.broadcast %c-1_i32 : i32 to vector<1x512xi32>
    %75 = arith.cmpi sge, %66, %74 : vector<1x512xi32>
    %c6_i32 = arith.constant 6 : i32
    %76 = vector.broadcast %c6_i32 : i32 to vector<1x512xi32>
    %77 = arith.cmpi sle, %66, %76 : vector<1x512xi32>
    %78 = arith.andi %75, %77 : vector<1x512xi1>
    %c0_i32_43 = arith.constant 0 : i32
    %79 = vector.broadcast %c0_i32_43 : i32 to vector<1x512xi32>
    %80 = arith.cmpi sge, %67, %79 : vector<1x512xi32>
    %c7_i32_44 = arith.constant 7 : i32
    %81 = vector.broadcast %c7_i32_44 : i32 to vector<1x512xi32>
    %82 = arith.cmpi sle, %67, %81 : vector<1x512xi32>
    %83 = arith.andi %80, %82 : vector<1x512xi1>
    %c-1_i32_45 = arith.constant -1 : i32
    %84 = vector.broadcast %c-1_i32_45 : i32 to vector<1x512xi32>
    %85 = arith.cmpi sge, %67, %84 : vector<1x512xi32>
    %c6_i32_46 = arith.constant 6 : i32
    %86 = vector.broadcast %c6_i32_46 : i32 to vector<1x512xi32>
    %87 = arith.cmpi sle, %67, %86 : vector<1x512xi32>
    %88 = arith.andi %85, %87 : vector<1x512xi1>
    %c0_i32_47 = arith.constant 0 : i32
    %89 = vector.broadcast %c0_i32_47 : i32 to vector<1x512xi32>
    %90 = arith.cmpi sge, %68, %89 : vector<1x512xi32>
    %c7_i32_48 = arith.constant 7 : i32
    %91 = vector.broadcast %c7_i32_48 : i32 to vector<1x512xi32>
    %92 = arith.cmpi sle, %68, %91 : vector<1x512xi32>
    %93 = arith.andi %90, %92 : vector<1x512xi1>
    %c-1_i32_49 = arith.constant -1 : i32
    %94 = vector.broadcast %c-1_i32_49 : i32 to vector<1x512xi32>
    %95 = arith.cmpi sge, %68, %94 : vector<1x512xi32>
    %c6_i32_50 = arith.constant 6 : i32
    %96 = vector.broadcast %c6_i32_50 : i32 to vector<1x512xi32>
    %97 = arith.cmpi sle, %68, %96 : vector<1x512xi32>
    %98 = arith.andi %95, %97 : vector<1x512xi1>
    %cst = arith.constant 1.000000e+00 : f32
    %99 = vector.broadcast %cst : f32 to vector<1x512xf32>
    %100 = arith.subf %99, %63 : vector<1x512xf32>
    %cst_51 = arith.constant 1.000000e+00 : f32
    %101 = vector.broadcast %cst_51 : f32 to vector<1x512xf32>
    %102 = arith.subf %101, %64 : vector<1x512xf32>
    %cst_52 = arith.constant 1.000000e+00 : f32
    %103 = vector.broadcast %cst_52 : f32 to vector<1x512xf32>
    %104 = arith.subf %103, %65 : vector<1x512xf32>
    %105 = arith.andi %73, %83 : vector<1x512xi1>
    %106 = arith.andi %105, %93 : vector<1x512xi1>
    %107 = arith.mulf %100, %102 : vector<1x512xf32>
    %108 = arith.mulf %107, %104 : vector<1x512xf32>
    %cst_53 = arith.constant 0.000000e+00 : f32
    %109 = vector.broadcast %cst_53 : f32 to vector<1x512xf32>
    %110 = arith.select %106, %108, %109 : vector<1x512xi1>, vector<1x512xf32>
    %111 = arith.andi %73, %83 : vector<1x512xi1>
    %112 = arith.andi %111, %98 : vector<1x512xi1>
    %113 = arith.mulf %100, %102 : vector<1x512xf32>
    %114 = arith.mulf %113, %65 : vector<1x512xf32>
    %cst_54 = arith.constant 0.000000e+00 : f32
    %115 = vector.broadcast %cst_54 : f32 to vector<1x512xf32>
    %116 = arith.select %112, %114, %115 : vector<1x512xi1>, vector<1x512xf32>
    %117 = arith.andi %73, %88 : vector<1x512xi1>
    %118 = arith.andi %117, %93 : vector<1x512xi1>
    %119 = arith.mulf %100, %64 : vector<1x512xf32>
    %120 = arith.mulf %119, %104 : vector<1x512xf32>
    %cst_55 = arith.constant 0.000000e+00 : f32
    %121 = vector.broadcast %cst_55 : f32 to vector<1x512xf32>
    %122 = arith.select %118, %120, %121 : vector<1x512xi1>, vector<1x512xf32>
    %123 = arith.andi %73, %88 : vector<1x512xi1>
    %124 = arith.andi %123, %98 : vector<1x512xi1>
    %125 = arith.mulf %100, %64 : vector<1x512xf32>
    %126 = arith.mulf %125, %65 : vector<1x512xf32>
    %cst_56 = arith.constant 0.000000e+00 : f32
    %127 = vector.broadcast %cst_56 : f32 to vector<1x512xf32>
    %128 = arith.select %124, %126, %127 : vector<1x512xi1>, vector<1x512xf32>
    %129 = arith.andi %78, %83 : vector<1x512xi1>
    %130 = arith.andi %129, %93 : vector<1x512xi1>
    %131 = arith.mulf %63, %102 : vector<1x512xf32>
    %132 = arith.mulf %131, %104 : vector<1x512xf32>
    %cst_57 = arith.constant 0.000000e+00 : f32
    %133 = vector.broadcast %cst_57 : f32 to vector<1x512xf32>
    %134 = arith.select %130, %132, %133 : vector<1x512xi1>, vector<1x512xf32>
    %135 = arith.andi %78, %83 : vector<1x512xi1>
    %136 = arith.andi %135, %98 : vector<1x512xi1>
    %137 = arith.mulf %63, %102 : vector<1x512xf32>
    %138 = arith.mulf %137, %65 : vector<1x512xf32>
    %cst_58 = arith.constant 0.000000e+00 : f32
    %139 = vector.broadcast %cst_58 : f32 to vector<1x512xf32>
    %140 = arith.select %136, %138, %139 : vector<1x512xi1>, vector<1x512xf32>
    %141 = arith.andi %78, %88 : vector<1x512xi1>
    %142 = arith.andi %141, %93 : vector<1x512xi1>
    %143 = arith.mulf %63, %64 : vector<1x512xf32>
    %144 = arith.mulf %143, %104 : vector<1x512xf32>
    %cst_59 = arith.constant 0.000000e+00 : f32
    %145 = vector.broadcast %cst_59 : f32 to vector<1x512xf32>
    %146 = arith.select %142, %144, %145 : vector<1x512xi1>, vector<1x512xf32>
    %147 = arith.andi %78, %88 : vector<1x512xi1>
    %148 = arith.andi %147, %98 : vector<1x512xi1>
    %149 = arith.mulf %63, %64 : vector<1x512xf32>
    %150 = arith.mulf %149, %65 : vector<1x512xf32>
    %cst_60 = arith.constant 0.000000e+00 : f32
    %151 = vector.broadcast %cst_60 : f32 to vector<1x512xf32>
    %152 = arith.select %148, %150, %151 : vector<1x512xi1>, vector<1x512xf32>
    %c-1_i32_61 = arith.constant -1 : i32
    %c7_i32_62 = arith.constant 7 : i32
    %153 = vector.broadcast %c-1_i32_61 : i32 to vector<1x512xi32>
    %154 = arith.maxsi %153, %66 : vector<1x512xi32>
    %155 = vector.broadcast %c7_i32_62 : i32 to vector<1x512xi32>
    %156 = arith.minsi %155, %154 : vector<1x512xi32>
    %c64_i32 = arith.constant 64 : i32
    %157 = vector.broadcast %c64_i32 : i32 to vector<1x512xi32>
    %158 = arith.muli %156, %157 : vector<1x512xi32>
    %c-1_i32_63 = arith.constant -1 : i32
    %c7_i32_64 = arith.constant 7 : i32
    %159 = vector.broadcast %c-1_i32_63 : i32 to vector<1x512xi32>
    %160 = arith.maxsi %159, %67 : vector<1x512xi32>
    %161 = vector.broadcast %c7_i32_64 : i32 to vector<1x512xi32>
    %162 = arith.minsi %161, %160 : vector<1x512xi32>
    %c8_i32 = arith.constant 8 : i32
    %163 = vector.broadcast %c8_i32 : i32 to vector<1x512xi32>
    %164 = arith.muli %162, %163 : vector<1x512xi32>
    %165 = arith.addi %158, %164 : vector<1x512xi32>
    %c-1_i32_65 = arith.constant -1 : i32
    %c7_i32_66 = arith.constant 7 : i32
    %166 = vector.broadcast %c-1_i32_65 : i32 to vector<1x512xi32>
    %167 = arith.maxsi %166, %68 : vector<1x512xi32>
    %168 = vector.broadcast %c7_i32_66 : i32 to vector<1x512xi32>
    %169 = arith.minsi %168, %167 : vector<1x512xi32>
    %170 = arith.addi %165, %169 : vector<1x512xi32>
    %c0_i32_67 = arith.constant 0 : i32
    %171 = vector.broadcast %c0_i32_67 : i32 to vector<1x512xi32>
    %172 = arith.cmpi slt, %170, %171 : vector<1x512xi32>
    %c512_i32_68 = arith.constant 512 : i32
    %173 = vector.broadcast %c512_i32_68 : i32 to vector<1x512xi32>
    %174 = arith.addi %170, %173 : vector<1x512xi32>
    %175 = arith.select %172, %174, %170 : vector<1x512xi1>, vector<1x512xi32>
    %176 = tpu.iota {dimensions = array<i32: 0>} : vector<512x512xi32>
    %177 = vector.broadcast %175 : vector<1x512xi32> to vector<512x512xi32>
    %178 = arith.cmpi eq, %176, %177 : vector<512x512xi32>
    %179 = arith.extui %178 : vector<512x512xi1> to vector<512x512xi32>
    %180 = arith.sitofp %179 : vector<512x512xi32> to vector<512x512xf32>
    %181 = arith.truncf %180 : vector<512x512xf32> to vector<512x512xbf16>
    %cst_69 = arith.constant dense<0.000000e+00> : vector<72x512xf32>
    %182 = tpu.matmul %48, %181, %cst_69 {dimension_numbers = #tpu.dot_dimension_numbers<[1], [0], [0], [1], [0, 0, 1, 1], [], []>} : vector<72x512xbf16>, vector<512x512xbf16>, vector<72x512xf32> -> vector<72x512xf32>
    %183 = vector.extract_strided_slice %182 {offsets = [0, 0], sizes = [24, 512], strides = [1, 1]} : vector<72x512xf32> to vector<24x512xf32>
    %184 = vector.extract_strided_slice %182 {offsets = [24, 0], sizes = [24, 512], strides = [1, 1]} : vector<72x512xf32> to vector<24x512xf32>
    %185 = arith.addf %183, %184 : vector<24x512xf32>
    %186 = vector.extract_strided_slice %182 {offsets = [48, 0], sizes = [24, 512], strides = [1, 1]} : vector<72x512xf32> to vector<24x512xf32>
    %187 = arith.addf %185, %186 : vector<24x512xf32>
    %188 = vector.extract_strided_slice %187 {offsets = [0, 0], sizes = [3, 512], strides = [1, 1]} : vector<24x512xf32> to vector<3x512xf32>
    %189 = vector.broadcast %110 : vector<1x512xf32> to vector<3x512xf32>
    %190 = arith.mulf %189, %188 : vector<3x512xf32>
    %191 = vector.extract_strided_slice %187 {offsets = [3, 0], sizes = [3, 512], strides = [1, 1]} : vector<24x512xf32> to vector<3x512xf32>
    %192 = vector.broadcast %116 : vector<1x512xf32> to vector<3x512xf32>
    %193 = arith.mulf %192, %191 : vector<3x512xf32>
    %194 = arith.addf %190, %193 : vector<3x512xf32>
    %195 = vector.extract_strided_slice %187 {offsets = [6, 0], sizes = [3, 512], strides = [1, 1]} : vector<24x512xf32> to vector<3x512xf32>
    %196 = vector.broadcast %122 : vector<1x512xf32> to vector<3x512xf32>
    %197 = arith.mulf %196, %195 : vector<3x512xf32>
    %198 = arith.addf %194, %197 : vector<3x512xf32>
    %199 = vector.extract_strided_slice %187 {offsets = [9, 0], sizes = [3, 512], strides = [1, 1]} : vector<24x512xf32> to vector<3x512xf32>
    %200 = vector.broadcast %128 : vector<1x512xf32> to vector<3x512xf32>
    %201 = arith.mulf %200, %199 : vector<3x512xf32>
    %202 = arith.addf %198, %201 : vector<3x512xf32>
    %203 = vector.extract_strided_slice %187 {offsets = [12, 0], sizes = [3, 512], strides = [1, 1]} : vector<24x512xf32> to vector<3x512xf32>
    %204 = vector.broadcast %134 : vector<1x512xf32> to vector<3x512xf32>
    %205 = arith.mulf %204, %203 : vector<3x512xf32>
    %206 = arith.addf %202, %205 : vector<3x512xf32>
    %207 = vector.extract_strided_slice %187 {offsets = [15, 0], sizes = [3, 512], strides = [1, 1]} : vector<24x512xf32> to vector<3x512xf32>
    %208 = vector.broadcast %140 : vector<1x512xf32> to vector<3x512xf32>
    %209 = arith.mulf %208, %207 : vector<3x512xf32>
    %210 = arith.addf %206, %209 : vector<3x512xf32>
    %211 = vector.extract_strided_slice %187 {offsets = [18, 0], sizes = [3, 512], strides = [1, 1]} : vector<24x512xf32> to vector<3x512xf32>
    %212 = vector.broadcast %146 : vector<1x512xf32> to vector<3x512xf32>
    %213 = arith.mulf %212, %211 : vector<3x512xf32>
    %214 = arith.addf %210, %213 : vector<3x512xf32>
    %215 = vector.extract_strided_slice %187 {offsets = [21, 0], sizes = [3, 512], strides = [1, 1]} : vector<24x512xf32> to vector<3x512xf32>
    %216 = vector.broadcast %152 : vector<1x512xf32> to vector<3x512xf32>
    %217 = arith.mulf %216, %215 : vector<3x512xf32>
    %218 = arith.addf %214, %217 : vector<3x512xf32>
    %219 = arith.addf %53, %218 : vector<3x512xf32>
    %c0_70 = arith.constant 0 : index
    %c0_71 = arith.constant 0 : index
    %220 = arith.index_cast %50 : i32 to index
    %221 = vector.load %arg4[%c0_70, %c0_71, %220] : memref<1x3x512xf32, #tpu.memory_space<vmem>>, vector<1x3x512xf32>
    %222 = vector.shape_cast %221 : vector<1x3x512xf32> to vector<3x512xf32>
    %223 = vector.shape_cast %219 : vector<3x512xf32> to vector<1x3x512xf32>
    tpu.vector_store %arg4[%c0_70, %c0_71, %220], %223 {strides = array<i32>} : memref<1x3x512xf32, #tpu.memory_space<vmem>>, vector<1x3x512xf32>,
    %c1_i32 = arith.constant 1 : i32
    return
  }
  func.func @transform_0(%arg0: i32, %arg1: i32) -> (i32, i32, i32) {
    %c0_i32 = arith.constant 0 : i32
    %c0_i32_0 = arith.constant 0 : i32
    %c0_i32_1 = arith.constant 0 : i32
    return %arg0, %c0_i32, %c0_i32_0 : i32, i32, i32
  }
  func.func @transform_1(%arg0: i32, %arg1: i32) -> (i32, i32) {
    %c0_i32 = arith.constant 0 : i32
    %c0_i32_0 = arith.constant 0 : i32
    %c0_i32_1 = arith.constant 0 : i32
    return %c0_i32, %c0_i32_0 : i32, i32
  }
  func.func @transform_2(%arg0: i32, %arg1: i32) -> (i32, i32, i32) {
    %c0_i32 = arith.constant 0 : i32
    %c0_i32_0 = arith.constant 0 : i32
    %c0_i32_1 = arith.constant 0 : i32
    return %arg0, %c0_i32, %c0_i32_0 : i32, i32, i32
  }
}

</mosaic_0001>

<bundles_post_ra>
// kernel: vec_int.1
= control target key start
LH: loop header
LB: loop body
LE: loop exit
PB: predicated region body
PF: predicated region fallthrough
CT: control target
= control target key end

     0   :  { %s3397_s9 = smov 0   ;;  %s3399_s10 = smov 0   ;;  %s5297_s0 = inlined_call_operand.vmem [shape: f32[2,3,512], index: 0, kind: input, shape index: {}]   ;;  %s5298_s1 = inlined_call_operand.vmem [shape: f32[3,512], index: 1, kind: input, shape index: {}]   ;;  %s5299_s2 = inlined_call_operand.vmem [shape: f32[2,3,512], index: 2, kind: output, shape index: {}]  }
   0x1   :  { %s3401_s11 = smov 0   ;;  %s3403_s12 = smov 0  }
   0x2   :  { %s3405_s13 = smov 0  }
   0x3 LB: > { %s21_s14 = sadd.s32 1, %s3363_s11  ;;  %s24_s15 = sadd.s32 1, %s3367_s12  ;;  %s3371_s13 = sphi %s3405_s13, %s12_s13   ;;  %s3367_s12 = sphi %s3403_s12, %s5689_s12   ;;  %s3363_s11 = sphi %s3401_s11, %s5688_s11   ;;  %s3359_s10 = sphi %s3399_s10, %s5687_s10   ;;  %s3355_s9 = sphi %s3397_s9, %s5686_s9  }
   0x4   : > { %p22_p0 = scmp.ge.s32.totalorder %s21_s14, 4  ;;  %p2744_p1 = scmp.ge.s32.totalorder %s3371_s13, 1 }
   0x5   : > { %p124_p2 = scmp.lt.s32.totalorder %s3371_s13, 9 }
   0x6   : > { %s5691_s14 = smov (%p22_p0, %s21_s14), 0  ;;  %s5693_s15 = smov (!%p22_p0, %s24_s15), %s3367_s12 }
   0x7   : > { %p125_p3 = pnand %p2744_p1, %p124_p2  ;;  %p26_p4 = scmp.ge.s32.totalorder %s5693_s15, 2 }
   0x9   : > { %s5695_s15 = smov (%p26_p4, %s5693_s15), 0  ;;  %128 = sbr.rel (%p125_p3) target bundleno = 721 (0x2d1), region = 28 }
   0xe   : > { %p146_p5 = scmp.lt.s32.totalorder %s3359_s10, 1  ;;  %p2749_p6 = scmp.ne.s32.totalorder %s3355_s9, 0 }
  0x10   : > { %s5697_s10 = smov (!%p146_p5, %s3359_s10), 1  ;;  %159 = sbr.rel (%p2749_p6) target bundleno = 26 (0x1a), region = 32 }
  0x11   : > { %s3276_s16 = sshll.u32 %s5697_s10, 4 }
  0x12   : > { %s150_s19 = scalar_lea.vmem %s5297_s0, %s3276_s16  ;;  %s3433_s22 = scalar_lea.vmem %s5299_s2, %s3276_s16 }
  0x15   : > { %v160_v0 = vld [vmem:[%s150_s19] sm:$0x77]  ;;  %v161_v1 = vld [vmem:[%s150_s19 + $0x8] sm:$0x77] }
  0x16   : > { %v162_v2 = vmul.f32 0.0625, %v160_v0  ;;  %v163_v3 = vmul.f32 0.0625, %v161_v1 }
  0x18   : > { %164 = vst [vmem:[%s3433_s22] sm:$0x77] %v162_v2 }
  0x19   : > { %165 = vst [vmem:[%s3433_s22 + $0x8] sm:$0x77] %v163_v3 }
  0x1a PF: > { %s3373_s23 = smov 127   ;;  %s3374_s24 = smov 120   ;;  %v677_v55 = vld [vmem:[%s5298_s1] sm:$0x77] }
  0x1b   : > { %s3375_s25 = smov 119   ;;  %s3376_s26 = smov 64  }
  0x1c   : > { %s3377_s27 = smov 63   ;;  %s3378_s28 = smov 56  }
  0x1d   : > { %s3379_s29 = smov 55  }
  0x1f   : > { %v3442_v5 = vld [vmem:[%s3433_s22] sm:$0x77] }
  0x20   : > { %v3438_v4 = vld [vmem:[%s3433_s22 + $0x8] sm:$0x77]  ;;  %171 = vst [vmem:[#allocation1] ss:$2 sm:$0xff] %v3442_v5  ;;  %v168_v7 = vld [vmem:[%s3433_s22] sm:$0x7] }
  0x21   : > { %173 = vst [vmem:[#allocation1 + $0x10] ss:$2 sm:$0xff] %v3438_v4  ;;  %v199_v6 = vld [vmem:[%s3433_s22 + $0x8] sm:$0x77]  ;;  %v198_v13 = vld [vmem:[%s3433_s22] sm:$0x77] }
  0x22   : > { %v231_v12 = vld [vmem:[%s3433_s22 + $0x8] sm:$0x77]  ;;  %v200_v18 = vld [vmem:[%s3433_s22] sm:$0x7] }
  0x23   : > { %v263_v17 = vld [vmem:[%s3433_s22 + $0x8] sm:$0x77]  ;;  %v230_v24 = vld [vmem:[%s3433_s22] sm:$0x77] }
  0x24   : > { %v295_v23 = vld [vmem:[%s3433_s22 + $0x8] sm:$0x77]  ;;  %v232_v28 = vld [vmem:[%s3433_s22] sm:$0x7] }
  0x25   : > { %v327_v33 = vld [vmem:[%s3433_s22 + $0x8] sm:$0x77]  ;;  %v262_v34 = vld [vmem:[%s3433_s22] sm:$0x77] }
  0x26   : > { %v359_v36 = vld [vmem:[%s3433_s22 + $0x8] sm:$0x77]  ;;  %v264_v39 = vld [vmem:[%s3433_s22] sm:$0x7] }
  0x27   : > { %v3449_v10 = vld.sshfl [vmem:[#allocation1] sm:$0xff pattern:$0x75316420]  ;;  %v175_v11 = vld.sshfl [vmem:[#allocation1 + $0x8] sm:$0xff pattern:$0x75316420] }
  0x28   : > { %v176_v8 = vld.sshfl [vmem:[#allocation1 + $0x10] sm:$0xff pattern:$0x75316420]  ;;  %v177_v9 = vld.sshfl [vmem:[#allocation1 + $0x18] sm:$0xff pattern:$0x75316420] }
  0x29   : > { %182 = vrot.lane.b32.xlu0 %v176_v8, %s3373_s23  ;;  %184 = vrot.lane.b32.xlu1 %v177_v9, %s3373_s23  ;;  %205 = vst [vmem:[#allocation1 + $0x10] ss:$2 sm:$0xff] %v199_v6  ;;  %v294_v44 = vld [vmem:[%s3433_s22] sm:$0x77] }
  0x2a   : > { %192 = vst [vmem:[#allocation1] ss:$2 sm:$0xff] %v168_v7  ;;  %v296_v46 = vld [vmem:[%s3433_s22] sm:$0x7] }
  0x2b   : > { %v326_v49 = vld [vmem:[%s3433_s22] sm:$0x77] }
  0x2c   : > { %v328_v51 = vld [vmem:[%s3433_s22] sm:$0x7] }
  0x2d   : > { %v675_v54 = vld [vmem:[%s3433_s22] sm:$0x77] }
  0x2e   : > { %v3498_v56 = vadd.f32 %v677_v55, %v675_v54  ;;  %v358_v57 = vld [vmem:[%s3433_s22] sm:$0x77] }
  0x2f   : > { %v360_v63 = vld [vmem:[%s3433_s22] sm:$0x7] }
  0x30   : > { %v208_v14 = vld.sshfl [vmem:[#allocation1 + $0x10] sm:$0xff pattern:$0x75316420]  ;;  %v209_v15 = vld.sshfl [vmem:[#allocation1 + $0x18] sm:$0xff pattern:$0x75316420]  ;;  %v5300_v58 = vfloor.f32 %v3498_v56 }
  0x31   : > { %214 = vrot.lane.b32.xlu0 %v208_v14, %s3374_s24  ;;  %237 = vst [vmem:[#allocation1 + $0x10] ss:$2 sm:$0xff] %v231_v12  ;;  %v193_v16 = vld.sshfl [vmem:[#allocation1] sm:$0xff pattern:$0x75316420] }
  0x32   : > { %194 = vrot.lane.b32.xlu2 %v193_v16, %s3373_s23  ;;  %203 = vst [vmem:[#allocation1] ss:$2 sm:$0xff] %v198_v13  ;;  %v3505_v60 = vcvt.f32.s32 %v5300_v58 }
  0x33   : > { %5449 = vst [vmem:[#allocation2_spill] sm:$0xff] %v3498_v56 }
  0x34   : > { %5450 = vst [vmem:[#allocation3_spill] sm:$0xff] %v3505_v60  ;;  %vm821_vm0 = vcmp.gt.s32.totalorder %v3505_v60, 4294967295 }
  0x35   : > { %v822_v61 = vsel %vm821_vm0, %v3505_v60, 4294967295 }
  0x36   : > { %vm825_vm1 = vcmp.lt.s32.totalorder %v822_v61, 7 }
  0x37   : > { %v826_v62 = vsel %vm825_vm1, %v822_v61, 7 }
  0x38   : > { %v240_v19 = vld.sshfl [vmem:[#allocation1 + $0x10] sm:$0xff pattern:$0x75316420]  ;;  %v241_v20 = vld.sshfl [vmem:[#allocation1 + $0x18] sm:$0xff pattern:$0x75316420] }
  0x39   : > { %216 = vrot.lane.b32.xlu0 %v209_v15, %s3374_s24  ;;  %246 = vrot.lane.b32.xlu1 %v240_v19, %s3375_s25  ;;  %269 = vst [vmem:[#allocation1 + $0x10] ss:$2 sm:$0xff] %v263_v17  ;;  %v207_v21 = vld.sshfl [vmem:[#allocation1 + $0x8] sm:$0xff pattern:$0x75316420]  ;;  %v831_v0 = vmul.u32 8, %v826_v62 }
  0x3a   : > { %v206_v22 = vld.sshfl [vmem:[#allocation1] sm:$0xff pattern:$0x75316420]  ;;  %248 = vrot.lane.b32.xlu2 %v241_v20, %s3375_s25  ;;  %v829_v3 = vmul.u32 64, %v826_v62  ;;  %v2760_v6 = vrot.slane %v826_v62, 10 }
  0x3b   : > { %224 = vst [vmem:[#allocation1] ss:$2 sm:$0xff] %v200_v18 }
  0x40   : > { %v272_v25 = vld.sshfl [vmem:[#allocation1 + $0x10] sm:$0xff pattern:$0x75316420]  ;;  %v273_v26 = vld.sshfl [vmem:[#allocation1 + $0x18] sm:$0xff pattern:$0x75316420] }
  0x41   : > { %212 = vrot.lane.b32.xlu1 %v207_v21, %s3374_s24  ;;  %210 = vrot.lane.b32.xlu0 %v206_v22, %s3374_s24  ;;  %301 = vst [vmem:[#allocation1 + $0x10] ss:$2 sm:$0xff] %v295_v23 }
  0x42   : > { %v225_v27 = vld.sshfl [vmem:[#allocation1] sm:$0xff pattern:$0x75316420] }
  0x43   : > { %235 = vst [vmem:[#allocation1] ss:$2 sm:$0xff] %v230_v24  ;;  %v5305_v24 = vmov 1.0|1.0  }
  0x48   : > { %v304_v29 = vld.sshfl [vmem:[#allocation1 + $0x10] sm:$0xff pattern:$0x75316420]  ;;  %v305_v30 = vld.sshfl [vmem:[#allocation1 + $0x18] sm:$0xff pattern:$0x75316420] }
  0x49   : > { %278 = vrot.lane.b32.xlu0 %v272_v25, %s3376_s26  ;;  %226 = vrot.lane.b32.xlu1 %v225_v27, %s3374_s24  ;;  %333 = vst [vmem:[#allocation1 + $0x10] ss:$2 sm:$0xff] %v327_v33 }
  0x4a   : > { %v238_v31 = vld.sshfl [vmem:[#allocation1] sm:$0xff pattern:$0x75316420]  ;;  %v239_v32 = vld.sshfl [vmem:[#allocation1 + $0x8] sm:$0xff pattern:$0x75316420] }
  0x4b   : > { %242 = vrot.lane.b32.xlu2 %v238_v31, %s3375_s25  ;;  %256 = vst [vmem:[#allocation1] ss:$2 sm:$0xff] %v232_v28 }
  0x50   : > { %v336_v37 = vld.sshfl [vmem:[#allocation1 + $0x10] sm:$0xff pattern:$0x75316420]  ;;  %v337_v38 = vld.sshfl [vmem:[#allocation1 + $0x18] sm:$0xff pattern:$0x75316420] }
  0x51   : > { %310 = vrot.lane.b32.xlu0 %v304_v29, %s3377_s27  ;;  %280 = vrot.lane.b32.xlu1 %v273_v26, %s3376_s26  ;;  %365 = vst [vmem:[#allocation1 + $0x10] ss:$2 sm:$0xff] %v359_v36 }
  0x52   : > { %v257_v35 = vld.sshfl [vmem:[#allocation1] sm:$0xff pattern:$0x75316420] }
  0x53   : > { %180 = vrot.lane.b32.xlu2 %v175_v11, %s3373_s23  ;;  %267 = vst [vmem:[#allocation1] ss:$2 sm:$0xff] %v262_v34  ;;  %v851_v11 = vlaneseq }
  0x55   : > { %v3520_v14 = vshrl.u32 %v851_v11, 7 }
  0x57   : > { %5451 = vst [vmem:[#allocation4_spill] sm:$0xff] %v3520_v14  ;;  %v3524_v16 = vadd.s32 368, %v3520_v14  ;;  %v3527_v17 = vadd.s32 376, %v3520_v14  ;;  %v3530_v18 = vadd.s32 496, %v3520_v14  ;;  %v3533_v19 = vadd.s32 504, %v3520_v14 }
  0x58   : > { %v368_v42 = vld.sshfl [vmem:[#allocation1 + $0x10] sm:$0xff pattern:$0x75316420]  ;;  %v369_v43 = vld.sshfl [vmem:[#allocation1 + $0x18] sm:$0xff pattern:$0x75316420] }
  0x59   : > { %312 = vrot.lane.b32.xlu1 %v305_v30, %s3377_s27  ;;  %244 = vrot.lane.b32.xlu0 %v239_v32, %s3375_s25  ;;  %392 = vst [vmem:[#allocation1 + $0x10] ss:$2 sm:$0xff] %v3438_v4  ;;  %v2758_v4 = vrot.slane %v831_v0, 9  ;;  %v3541_v21 = vadd.s32 360, %v3520_v14  ;;  %v3544_v22 = vadd.s32 480, %v3520_v14  ;;  %v3559_v23 = vadd.s32 488, %v3520_v14 }
  0x5a   : > { %v270_v40 = vld.sshfl [vmem:[#allocation1] sm:$0xff pattern:$0x75316420]  ;;  %v271_v41 = vld.sshfl [vmem:[#allocation1 + $0x8] sm:$0xff pattern:$0x75316420] }
  0x5b   : > { %258 = vrot.lane.b32.xlu2 %v257_v35, %s3375_s25  ;;  %288 = vst [vmem:[#allocation1] ss:$2 sm:$0xff] %v264_v39  ;;  %v837_v7 = vadd.s32 %v2758_v4, %v829_v3  ;;  %v3573_v27 = vadd.s32 336, %v3520_v14  ;;  %v3576_v28 = vadd.s32 344, %v3520_v14  ;;  %v3580_v29 = vadd.s32 464, %v3520_v14 }
  0x5c   : > { %v3583_v30 = vadd.s32 472, %v3520_v14  ;;  %v3597_v32 = vadd.s32 320, %v3520_v14  ;;  %v3600_v33 = vadd.s32 328, %v3520_v14  ;;  %v3603_v34 = vadd.s32 448, %v3520_v14 }
  0x5d   : > { %v843_v8 = vadd.s32 %v2760_v6, %v837_v7  ;;  %v3606_v35 = vadd.s32 456, %v3520_v14  ;;  %v3626_v39 = vadd.s32 312, %v3520_v14  ;;  %v3706_v55 = vadd.s32 224, %v3520_v14 }
  0x5e   : > { %5452 = vst [vmem:[#allocation5_spill] sm:$0xff] %v3597_v32  ;;  %v3717_v61 = vadd.s32 280, %v3520_v14  ;;  %v3726_v62 = vadd.s32 400, %v3520_v14  ;;  %v3734_v0 = vadd.s32 80, %v3520_v14  ;;  %v3746_v3 = vadd.s32 216, %v3520_v14 }
  0x5f   : > { %vm845_vm2 = vcmp.lt.s32.totalorder %v843_v8, 0  ;;  %5453 = vst [vmem:[#allocation6_spill] sm:$0xff] %v3600_v33  ;;  %v3758_v7 = vadd.s32 256, %v3520_v14  ;;  %v3778_v11 = vadd.s32 384, %v3520_v14  ;;  %v3788_v58 = vadd.s32 72, %v3520_v14 }
  0x60   : > { %5454 = vst [vmem:[#allocation7_spill] sm:$0xff] %v3603_v34  ;;  %v3796_v56 = vadd.s32 192, %v3520_v14  ;;  %v3799_v60 = vadd.s32 200, %v3520_v14 }
  0x61   : > { %178 = vrot.lane.b32.xlu1 %v3449_v10, %s3373_s23  ;;  %274 = vrot.lane.b32.xlu0 %v270_v40, %s3376_s26  ;;  %v847_v10 = vadd.s32 512, %v843_v8  ;;  %5455 = vst [vmem:[#allocation8_spill] sm:$0xff] %v3606_v35  ;;  %v3629_v40 = vadd.s32 432, %v3520_v14 }
  0x62   : > { %v289_v45 = vld.sshfl [vmem:[#allocation1] sm:$0xff pattern:$0x75316420]  ;;  %5457 = vst [vmem:[#allocation10_spill] sm:$0xff] %v3626_v39 }
  0x63   : > { %290 = vrot.lane.b32.xlu2 %v289_v45, %s3376_s26  ;;  %299 = vst [vmem:[#allocation1] ss:$2 sm:$0xff] %v294_v44  ;;  %v3518_v13 = vsel %vm845_vm2, %v847_v10, %v843_v8  ;;  %v3642_v44 = vadd.s32 240, %v3520_v14  ;;  %v3652_v45 = vadd.s32 248, %v3520_v14  ;;  %v3761_v8 = vadd.s32 264, %v3520_v14 }
  0x64   : > { %v916_v15 = vperm.slane %v3518_v13, 0  ;;  %5458 = vst [vmem:[#allocation11_spill] sm:$0xff] %v3629_v40 }
  0x65   : > { %5465 = vst [vmem:[#allocation18_spill] sm:$0xff] %v3717_v61 }
  0x66   : > { %v3535_v20 = vperm.slane %v916_v15, 0  ;;  %5466 = vst [vmem:[#allocation19_spill] sm:$0xff] %v3726_v62  ;;  %v3785_v15 = vadd.s32 64, %v3520_v14 }
  0x67   : > { %5468 = vst [vmem:[#allocation21_spill] sm:$0xff] %v3746_v3 }
  0x68   : > { %vm1108_vm3 = vcmp.eq.s32.totalorder %v3524_v16, %v3535_v20  ;;  %vm1112_vm4 = vcmp.eq.s32.totalorder %v3527_v17, %v3535_v20  ;;  %vm1172_vm5 = vcmp.eq.s32.totalorder %v3530_v18, %v3535_v20  ;;  %vm1176_vm6 = vcmp.eq.s32.totalorder %v3533_v19, %v3535_v20  ;;  %5469 = vst [vmem:[#allocation22_spill] sm:$0xff] %v3758_v7 }
  0x69   : > { %276 = vrot.lane.b32.xlu1 %v271_v41, %s3376_s26  ;;  %vm3050_vm7 = vmpackc.low %vm1112_vm4, %vm1108_vm3  ;;  %vm1104_vm9 = vcmp.eq.s32.totalorder %v3541_v21, %v3535_v20  ;;  %vm1164_vm10 = vcmp.eq.s32.totalorder %v3544_v22, %v3535_v20  ;;  %vm1168_vm13 = vcmp.eq.s32.totalorder %v3559_v23, %v3535_v20  ;;  %vm1092_vm15 = vcmp.eq.s32.totalorder %v3573_v27, %v3535_v20 }
  0x6a   : > { %v303_v47 = vld.sshfl [vmem:[#allocation1 + $0x8] sm:$0xff pattern:$0x75316420]  ;;  %v302_v48 = vld.sshfl [vmem:[#allocation1] sm:$0xff pattern:$0x75316420]  ;;  %3051 = vmatpush.bf16.msk.msra.mxu2 %vm3050_vm7, %v5305_v24  ;;  %vm3066_vm11 = vmpackc.low %vm1176_vm6, %vm1172_vm5  ;;  %vm1096_vm0 = vcmp.eq.s32.totalorder %v3576_v28, %v3535_v20  ;;  %vm1156_vm2 = vcmp.eq.s32.totalorder %v3580_v29, %v3535_v20  ;;  %vm1160_vm3 = vcmp.eq.s32.totalorder %v3583_v30, %v3535_v20  ;;  %vm1084_vm5 = vcmp.eq.s32.totalorder %v3597_v32, %v3535_v20 }
  0x6b   : > { %308 = vrot.lane.b32.xlu0 %v303_v47, %s3377_s27  ;;  %306 = vrot.lane.b32.xlu2 %v302_v48, %s3377_s27  ;;  %320 = vst [vmem:[#allocation1] ss:$2 sm:$0xff] %v296_v46  ;;  %vm3068_vm14 = vmpackc.low %vm1168_vm13, %vm1164_vm10  ;;  %vm1088_vm6 = vcmp.eq.s32.totalorder %v3600_v33, %v3535_v20  ;;  %vm1148_vm7 = vcmp.eq.s32.totalorder %v3603_v34, %v3535_v20  ;;  %v3633_v41 = vadd.s32 440, %v3520_v14  ;;  %v3665_v46 = vadd.s32 288, %v3520_v14 }
  0x6c   : > { %3067 = vmatpush.bf16.msk.msra.mxu3 %vm3066_vm11, %v5305_v24  ;;  %vm3054_vm1 = vmpackc.low %vm1096_vm0, %vm1092_vm15  ;;  %vm1140_vm13 = vcmp.eq.s32.totalorder %v3629_v40, %v3535_v20  ;;  %v3668_v47 = vadd.s32 296, %v3520_v14  ;;  %v3672_v48 = vadd.s32 416, %v3520_v14  ;;  %5470 = vst [vmem:[#allocation23_spill] sm:$0xff] %v3761_v8 }
  0x6d   : > { %vm3070_vm4 = vmpackc.low %vm1160_vm3, %vm1156_vm2  ;;  %5459 = vst [vmem:[#allocation12_spill] sm:$0xff] %v3633_v41  ;;  %vm1144_vm15 = vcmp.eq.s32.totalorder %v3633_v41, %v3535_v20  ;;  %vm1044_vm3 = vcmp.eq.s32.totalorder %v3642_v44, %v3535_v20  ;;  %v395_v41 = vld.sshfl [vmem:[#allocation1 + $0x10] sm:$0xff pattern:$0x75316420] }
  0x6e   : > { %vm3074_vm2 = vmpackc.low %vm1144_vm15, %vm1140_vm13  ;;  %5460 = vst [vmem:[#allocation13_spill] sm:$0xff] %v3665_v46 }
  0x6f   : > { %5461 = vst [vmem:[#allocation14_spill] sm:$0xff] %v3668_v47 }
  0x70   : > { %3069 = vmatpush.bf16.msk.msra.mxu3 %vm3068_vm14, %v5305_v24  ;;  %5462 = vst [vmem:[#allocation15_spill] sm:$0xff] %v3672_v48 }
  0x71   : > { %342 = vrot.lane.b32.xlu1 %v336_v37, %s3378_s28  ;;  %5471 = vst [vmem:[#allocation24_spill] sm:$0xff] %v3778_v11 }
  0x72   : > { %v321_v50 = vld.sshfl [vmem:[#allocation1] sm:$0xff pattern:$0x75316420]  ;;  %5473 = vst [vmem:[#allocation26_spill] sm:$0xff] %v3785_v15 }
  0x73   : > { %322 = vrot.lane.b32.xlu2 %v321_v50, %s3377_s27  ;;  %331 = vst [vmem:[#allocation1] ss:$2 sm:$0xff] %v326_v49  ;;  %v3675_v49 = vadd.s32 424, %v3520_v14 }
  0x74   : > { %3071 = vmatpush.bf16.msk.msra.mxu3 %vm3070_vm4, %v5305_v24  ;;  %vm1048_vm4 = vcmp.eq.s32.totalorder %v3652_v45, %v3535_v20  ;;  %5474 = vst [vmem:[#allocation27_spill] sm:$0xff] %v3788_v58 }
  0x75   : > { %5463 = vst [vmem:[#allocation16_spill] sm:$0xff] %v3675_v49 }
  0x76   : > { %5475 = vst [vmem:[#allocation28_spill] sm:$0xff] %v3796_v56 }
  0x77   : > { %5476 = vst [vmem:[#allocation29_spill] sm:$0xff] %v3799_v60 }
  0x79   : > { %374 = vrot.lane.b32.xlu1 %v368_v42, %s3379_s29  ;;  %v3636_v42 = vadd.s32 112, %v3520_v14 }
  0x7a   : > { %v334_v52 = vld.sshfl [vmem:[#allocation1] sm:$0xff pattern:$0x75316420]  ;;  %v335_v53 = vld.sshfl [vmem:[#allocation1 + $0x8] sm:$0xff pattern:$0x75316420] }
  0x7b   : > { %344 = vrot.lane.b32.xlu2 %v337_v38, %s3378_s28  ;;  %352 = vst [vmem:[#allocation1] ss:$2 sm:$0xff] %v328_v51  ;;  %v3623_v38 = vadd.s32 304, %v3520_v14  ;;  %vm980_vm0 = vcmp.eq.s32.totalorder %v3636_v42, %v3535_v20 }
  0x7d   : > { %5456 = vst [vmem:[#allocation9_spill] sm:$0xff] %v3623_v38  ;;  %vm1076_vm11 = vcmp.eq.s32.totalorder %v3623_v38, %v3535_v20 }
  0x81   : > { %338 = vrot.lane.b32.xlu1 %v334_v52, %s3378_s28  ;;  %v3688_v52 = vadd.s32 96, %v3520_v14 }
  0x82   : > { %v353_v59 = vld.sshfl [vmem:[#allocation1] sm:$0xff pattern:$0x75316420] }
  0x83   : > { %376 = vrot.lane.b32.xlu2 %v369_v43, %s3379_s29  ;;  %354 = vrot.lane.b32.xlu0 %v353_v59, %s3378_s28  ;;  %363 = vst [vmem:[#allocation1] ss:$2 sm:$0xff] %v358_v57  ;;  %v3639_v43 = vadd.s32 120, %v3520_v14  ;;  %vm972_vm13 = vcmp.eq.s32.totalorder %v3688_v52, %v3535_v20  ;;  %v3709_v57 = vadd.s32 232, %v3520_v14  ;;  %v3712_v59 = vadd.s32 272, %v3520_v14 }
  0x85   : > { %5464 = vst [vmem:[#allocation17_spill] sm:$0xff] %v3712_v59 }
  0x8a   : > { %v367_v1 = vld.sshfl [vmem:[#allocation1 + $0x8] sm:$0xff pattern:$0x75316420]  ;;  %v366_v2 = vld.sshfl [vmem:[#allocation1] sm:$0xff pattern:$0x75316420] }
  0x8b   : > { %340 = vrot.lane.b32.xlu2 %v335_v53, %s3378_s28  ;;  %372 = vrot.lane.b32.xlu1 %v367_v1, %s3379_s29  ;;  %384 = vst [vmem:[#allocation1] ss:$2 sm:$0xff] %v360_v63  ;;  %v3691_v53 = vadd.s32 104, %v3520_v14  ;;  %v3731_v63 = vadd.s32 408, %v3520_v14  ;;  %v3740_v1 = vadd.s32 88, %v3520_v14 }
  0x8c   : > { %v3514_v9 = vpop.permute.xlu2 %194 }
  0x8d   : > { %5467 = vst [vmem:[#allocation20_spill] sm:$0xff] %v3731_v63 }
  0x92   : > { %v385_v12 = vld.sshfl [vmem:[#allocation1] sm:$0xff pattern:$0x75316420] }
  0x93   : > { %386 = vrot.lane.b32.xlu0 %v385_v12, %s3379_s29  ;;  %390 = vst [vmem:[#allocation1] ss:$2 sm:$0xff] %v3442_v5  ;;  %v3538_v5 = vadd.s32 352, %v3520_v14  ;;  %v3781_v12 = vadd.s32 392, %v3520_v14 }
  0x94   : > { %v3567_v26 = vpop.permute.xlu2 %248 }
  0x95   : > { %vm1100_vm8 = vcmp.eq.s32.totalorder %v3538_v5, %v3535_v20  ;;  %5472 = vst [vmem:[#allocation25_spill] sm:$0xff] %v3781_v12 }
  0x96   : > { %vm3052_vm12 = vmpackc.low %vm1104_vm9, %vm1100_vm8  ;;  %vm1152_vm8 = vcmp.eq.s32.totalorder %v3606_v35, %v3535_v20 }
  0x97   : > { %3053 = vmatpush.bf16.msk.msra.mxu2 %vm3052_vm12, %v5305_v24  ;;  %vm3056_vm9 = vmpackc.low %vm1088_vm6, %vm1084_vm5  ;;  %vm1080_vm12 = vcmp.eq.s32.totalorder %v3626_v39, %v3535_v20 }
  0x98   : > { %vm3072_vm10 = vmpackc.low %vm1152_vm8, %vm1148_vm7  ;;  %vm1068_vm7 = vcmp.eq.s32.totalorder %v3665_v46, %v3535_v20  ;;  %vm1072_vm8 = vcmp.eq.s32.totalorder %v3668_v47, %v3535_v20  ;;  %v3848_v47 = vadd.s32 168, %v3520_v14  ;;  %v3856_v46 = vadd.s32 16, %v3520_v14 }
  0x99   : > { %3073 = vmatpush.bf16.msk.msra.mxu3 %vm3072_vm10, %v5305_v24  ;;  %vm3058_vm14 = vmpackc.low %vm1080_vm12, %vm1076_vm11  ;;  %vm1132_vm10 = vcmp.eq.s32.totalorder %v3672_v48, %v3535_v20  ;;  %vm1136_vm11 = vcmp.eq.s32.totalorder %v3675_v49, %v3535_v20  ;;  %v3841_v49 = vadd.s32 160, %v3520_v14 }
  0x9a   : > { %vm3034_vm6 = vmpackc.low %vm1048_vm4, %vm1044_vm3  ;;  %vm1064_vm4 = vcmp.eq.s32.totalorder %v3717_v61, %v3535_v20  ;;  %v3830_v61 = vadd.s32 32, %v3520_v14  ;;  %5485 = vst [vmem:[#allocation37_spill] sm:$0xff] %v3848_v47  ;;  %v394_v35 = vld.sshfl [vmem:[#allocation1 + $0x8] sm:$0xff pattern:$0x75316420] }
  0x9b   : > { %370 = vrot.lane.b32.xlu0 %v366_v2, %s3379_s29  ;;  %v3565_v25 = vpop.permute.xlu0 %182  ;;  %v3594_v31 = vpop.permute.xlu1 %184  ;;  %3055 = vmatpush.bf16.msk.msra.mxu2 %vm3054_vm1, %v5305_v24  ;;  %vm984_vm1 = vcmp.eq.s32.totalorder %v3639_v43, %v3535_v20  ;;  %vm3076_vm12 = vmpackc.low %vm1136_vm11, %vm1132_vm10  ;;  %v3743_v2 = vadd.s32 208, %v3520_v14  ;;  %vm968_vm10 = vcmp.eq.s32.totalorder %v3740_v1, %v3535_v20  ;;  %5484 = vst [vmem:[#allocation36_spill] sm:$0xff] %v3841_v49 }
  0x9c   : > { %vm3018_vm5 = vmpackc.low %vm984_vm1, %vm980_vm0  ;;  %3035 = vmatpush.bf16.msk.msra.mxu1 %vm3034_vm6, %v5305_v24  ;;  %vm1036_vm0 = vcmp.eq.s32.totalorder %v3706_v55, %v3535_v20  ;;  %vm1040_vm1 = vcmp.eq.s32.totalorder %v3709_v57, %v3535_v20  ;;  %vm1124_vm6 = vcmp.eq.s32.totalorder %v3726_v62, %v3535_v20  ;;  %5482 = vst [vmem:[#allocation34_spill] sm:$0xff] %v3830_v61 }
  0x9d   : > { %3075 = vmatpush.bf16.msk.msra.mxu3 %vm3074_vm2, %v5305_v24  ;;  %3019 = vmatpush.bf16.msk.msra.mxu0 %vm3018_vm5, %v5305_v24  ;;  %vm1060_vm2 = vcmp.eq.s32.totalorder %v3712_v59, %v3535_v20  ;;  %vm3036_vm3 = vmpackc.low %vm1040_vm1, %vm1036_vm0  ;;  %vm1028_vm11 = vcmp.eq.s32.totalorder %v3743_v2, %v3535_v20  ;;  %vm1056_vm0 = vcmp.eq.s32.totalorder %v3761_v8, %v3535_v20  ;;  %v3817_v8 = vadd.s32 176, %v3520_v14 }
  0x9e   : > { %vm3062_vm5 = vmpackc.low %vm1064_vm4, %vm1060_vm2  ;;  %vm1116_vm2 = vcmp.eq.s32.totalorder %v3778_v11, %v3535_v20  ;;  %v3809_v11 = vadd.s32 56, %v3520_v14  ;;  %v3833_v59 = vadd.s32 40, %v3520_v14  ;;  %5486 = vst [vmem:[#allocation38_spill] sm:$0xff] %v3856_v46 }
  0x9f   : > { %3057 = vmatpush.bf16.msk.msra.mxu2 %vm3056_vm9, %v5305_v24  ;;  %vm3060_vm9 = vmpackc.low %vm1072_vm8, %vm1068_vm7  ;;  %vm1128_vm7 = vcmp.eq.s32.totalorder %v3731_v63, %v3535_v20  ;;  %vm964_vm8 = vcmp.eq.s32.totalorder %v3734_v0, %v3535_v20  ;;  %5480 = vst [vmem:[#allocation32_spill] sm:$0xff] %v3817_v8 }
  0xa0   : > { %3037 = vmatpush.bf16.msk.msra.mxu1 %vm3036_vm3, %v5305_v24  ;;  %vm1120_vm3 = vcmp.eq.s32.totalorder %v3781_v12, %v3535_v20  ;;  %5478 = vst [vmem:[#allocation31_spill] sm:$0xff] %v3809_v11  ;;  %v5479_v12 = vmov 1.0|1.0  }
  0xa1   : > { %3077 = vmatpush.bf16.msk.msra.mxu3 %vm3076_vm12, %v5305_v24  ;;  %vm3022_vm12 = vmpackc.low %vm968_vm10, %vm964_vm8  ;;  %vm1020_vm8 = vcmp.eq.s32.totalorder %v3796_v56, %v3535_v20  ;;  %5483 = vst [vmem:[#allocation35_spill] sm:$0xff] %v3833_v59 }
  0xa2   : > { %vm3080_vm4 = vmpackc.low %vm1120_vm3, %vm1116_vm2  ;;  %vm944_vm2 = vcmp.eq.s32.totalorder %v3833_v59, %v3535_v20  ;;  %vm1004_vm3 = vcmp.eq.s32.totalorder %v3841_v49, %v3535_v20  ;;  %v3863_v59 = vadd.s32 144, %v3520_v14 }
  0xa3   : > { %v3609_v36 = vpop.permute.xlu0 %214  ;;  %3059 = vmatpush.bf16.msk.msra.mxu2 %vm3058_vm14, %v5305_v24  ;;  %vm976_vm14 = vcmp.eq.s32.totalorder %v3691_v53, %v3535_v20 }
  0xa4   : > { %vm3020_vm15 = vmpackc.low %vm976_vm14, %vm972_vm13  ;;  %vm1032_vm13 = vcmp.eq.s32.totalorder %v3746_v3, %v3535_v20  ;;  %vm1052_vm14 = vcmp.eq.s32.totalorder %v3758_v7, %v3535_v20  ;;  %v3820_v7 = vadd.s32 184, %v3520_v14  ;;  %5488 = vst [vmem:[#allocation40_spill] sm:$0xff] %v3863_v59 }
  0xa5   : > { %v3620_v37 = vpop.permute.xlu2 %242  ;;  %3021 = vmatpush.bf16.msk.msra.mxu0 %vm3020_vm15, %v5305_v24  ;;  %vm3038_vm15 = vmpackc.low %vm1032_vm13, %vm1028_vm11 }
  0xa6   : > { %3039 = vmatpush.bf16.msk.msra.mxu1 %vm3038_vm15, %v5305_v24  ;;  %vm3064_vm1 = vmpackc.low %vm1056_vm0, %vm1052_vm14  ;;  %5481 = vst [vmem:[#allocation33_spill] sm:$0xff] %v3820_v7  ;;  %vm1012_vm14 = vcmp.eq.s32.totalorder %v3817_v8, %v3535_v20  ;;  %vm1016_vm15 = vcmp.eq.s32.totalorder %v3820_v7, %v3535_v20  ;;  %v3866_v7 = vadd.s32 152, %v3520_v14  ;;  %v3880_v8 = vadd.s32 8, %v3520_v14 }
  0xa7   : > { %3061 = vmatpush.bf16.msk.msra.mxu2 %vm3060_vm9, %v5305_v24  ;;  %vm3078_vm9 = vmpackc.low %vm1128_vm7, %vm1124_vm6  ;;  %vm960_vm6 = vcmp.eq.s32.totalorder %v3788_v58, %v3535_v20 }
  0xa8   : > { %3079 = vmatpush.bf16.msk.msra.mxu3 %vm3078_vm9, %v5305_v24  ;;  %vm1024_vm9 = vcmp.eq.s32.totalorder %v3799_v60, %v3535_v20  ;;  %vm3042_vm0 = vmpackc.low %vm1016_vm15, %vm1012_vm14  ;;  %5489 = vst [vmem:[#allocation41_spill] sm:$0xff] %v3866_v7  ;;  %vm282_vm14 = vcmask 523264  }
  0xa9   : > { %3023 = vmatpush.bf16.msk.msra.mxu0 %vm3022_vm12, %v5305_v24  ;;  %vm3040_vm10 = vmpackc.low %vm1024_vm9, %vm1020_vm8  ;;  %vm952_vm12 = vcmp.eq.s32.totalorder %v3809_v11, %v3535_v20  ;;  %vm932_vm8 = vcmp.eq.s32.totalorder %v3856_v46, %v3535_v20  ;;  %vm250_vm9 = vcmask 973824   ;;  %5490 = vst [vmem:[#allocation42_spill] sm:$0xff] %v3880_v8 }
  0xaa   : > { %3041 = vmatpush.bf16.msk.msra.mxu1 %vm3040_vm10, %v5479_v12 }
  0xab   : > { %v3677_v50 = vpop.permute.xlu0 %216  ;;  %v3679_v51 = vpop.permute.xlu1 %246  ;;  %3063 = vmatpush.bf16.msk.msra.mxu2 %vm3062_vm5, %v5305_v24  ;;  %vm956_vm5 = vcmp.eq.s32.totalorder %v3785_v15, %v3535_v20 }
  0xac   : > { %3081 = vmatpush.bf16.msk.msra.mxu3 %vm3080_vm4, %v5479_v12  ;;  %vm3024_vm7 = vmpackc.low %vm960_vm6, %vm956_vm5  ;;  %vm1008_vm4 = vcmp.eq.s32.totalorder %v3848_v47, %v3535_v20  ;;  %vm186_vm6 = vcmask 1039360  }
  0xad   : > { %v3698_v54 = vpop.permute.xlu2 %180  ;;  %3025 = vmatpush.bf16.msk.msra.mxu0 %vm3024_vm7, %v5479_v12  ;;  %vm3044_vm7 = vmpackc.low %vm1008_vm4, %vm1004_vm3  ;;  %v189_v46 = vsel %vm186_vm6, %v3565_v25, %v3594_v31  ;;  %v197_v11 = vsel %vm186_vm6, %v3594_v31, %v3514_v9  ;;  %v253_v9 = vsel %vm250_vm9, %v3679_v51, %v3567_v26  ;;  %vm464_vm3 = vcmask 1042432  }
  0xae   : > { %3043 = vmatpush.bf16.msk.msra.mxu1 %vm3042_vm0, %v5479_v12  ;;  %v404_v40 = vrot.slane %v189_v46, 5  ;;  %v405_v39 = vrot.slane %v197_v11, 5 }
  0xaf   : > { %3065 = vmatpush.bf16.msk.msra.mxu2 %vm3064_vm1, %v5305_v24  ;;  %v3806_v24 = vadd.s32 48, %v3520_v14  ;;  %vm940_vm1 = vcmp.eq.s32.totalorder %v3830_v61, %v3535_v20  ;;  %v3860_v61 = vadd.s32 24, %v3520_v14 }
  0xb0   : > { %vm3028_vm5 = vmpackc.low %vm944_vm2, %vm940_vm1  ;;  %vm924_vm1 = vcmp.eq.s32.totalorder %v3520_v14, %v3535_v20  ;;  %vm928_vm2 = vcmp.eq.s32.totalorder %v3880_v8, %v3535_v20  ;;  %v467_v8 = vsel %vm464_vm3, %v395_v41, %v404_v40 }
  0xb1   : > { %5477 = vst [vmem:[#allocation30_spill] sm:$0xff] %v3806_v24  ;;  %vm948_vm11 = vcmp.eq.s32.totalorder %v3806_v24, %v3535_v20  ;;  %vm936_vm10 = vcmp.eq.s32.totalorder %v3860_v61, %v3535_v20  ;;  %v3911_v24 = vadd.s32 136, %v3520_v14  ;;  %vm3928_vm4 = vmpackc.low %vm928_vm2, %vm924_vm1 }
  0xb2   : > { %vm3026_vm13 = vmpackc.low %vm952_vm12, %vm948_vm11  ;;  %5487 = vst [vmem:[#allocation39_spill] sm:$0xff] %v3860_v61  ;;  %vm996_vm11 = vcmp.eq.s32.totalorder %v3863_v59, %v3535_v20  ;;  %vm1000_vm12 = vcmp.eq.s32.totalorder %v3866_v7, %v3535_v20  ;;  %3045 = vmatpush.bf16.msk.msra.mxu1 %vm3044_vm7, %v5479_v12 }
  0xb3   : > { %v3748_v4 = vpop.permute.xlu1 %212  ;;  %v3750_v6 = vpop.permute.xlu0 %210  ;;  %3027 = vmatpush.bf16.msk.msra.mxu0 %vm3026_vm13, %v5479_v12  ;;  %vm218_vm13 = vcmask 982016   ;;  %vm3030_vm15 = vmpackc.low %vm936_vm10, %vm932_vm8  ;;  %5494 = vst [vmem:[#allocation44_spill] sm:$0xff] %v3911_v24  ;;  %vm992_vm7 = vcmp.eq.s32.totalorder %v3911_v24, %v3535_v20  ;;  %vm314_vm8 = vcmask 515072  }
  0xb4   : > { %vm3893_vm0 = vmpackc.low %vm1000_vm12, %vm996_vm11  ;;  %v221_v38 = vsel %vm218_vm13, %v3609_v36, %v3677_v50  ;;  %vm5387_vm11 = vcmask 1040384   ;;  %vm469_vm12 = vcmask 1045504  }
  0xb5   : > { %v3767_v10 = vpop.permute.xlu2 %258  ;;  %v413_v11 = vrot.slane %v221_v38, 2 }
  0xb6   : > { %v261_v31 = vsel %vm250_vm9, %v3567_v26, %v3767_v10  ;;  %v396_v26 = vld.sshfl [vmem:[#allocation1 + $0x18] sm:$0xff pattern:$0x75316420]  ;;  %3047 = vmatpush.bf16.msk.msra.mxu1 %vm3893_vm0, %v5479_v12  ;;  %vm484_vm0 = vcmask 1046528  }
  0xb7   : > { %3029 = vmatpush.bf16.msk.msra.mxu0 %vm3028_vm5, %v5479_v12  ;;  %v468_v56 = vsel %vm464_vm3, %v396_v26, %v405_v39 }
  0xbb   : > { %v3822_v63 = vpop.permute.xlu0 %278  ;;  %v227_v62 = vpop.permute.xlu1 %226  ;;  %3031 = vmatpush.bf16.msk.msra.mxu0 %vm3030_vm15, %v5479_v12  ;;  %vm5446_vm15 = vcmask 1043456  }
  0xbc   : > { %v229_v59 = vsel %vm218_vm13, %v3677_v50, %v227_v62  ;;  %v3908_v62 = vadd.s32 128, %v3520_v14  ;;  %v422_v50 = vrot.slane %v253_v9, 7 }
  0xbd   : > { %v291_v48 = vpop.permute.xlu2 %290  ;;  %v414_v10 = vrot.slane %v229_v59, 2  ;;  %v423_v59 = vrot.slane %v261_v31, 7 }
  0xbe   : > { %5493 = vst [vmem:[#allocation43_spill] sm:$0xff] %v3908_v62  ;;  %vm988_vm5 = vcmp.eq.s32.totalorder %v3908_v62, %v3535_v20  ;;  %v477_v38 = vsel %vm5387_vm11, %v413_v11, %v422_v50 }
  0xbf   : > { %vm3048_vm10 = vmpackc.low %vm992_vm7, %vm988_vm5  ;;  %3033 = vmatpush.bf16.msk.msra.mxu0 %vm3928_vm4, %v5479_v12  ;;  %v3943_v20 = vsel %vm469_vm12, %v468_v56, %v414_v10  ;;  %v478_v39 = vsel %vm5387_vm11, %v414_v10, %v423_v59 }
  0xc0   : > { %3049 = vmatpush.bf16.msk.msra.mxu1 %vm3048_vm10, %v5479_v12 }
  0xc3   : > { %v3870_v47 = vpop.permute.xlu0 %310  ;;  %v281_v49 = vpop.permute.xlu1 %280 }
  0xc4   : > { %v285_v60 = vsel %vm282_vm14, %v3822_v63, %v281_v49  ;;  %v293_v61 = vsel %vm282_vm14, %v281_v49, %v291_v48  ;;  %v3954_v49 = vsel %vm469_vm12, %v467_v8, %v413_v11 }
  0xc5   : > { %v3891_v7 = vpop.permute.xlu2 %306  ;;  %v431_v14 = vrot.slane %v285_v60, 4  ;;  %v432_v48 = vrot.slane %v293_v61, 4  ;;  %v3962_v31 = vpack.c.bf16 %v3943_v20, %v3954_v49 }
  0xc7   : > { %v482_v56 = vsel %vm5446_vm15, %v477_v38, %v431_v14  ;;  %v483_v46 = vsel %vm5446_vm15, %v478_v39, %v432_v48  ;;  %v573_v61 = vunpack.c.l.b16 %v3962_v31  ;;  %v574_v39 = vunpack.c.h.b16 %v3962_v31 }
  0xcb   : > { %v313_v58 = vpop.permute.xlu1 %312  ;;  %v245_v62 = vpop.permute.xlu0 %244 }
  0xcc   : > { %v3947_v60 = vsel %vm314_vm8, %v3870_v47, %v313_v58  ;;  %v251_v48 = vsel %vm250_vm9, %v3620_v37, %v245_v62  ;;  %v219_v37 = vsel %vm218_vm13, %v3750_v6, %v3748_v4 }
  0xcd   : > { %5497 = vst [vmem:[#allocation45_spill] sm:$0xff] %v3947_v60  ;;  %v5376_v40 = vrot.slane %v3947_v60, 1  ;;  %v323_v41 = vpop.permute.xlu2 %322 }
  0xce   : > { %v3958_v9 = vsel %vm314_vm8, %v313_v58, %v323_v41  ;;  %v188_v58 = vsel %vm186_vm6, %v3698_v54, %v3565_v25 }
  0xcf   : > { %5498 = vst [vmem:[#allocation46_spill] sm:$0xff] %v3958_v9  ;;  %v487_v26 = vsel %vm484_vm0, %v482_v56, %v5376_v40  ;;  %v5375_v10 = vrot.slane %v3958_v9, 1  ;;  %v403_v9 = vrot.slane %v188_v58, 5 }
  0xd1   : > { %v488_v8 = vsel %vm484_vm0, %v483_v46, %v5375_v10  ;;  %v252_v10 = vsel %vm250_vm9, %v245_v62, %v3679_v51  ;;  %v393_v51 = vld.sshfl [vmem:[#allocation1] sm:$0xff pattern:$0x75316420]  ;;  %v420_v62 = vrot.slane %v251_v48, 7 }
  0xd2   : > { %v502_v14 = vpack.c.bf16 %v488_v8, %v487_v26 }
  0xd3   : > { %v179_v50 = vpop.permute.xlu1 %178  ;;  %v275_v59 = vpop.permute.xlu0 %274 }
  0xd4   : > { %v511_v11 = vunpack.c.l.bf16 %v502_v14  ;;  %v512_v38 = vunpack.c.h.bf16 %v502_v14  ;;  %v187_v41 = vsel %vm186_vm6, %v179_v50, %v3698_v54  ;;  %v577_v56 = vunpack.c.l.b16 %v502_v14 }
  0xd5   : > { %v578_v46 = vunpack.c.h.b16 %v502_v14  ;;  %v402_v60 = vrot.slane %v187_v41, 5  ;;  %v220_v54 = vsel %vm218_vm13, %v3748_v4, %v3609_v36  ;;  %v466_v50 = vsel %vm464_vm3, %v394_v35, %v403_v9 }
  0xd6   : > { %v523_v25 = vsub.f32 %v487_v26, %v511_v11  ;;  %v524_v40 = vsub.f32 %v488_v8, %v512_v38  ;;  %v3983_v24 = vpack.c.b16 %v577_v56, %v573_v61  ;;  %v421_v26 = vrot.slane %v252_v10, 7 }
  0xd7   : > { %v3985_v15 = vpack.c.b16 %v578_v46, %v574_v39  ;;  %v412_v36 = vrot.slane %v220_v54, 2  ;;  %v411_v61 = vrot.slane %v219_v37, 2  ;;  %v465_v11 = vsel %vm464_vm3, %v393_v51, %v402_v60 }
  0xd8   : > { %5499 = vst [vmem:[#allocation47_spill] sm:$0xff] %v3983_v24  ;;  %v3993_v14 = vpack.c.bf16 %v524_v40, %v523_v25  ;;  %1894 = vmatmul.bf16.vlgmr.msra.gmra.mxu2 %v3983_v24 }
  0xd9   : > { %5500 = vst [vmem:[#allocation48_spill] sm:$0xff] %v3985_v15  ;;  %1927 = vmatmul.bf16.vlgmr.msra.gmra.mxu3 %v3985_v15  ;;  %v475_v56 = vsel %vm5387_vm11, %v411_v61, %v420_v62  ;;  %v476_v48 = vsel %vm5387_vm11, %v412_v36, %v421_v26  ;;  %v4007_v35 = vsel %vm469_vm12, %v465_v11, %v411_v61 }
  0xda   : > { %v542_v8 = vunpack.c.h.bf16 %v3993_v14  ;;  %v541_v58 = vunpack.c.l.bf16 %v3993_v14  ;;  %v4023_v54 = vsel %vm469_vm12, %v466_v50, %v412_v36 }
  0xdb   : > { %v277_v4 = vpop.permute.xlu1 %276 }
  0xdc   : > { %v554_v6 = vsub.f32 %v524_v40, %v542_v8  ;;  %v283_v38 = vsel %vm282_vm14, %v275_v59, %v277_v4  ;;  %v284_v41 = vsel %vm282_vm14, %v277_v4, %v3822_v63  ;;  %v553_v10 = vsub.f32 %v523_v25, %v541_v58  ;;  %v345_v4 = vpop.permute.xlu2 %344 }
  0xdd   : > { %v429_v39 = vrot.slane %v283_v38, 4  ;;  %v430_v46 = vrot.slane %v284_v41, 4  ;;  %v309_v15 = vpop.permute.xlu0 %308  ;;  %v507_v38 = vunpack.c.l.bf16 %v3962_v31  ;;  %v508_v41 = vunpack.c.h.bf16 %v3962_v31 }
  0xde   : > { %v4011_v60 = vsel %vm314_vm8, %v3891_v7, %v309_v15  ;;  %v4015_v40 = vsel %vm314_vm8, %v309_v15, %v3870_v47  ;;  %v4017_v63 = vpack.c.bf16 %v554_v6, %v553_v10  ;;  %v4028_v7 = vpack.c.bf16 %v4023_v54, %v4007_v35 }
  0xdf   : > { %v480_v9 = vsel %vm5446_vm15, %v475_v56, %v429_v39  ;;  %v481_v59 = vsel %vm5446_vm15, %v476_v48, %v430_v46  ;;  %v5388_v25 = vrot.slane %v4011_v60, 1  ;;  %v5389_v37 = vrot.slane %v4015_v40, 1 }
  0xe0   : > { %v917_v15 = vperm.slane %v3518_v13, 4  ;;  %v571_v8 = vunpack.c.l.b16 %v4028_v7  ;;  %v572_v50 = vunpack.c.h.b16 %v4028_v7  ;;  %v4084_v10 = vsub.f32 %v3954_v49, %v507_v38 }
  0xe1   : > { %v4033_v47 = vsel %vm484_vm0, %v480_v9, %v5388_v25  ;;  %v4039_v51 = vsel %vm484_vm0, %v481_v59, %v5389_v37  ;;  %v4105_v49 = vsub.f32 %v3943_v20, %v508_v41  ;;  %v505_v59 = vunpack.c.l.bf16 %v4028_v7 }
  0xe2   : > { %v4043_v62 = vpack.c.bf16 %v4039_v51, %v4033_v47  ;;  %v4045_v26 = vperm.slane %v917_v15, 0  ;;  %v506_v15 = vunpack.c.h.bf16 %v4028_v7  ;;  %v5504_v7 = vld [vmem:[#allocation26_spill] sm:$0xff] }
  0xe3   : > { %v4055_v13 = vpop.permute.xlu1 %342  ;;  %v4132_v46 = vpack.c.bf16 %v4105_v49, %v4084_v10  ;;  %v4188_v25 = vsub.f32 %v4007_v35, %v505_v59 }
  0xe4   : > { %v575_v58 = vunpack.c.l.b16 %v4043_v62  ;;  %v576_v36 = vunpack.c.h.b16 %v4043_v62  ;;  %vm1109_vm6 = vcmp.eq.s32.totalorder %v3524_v16, %v4045_v26  ;;  %vm1113_vm9 = vcmp.eq.s32.totalorder %v3527_v17, %v4045_v26  ;;  %v377_v56 = vpop.permute.xlu2 %376 }
  0xe5   : > { %vm3114_vm13 = vmpackc.low %vm1113_vm9, %vm1109_vm6  ;;  %vm1173_vm14 = vcmp.eq.s32.totalorder %v3530_v18, %v4045_v26  ;;  %vm1177_vm1 = vcmp.eq.s32.totalorder %v3533_v19, %v4045_v26  ;;  %vm981_vm2 = vcmp.eq.s32.totalorder %v3636_v42, %v4045_v26  ;;  %vm985_vm4 = vcmp.eq.s32.totalorder %v3639_v43, %v4045_v26 }
  0xe6   : > { %v4057_v61 = vpack.c.b16 %v575_v58, %v571_v8  ;;  %v4059_v11 = vpack.c.b16 %v576_v36, %v572_v50  ;;  %3115 = vmatpush.bf16.msk.msrb.mxu2 %vm3114_vm13, %v5479_v12  ;;  %vm3130_vm3 = vmpackc.low %vm1177_vm1, %vm1173_vm14  ;;  %vm1045_vm5 = vcmp.eq.s32.totalorder %v3642_v44, %v4045_v26  ;;  %vm1049_vm7 = vcmp.eq.s32.totalorder %v3652_v45, %v4045_v26  ;;  %v5503_v8 = vld [vmem:[#allocation8_spill] sm:$0xff]  ;;  %v5505_v36 = vld [vmem:[#allocation27_spill] sm:$0xff] }
  0xe7   : > { %3131 = vmatpush.bf16.msk.msrb.mxu3 %vm3130_vm3, %v5479_v12  ;;  %vm3082_vm8 = vmpackc.low %vm985_vm4, %vm981_vm2  ;;  %vm1101_vm12 = vcmp.eq.s32.totalorder %v3538_v5, %v4045_v26  ;;  %vm1105_vm0 = vcmp.eq.s32.totalorder %v3541_v21, %v4045_v26  ;;  %vm1165_vm6 = vcmp.eq.s32.totalorder %v3544_v22, %v4045_v26  ;;  %vm1169_vm9 = vcmp.eq.s32.totalorder %v3559_v23, %v4045_v26 }
  0xe8   : > { %5501 = vst [vmem:[#allocation49_spill] sm:$0xff] %v4057_v61  ;;  %1828 = vmatmul.bf16.vlgmr.msra.gmra.mxu0 %v4057_v61  ;;  %1861 = vmatmul.bf16.vlgmr.msra.gmra.mxu1 %v4059_v11  ;;  %vm3098_vm10 = vmpackc.low %vm1049_vm7, %vm1045_vm5  ;;  %vm973_vm14 = vcmp.eq.s32.totalorder %v3688_v52, %v4045_v26  ;;  %vm977_vm1 = vcmp.eq.s32.totalorder %v3691_v53, %v4045_v26  ;;  %vm346_vm4 = vcmask 457728  }
  0xe9   : > { %5502 = vst [vmem:[#allocation50_spill] sm:$0xff] %v4059_v11  ;;  %3083 = vmatpush.bf16.msk.msrb.mxu0 %vm3082_vm8, %v5479_v12  ;;  %3099 = vmatpush.bf16.msk.msrb.mxu1 %vm3098_vm10, %v5479_v12  ;;  %vm3116_vm13 = vmpackc.low %vm1105_vm0, %vm1101_vm12  ;;  %vm1037_vm2 = vcmp.eq.s32.totalorder %v3706_v55, %v4045_v26  ;;  %vm1041_vm3 = vcmp.eq.s32.totalorder %v3709_v57, %v4045_v26  ;;  %vm378_vm10 = vcmask 449536   ;;  %v603_v11 = vunpack.c.l.b16 %v4132_v46 }
  0xea   : > { %3117 = vmatpush.bf16.msk.msrb.mxu2 %vm3116_vm13, %v5479_v12  ;;  %vm3132_vm5 = vmpackc.low %vm1169_vm9, %vm1165_vm6  ;;  %vm1093_vm7 = vcmp.eq.s32.totalorder %v3573_v27, %v4045_v26  ;;  %vm1097_vm8 = vcmp.eq.s32.totalorder %v3576_v28, %v4045_v26  ;;  %vm1157_vm0 = vcmp.eq.s32.totalorder %v3580_v29, %v4045_v26  ;;  %vm1161_vm11 = vcmp.eq.s32.totalorder %v3583_v30, %v4045_v26 }
  0xeb   : > { %v4064_v6 = vpop.permute.xlu1 %374  ;;  %3133 = vmatpush.bf16.msk.msrb.mxu3 %vm3132_vm5, %v5479_v12  ;;  %vm3084_vm12 = vmpackc.low %vm977_vm1, %vm973_vm14  ;;  %vm965_vm6 = vcmp.eq.s32.totalorder %v3734_v0, %v4045_v26  ;;  %vm969_vm9 = vcmp.eq.s32.totalorder %v3740_v1, %v4045_v26  ;;  %v349_v20 = vsel %vm346_vm4, %v4055_v13, %v345_v4  ;;  %vm1029_vm1 = vcmp.eq.s32.totalorder %v3743_v2, %v4045_v26 }
  0xec   : > { %vm3100_vm13 = vmpackc.low %vm1041_vm3, %vm1037_vm2  ;;  %vm1033_vm2 = vcmp.eq.s32.totalorder %v3746_v3, %v4045_v26  ;;  %v381_v9 = vsel %vm378_vm10, %v4064_v6, %v377_v56  ;;  %vm1085_vm5 = vcmp.eq.s32.totalorder %v3597_v32, %v4045_v26  ;;  %v449_v58 = vrot.slane %v349_v20, 6  ;;  %v5507_v20 = vld [vmem:[#allocation29_spill] sm:$0xff] }
  0xed   : > { %3085 = vmatpush.bf16.msk.msrb.mxu0 %vm3084_vm12, %v5479_v12  ;;  %3101 = vmatpush.bf16.msk.msrb.mxu1 %vm3100_vm13, %v5479_v12  ;;  %vm3118_vm14 = vmpackc.low %vm1097_vm8, %vm1093_vm7  ;;  %vm1089_vm7 = vcmp.eq.s32.totalorder %v3600_v33, %v4045_v26  ;;  %vm1153_vm12 = vcmp.eq.s32.totalorder %v5503_v8, %v4045_v26  ;;  %vm957_vm13 = vcmp.eq.s32.totalorder %v5504_v7, %v4045_v26  ;;  %v458_v38 = vrot.slane %v381_v9, 3 }
  0xee   : > { %3119 = vmatpush.bf16.msk.msrb.mxu2 %vm3118_vm14, %v5479_v12  ;;  %vm3134_vm3 = vmpackc.low %vm1161_vm11, %vm1157_vm0  ;;  %vm1149_vm11 = vcmp.eq.s32.totalorder %v3603_v34, %v4045_v26  ;;  %v5516_v7 = vrot.slane %v4015_v40, 1  ;;  %v5517_v32 = vrot.slane %v4011_v60, 1 }
  0xef   : > { %3135 = vmatpush.bf16.msk.msrb.mxu3 %vm3134_vm3, %v5479_v12  ;;  %vm3086_vm8 = vmpackc.low %vm969_vm9, %vm965_vm6  ;;  %vm961_vm6 = vcmp.eq.s32.totalorder %v5505_v36, %v4045_v26  ;;  %vm5447_vm9 = vcmask 1041408   ;;  %vm494_vm3 = vcmask 1044480  }
  0xf0   : > { %vm3102_vm0 = vmpackc.low %vm1033_vm2, %vm1029_vm1  ;;  %vm1025_vm2 = vcmp.eq.s32.totalorder %v5507_v20, %v4045_v26 }
  0xf1   : > { %3087 = vmatpush.bf16.msk.msrb.mxu0 %vm3086_vm8, %v5479_v12  ;;  %3103 = vmatpush.bf16.msk.msrb.mxu1 %vm3102_vm0, %v5479_v12  ;;  %vm3120_vm14 = vmpackc.low %vm1089_vm7, %vm1085_vm5 }
  0xf2   : > { %3121 = vmatpush.bf16.msk.msrb.mxu2 %vm3120_vm14, %v5479_v12  ;;  %vm3136_vm8 = vmpackc.low %vm1153_vm12, %vm1149_vm11 }
  0xf3   : > { %v4086_v48 = vpop.permute.xlu1 %338  ;;  %3137 = vmatpush.bf16.msk.msrb.mxu3 %vm3136_vm8, %v5479_v12  ;;  %vm3088_vm5 = vmpackc.low %vm961_vm6, %vm957_vm13 }
  0xf5   : > { %v355_v39 = vpop.permute.xlu0 %354  ;;  %3089 = vmatpush.bf16.msk.msrb.mxu0 %vm3088_vm5, %v5479_v12 }
  0xf6   : > { %v357_v31 = vsel %vm346_vm4, %v345_v4, %v355_v39  ;;  %v341_v4 = vpop.permute.xlu2 %340  ;;  %v5506_v39 = vld [vmem:[#allocation28_spill] sm:$0xff] }
  0xf7   : > { %v450_v50 = vrot.slane %v357_v31, 6  ;;  %vm1021_vm1 = vcmp.eq.s32.totalorder %v5506_v39, %v4045_v26  ;;  %v348_v59 = vsel %vm346_vm4, %v341_v4, %v4055_v13 }
  0xf8   : > { %vm3104_vm7 = vmpackc.low %vm1025_vm2, %vm1021_vm1 }
  0xf9   : > { %3105 = vmatpush.bf16.msk.msrb.mxu1 %vm3104_vm7, %v5479_v12 }
  0xfd   : > { %v373_v31 = vpop.permute.xlu1 %372 }
  0xfe   : > { %v380_v13 = vsel %vm378_vm10, %v373_v31, %v4064_v6  ;;  %v448_v6 = vrot.slane %v348_v59, 6 }
 0x100   : > { %v491_v33 = vsel %vm5447_vm9, %v5516_v7, %v448_v6 }
 0x105   : > { %v387_v41 = vpop.permute.xlu0 %386 }
 0x106   : > { %v389_v9 = vsel %vm378_vm10, %v377_v56, %v387_v41  ;;  %v4199_v56 = vsub.f32 %v4023_v54, %v506_v15  ;;  %v5508_v41 = vld [vmem:[#allocation45_spill] sm:$0xff] }
 0x107   : > { %v459_v37 = vrot.slane %v389_v9, 3  ;;  %v5509_v61 = vrot.slane %v5508_v41, 1  ;;  %v5510_v9 = vld [vmem:[#allocation46_spill] sm:$0xff]  ;;  %v5514_v41 = vld [vmem:[#allocation11_spill] sm:$0xff] }
 0x108   : > { %v5511_v8 = vrot.slane %v5510_v9, 1  ;;  %vm1141_vm0 = vcmp.eq.s32.totalorder %v5514_v41, %v4045_v26  ;;  %v457_v9 = vrot.slane %v380_v13, 3  ;;  %v615_v41 = vpack.c.b16 %v603_v11, %v603_v11 }
 0x109   : > { %v492_v35 = vsel %vm5447_vm9, %v5509_v61, %v449_v58  ;;  %v347_v61 = vsel %vm346_vm4, %v4086_v48, %v341_v4  ;;  %v5512_v58 = vld [vmem:[#allocation9_spill] sm:$0xff]  ;;  %v5515_v48 = vld [vmem:[#allocation12_spill] sm:$0xff] }
 0x10a   : > { %v493_v34 = vsel %vm5447_vm9, %v5511_v8, %v450_v50  ;;  %v497_v54 = vsel %vm494_vm3, %v492_v35, %v458_v38  ;;  %vm1077_vm11 = vcmp.eq.s32.totalorder %v5512_v58, %v4045_v26  ;;  %v5513_v50 = vld [vmem:[#allocation10_spill] sm:$0xff]  ;;  %v604_v38 = vunpack.c.h.b16 %v4132_v46 }
 0x10b   : > { %v498_v15 = vsel %vm494_vm3, %v493_v34, %v459_v37  ;;  %vm1081_vm12 = vcmp.eq.s32.totalorder %v5513_v50, %v4045_v26  ;;  %vm1145_vm13 = vcmp.eq.s32.totalorder %v5515_v48, %v4045_v26  ;;  %v447_v34 = vrot.slane %v347_v61, 6 }
 0x10c   : > { %v504_v8 = vpack.c.bf16 %v498_v15, %v497_v54  ;;  %vm3122_vm4 = vmpackc.low %vm1081_vm12, %vm1077_vm11  ;;  %v4235_v35 = vpack.c.bf16 %v4199_v56, %v4188_v25  ;;  %v616_v36 = vpack.c.b16 %v604_v38, %v604_v38  ;;  %v496_v3 = vsel %vm494_vm3, %v491_v33, %v457_v9  ;;  %v5518_v33 = vld [vmem:[#allocation30_spill] sm:$0xff]  ;;  %v5522_v38 = vld [vmem:[#allocation13_spill] sm:$0xff] }
 0x10d   : > { %3123 = vmatpush.bf16.msk.msrb.mxu2 %vm3122_vm4, %v5479_v12  ;;  %vm3138_vm6 = vmpackc.low %vm1145_vm13, %vm1141_vm0  ;;  %v371_v50 = vpop.permute.xlu0 %370  ;;  %v490_v13 = vsel %vm5447_vm9, %v5517_v32, %v447_v34  ;;  %vm1069_vm5 = vcmp.eq.s32.totalorder %v5522_v38, %v4045_v26 }
 0x10e   : > { %v581_v37 = vunpack.c.l.b16 %v504_v8  ;;  %v582_v4 = vunpack.c.h.b16 %v504_v8  ;;  %3139 = vmatpush.bf16.msk.msrb.mxu3 %vm3138_vm6, %v5479_v12  ;;  %v515_v58 = vunpack.c.l.bf16 %v504_v8  ;;  %v516_v20 = vunpack.c.h.bf16 %v504_v8 }
 0x10f   : > { %v379_v48 = vsel %vm378_vm10, %v371_v50, %v373_v31  ;;  %v601_v40 = vunpack.c.l.b16 %v4235_v35  ;;  %v602_v32 = vunpack.c.h.b16 %v4235_v35  ;;  %vm949_vm10 = vcmp.eq.s32.totalorder %v5518_v33, %v4045_v26 }
 0x110   : > { %v589_v59 = vpack.c.b16 %v581_v37, %v581_v37  ;;  %v456_v61 = vrot.slane %v379_v48, 3  ;;  %v590_v39 = vpack.c.b16 %v582_v4, %v582_v4  ;;  %v4255_v50 = vsub.f32 %v497_v54, %v515_v58  ;;  %v5523_v37 = vld [vmem:[#allocation14_spill] sm:$0xff] }
 0x111   : > { %v4257_v7 = vsub.f32 %v498_v15, %v516_v20  ;;  %v613_v34 = vpack.c.b16 %v601_v40, %v601_v40  ;;  %vm1073_vm7 = vcmp.eq.s32.totalorder %v5523_v37, %v4045_v26  ;;  %v614_v9 = vpack.c.b16 %v602_v32, %v602_v32 }
 0x112   : > { %v4246_v11 = vsel %vm5446_vm15, %v589_v59, %v615_v41  ;;  %v495_v8 = vsel %vm494_vm3, %v490_v13, %v456_v61  ;;  %v4252_v31 = vsel %vm5446_vm15, %v590_v39, %v616_v36  ;;  %v5519_v41 = vld [vmem:[#allocation31_spill] sm:$0xff]  ;;  %v5520_v36 = vld [vmem:[#allocation32_spill] sm:$0xff]  ;;  %v5521_v39 = vld [vmem:[#allocation33_spill] sm:$0xff]  ;;  %v509_v59 = vunpack.c.l.bf16 %v4043_v62 }
 0x113   : > { %1899 = vmatmul.bf16.gmra.mxu2 %v4246_v11  ;;  %v503_v60 = vpack.c.bf16 %v496_v3, %v495_v8  ;;  %1932 = vmatmul.bf16.gmra.mxu3 %v4252_v31  ;;  %vm953_vm14 = vcmp.eq.s32.totalorder %v5519_v41, %v4045_v26  ;;  %vm1013_vm1 = vcmp.eq.s32.totalorder %v5520_v36, %v4045_v26  ;;  %vm3124_vm11 = vmpackc.low %vm1073_vm7, %vm1069_vm5  ;;  %v510_v13 = vunpack.c.h.bf16 %v4043_v62  ;;  %v5527_v62 = vld [vmem:[#allocation34_spill] sm:$0xff] }
 0x114   : > { %vm1017_vm2 = vcmp.eq.s32.totalorder %v5521_v39, %v4045_v26  ;;  %vm3090_vm3 = vmpackc.low %vm953_vm14, %vm949_vm10  ;;  %v4274_v48 = vpack.c.bf16 %v4257_v7, %v4255_v50  ;;  %3125 = vmatpush.bf16.msk.msrb.mxu2 %vm3124_vm11, %v5479_v12  ;;  %vm941_vm4 = vcmp.eq.s32.totalorder %v5527_v62, %v4045_v26  ;;  %v607_v62 = vunpack.c.l.b16 %v3993_v14 }
 0x115   : > { %v579_v54 = vunpack.c.l.b16 %v503_v60  ;;  %v513_v20 = vunpack.c.l.bf16 %v503_v60  ;;  %v514_v15 = vunpack.c.h.bf16 %v503_v60  ;;  %v580_v58 = vunpack.c.h.b16 %v503_v60  ;;  %3091 = vmatpush.bf16.msk.msrb.mxu0 %vm3090_vm3, %v5479_v12  ;;  %vm3106_vm8 = vmpackc.low %vm1017_vm2, %vm1013_vm1 }
 0x116   : > { %3107 = vmatpush.bf16.msk.msrb.mxu1 %vm3106_vm8, %v5479_v12  ;;  %v611_v32 = vunpack.c.l.b16 %v4274_v48 }
 0x117   : > { %v587_v6 = vpack.c.b16 %v579_v54, %v579_v54  ;;  %v588_v4 = vpack.c.b16 %v580_v58, %v580_v58  ;;  %v4285_v60 = vsub.f32 %v495_v8, %v513_v20  ;;  %v4287_v40 = vsub.f32 %v496_v3, %v514_v15  ;;  %v5525_v58 = vld [vmem:[#allocation15_spill] sm:$0xff]  ;;  %v5529_v8 = vld [vmem:[#allocation36_spill] sm:$0xff]  ;;  %v5530_v15 = vld [vmem:[#allocation37_spill] sm:$0xff] }
 0x118   : > { %vm1133_vm12 = vcmp.eq.s32.totalorder %v5525_v58, %v4045_v26  ;;  %v5528_v3 = vld [vmem:[#allocation35_spill] sm:$0xff]  ;;  %vm1005_vm6 = vcmp.eq.s32.totalorder %v5529_v8, %v4045_v26  ;;  %v612_v20 = vunpack.c.h.b16 %v4274_v48  ;;  %vm1009_vm14 = vcmp.eq.s32.totalorder %v5530_v15, %v4045_v26 }
 0x119   : > { %v4281_v61 = vsel %vm5446_vm15, %v587_v6, %v613_v34  ;;  %v4291_v54 = vsel %vm5446_vm15, %v588_v4, %v614_v9  ;;  %v5526_v6 = vld [vmem:[#allocation16_spill] sm:$0xff]  ;;  %vm945_vm13 = vcmp.eq.s32.totalorder %v5528_v3, %v4045_v26  ;;  %v521_v34 = vsub.f32 %v4033_v47, %v509_v59  ;;  %vm3108_vm2 = vmpackc.low %vm1009_vm14, %vm1005_vm6 }
 0x11a   : > { %1833 = vmatmul.bf16.gmra.mxu0 %v4281_v61  ;;  %5524 = vst [vmem:[#allocation45_spill] sm:$0xff] %v4291_v54  ;;  %1866 = vmatmul.bf16.gmra.mxu1 %v4291_v54  ;;  %vm1137_vm0 = vcmp.eq.s32.totalorder %v5526_v6, %v4045_v26  ;;  %v522_v4 = vsub.f32 %v4039_v51, %v510_v13  ;;  %vm3092_vm1 = vmpackc.low %vm945_vm13, %vm941_vm4  ;;  %v608_v8 = vunpack.c.h.b16 %v3993_v14  ;;  %v538_v47 = vunpack.c.h.bf16 %v4132_v46  ;;  %v5533_v14 = vld [vmem:[#allocation17_spill] sm:$0xff] }
 0x11b   : > { %vm3140_vm10 = vmpackc.low %vm1137_vm0, %vm1133_vm12  ;;  %v4312_v9 = vpack.c.bf16 %v4287_v40, %v4285_v60  ;;  %3093 = vmatpush.bf16.msk.msrb.mxu0 %vm3092_vm1, %v5479_v12  ;;  %v4318_v3 = vpack.c.b16 %v611_v32, %v607_v62  ;;  %3109 = vmatpush.bf16.msk.msrb.mxu1 %vm3108_vm2, %v5479_v12  ;;  %v537_v15 = vunpack.c.l.bf16 %v4132_v46  ;;  %vm1061_vm3 = vcmp.eq.s32.totalorder %v5533_v14, %v4045_v26  ;;  %v5534_v32 = vld [vmem:[#allocation18_spill] sm:$0xff]  ;;  %v5535_v62 = vld [vmem:[#allocation19_spill] sm:$0xff] }
 0x11c   : > { %3141 = vmatpush.bf16.msk.msrb.mxu3 %vm3140_vm10, %v5479_v12  ;;  %v4322_v51 = vpack.c.b16 %v612_v20, %v608_v8  ;;  %v531_v59 = vpack.c.bf16 %v522_v4, %v521_v34  ;;  %vm1065_vm8 = vcmp.eq.s32.totalorder %v5534_v32, %v4045_v26  ;;  %vm1125_vm5 = vcmp.eq.s32.totalorder %v5535_v62, %v4045_v26  ;;  %v5536_v8 = vld [vmem:[#allocation20_spill] sm:$0xff]  ;;  %v5537_v20 = vld [vmem:[#allocation38_spill] sm:$0xff]  ;;  %v5538_v46 = vld [vmem:[#allocation39_spill] sm:$0xff] }
 0x11d   : > { %5531 = vst [vmem:[#allocation46_spill] sm:$0xff] %v4318_v3  ;;  %v609_v13 = vunpack.c.l.b16 %v4312_v9  ;;  %vm1129_vm7 = vcmp.eq.s32.totalorder %v5536_v8, %v4045_v26  ;;  %vm3126_vm11 = vmpackc.low %vm1065_vm8, %vm1061_vm3  ;;  %vm933_vm12 = vcmp.eq.s32.totalorder %v5537_v20, %v4045_v26  ;;  %vm937_vm0 = vcmp.eq.s32.totalorder %v5538_v46, %v4045_v26  ;;  %v5540_v14 = vld [vmem:[#allocation41_spill] sm:$0xff] }
 0x11e   : > { %5532 = vst [vmem:[#allocation51_spill] sm:$0xff] %v4322_v51  ;;  %vm1001_vm13 = vcmp.eq.s32.totalorder %v5540_v14, %v4045_v26  ;;  %v550_v32 = vsub.f32 %v4105_v49, %v538_v47  ;;  %v610_v62 = vunpack.c.h.b16 %v4312_v9  ;;  %3127 = vmatpush.bf16.msk.msrb.mxu2 %vm3126_vm11, %v5479_v12  ;;  %vm3142_vm6 = vmpackc.low %vm1129_vm7, %vm1125_vm5  ;;  %v539_v8 = vunpack.c.l.bf16 %v531_v59 }
 0x11f   : > { %v605_v6 = vunpack.c.l.b16 %v531_v59  ;;  %v549_v20 = vsub.f32 %v4084_v10, %v537_v15  ;;  %vm3094_vm10 = vmpackc.low %vm937_vm0, %vm933_vm12  ;;  %v606_v46 = vunpack.c.h.b16 %v531_v59  ;;  %v535_v49 = vunpack.c.l.bf16 %v4235_v35 }
 0x120   : > { %3143 = vmatpush.bf16.msk.msrb.mxu3 %vm3142_vm6, %v5479_v12  ;;  %3095 = vmatpush.bf16.msk.msrb.mxu0 %vm3094_vm10, %v5479_v12  ;;  %v551_v58 = vsub.f32 %v521_v34, %v539_v8  ;;  %v637_v15 = vunpack.c.l.b16 %v4017_v63  ;;  %v5548_v34 = vld [vmem:[#allocation42_spill] sm:$0xff]  ;;  %v638_v8 = vunpack.c.h.b16 %v4017_v63  ;;  %v545_v63 = vunpack.c.l.bf16 %v4274_v48 }
 0x121   : > { %v4350_v14 = vpack.c.b16 %v609_v13, %v605_v6  ;;  %v4354_v47 = vpack.c.b16 %v610_v62, %v606_v46  ;;  %v560_v10 = vpack.c.bf16 %v550_v32, %v549_v20  ;;  %v5543_v6 = vld [vmem:[#allocation22_spill] sm:$0xff]  ;;  %v5545_v13 = vld [vmem:[#allocation24_spill] sm:$0xff]  ;;  %vm929_vm11 = vcmp.eq.s32.totalorder %v5548_v34, %v4045_v26 }
 0x122   : > { %vm1053_vm1 = vcmp.eq.s32.totalorder %v5543_v6, %v4045_v26  ;;  %vm1117_vm3 = vcmp.eq.s32.totalorder %v5545_v13, %v4045_v26  ;;  %v5550_v32 = vld [vmem:[#allocation44_spill] sm:$0xff]  ;;  %v547_v62 = vsub.f32 %v4188_v25, %v535_v49 }
 0x123   : > { %1904 = vmatmul.bf16.gmra.mxu2 %v4318_v3  ;;  %1937 = vmatmul.bf16.gmra.mxu3 %v4322_v51  ;;  %v5539_v51 = vld [vmem:[#allocation40_spill] sm:$0xff]  ;;  %v540_v3 = vunpack.c.h.bf16 %v531_v59  ;;  %5541 = vst [vmem:[#allocation52_spill] sm:$0xff] %v4350_v14  ;;  %v5544_v59 = vld [vmem:[#allocation23_spill] sm:$0xff]  ;;  %vm993_vm0 = vcmp.eq.s32.totalorder %v5550_v32, %v4045_v26  ;;  %v633_v46 = vunpack.c.l.b16 %v560_v10  ;;  %v634_v34 = vunpack.c.h.b16 %v560_v10 }
 0x124   : > { %vm997_vm4 = vcmp.eq.s32.totalorder %v5539_v51, %v4045_v26  ;;  %5542 = vst [vmem:[#allocation53_spill] sm:$0xff] %v4354_v47  ;;  %v536_v51 = vunpack.c.h.bf16 %v4235_v35  ;;  %vm1057_vm2 = vcmp.eq.s32.totalorder %v5544_v59, %v4045_v26  ;;  %v5546_v35 = vld [vmem:[#allocation25_spill] sm:$0xff]  ;;  %v543_v32 = vunpack.c.l.bf16 %v4312_v9 }
 0x125   : > { %vm3110_vm14 = vmpackc.low %vm1001_vm13, %vm997_vm4  ;;  %v552_v54 = vsub.f32 %v522_v4, %v540_v3  ;;  %vm1121_vm8 = vcmp.eq.s32.totalorder %v5546_v35, %v4045_v26  ;;  %v5547_v3 = vld [vmem:[#allocation4_spill] sm:$0xff]  ;;  %v5549_v4 = vld [vmem:[#allocation43_spill] sm:$0xff]  ;;  %v4383_v25 = vpack.c.b16 %v637_v15, %v633_v46  ;;  %v557_v15 = vsub.f32 %v4255_v50, %v545_v63 }
 0x126   : > { %3111 = vmatpush.bf16.msk.msrb.mxu1 %vm3110_vm14, %v5479_v12  ;;  %vm3128_vm5 = vmpackc.low %vm1057_vm2, %vm1053_vm1  ;;  %vm925_vm7 = vcmp.eq.s32.totalorder %v5547_v3, %v4045_v26  ;;  %vm989_vm12 = vcmp.eq.s32.totalorder %v5549_v4, %v4045_v26  ;;  %v548_v20 = vsub.f32 %v4199_v56, %v536_v51  ;;  %v546_v26 = vunpack.c.h.bf16 %v4274_v48 }
 0x127   : > { %3129 = vmatpush.bf16.msk.msrb.mxu2 %vm3128_vm5, %v5479_v12  ;;  %vm3144_vm4 = vmpackc.low %vm1121_vm8, %vm1117_vm3  ;;  %v561_v3 = vpack.c.bf16 %v552_v54, %v551_v58  ;;  %5551 = vst [vmem:[#allocation54_spill] sm:$0xff] %v4383_v25  ;;  %v4387_v56 = vpack.c.b16 %v638_v8, %v634_v34  ;;  %v676_v54 = vld [vmem:[%s3433_s22 + $0x8] sm:$0x77] }
 0x128   : > { %3145 = vmatpush.bf16.msk.msrb.mxu3 %vm3144_vm4, %v5479_v12  ;;  %vm3096_vm13 = vmpackc.low %vm929_vm11, %vm925_vm7  ;;  %v559_v51 = vpack.c.bf16 %v548_v20, %v547_v62  ;;  %v678_v58 = vld [vmem:[%s5298_s1 + $0x8] sm:$0x77]  ;;  %v558_v10 = vsub.f32 %v4257_v7, %v546_v26 }
 0x129   : > { %3097 = vmatpush.bf16.msk.msrb.mxu0 %vm3096_vm13, %v5479_v12  ;;  %vm3112_vm6 = vmpackc.low %vm993_vm0, %vm989_vm12  ;;  %5552 = vst [vmem:[#allocation55_spill] sm:$0xff] %v4387_v56  ;;  %v635_v49 = vunpack.c.l.b16 %v561_v3  ;;  %v4397_v48 = vadd.f32 %v678_v58, %v676_v54  ;;  %v636_v34 = vunpack.c.h.b16 %v561_v3  ;;  %v555_v3 = vsub.f32 %v4285_v60, %v543_v32 }
 0x12a   : > { %1838 = vmatmul.bf16.gmra.mxu0 %v4350_v14  ;;  %1871 = vmatmul.bf16.gmra.mxu1 %v4354_v47  ;;  %v631_v46 = vunpack.c.l.b16 %v559_v51  ;;  %v632_v20 = vunpack.c.h.b16 %v559_v51  ;;  %v564_v4 = vpack.c.bf16 %v558_v10, %v557_v15 }
 0x12b   : > { %3113 = vmatpush.bf16.msk.msrb.mxu1 %vm3112_vm6, %v5479_v12  ;;  %5553 = vst [vmem:[#allocation56_spill] sm:$0xff] %v4397_v48  ;;  %v5417_v62 = vfloor.f32 %v4397_v48  ;;  %v5573_v48 = vld [vmem:[#allocation12_spill] sm:$0xff] }
 0x12c   : > { %v4400_v8 = vpack.c.b16 %v635_v49, %v631_v46  ;;  %v4408_v7 = vpack.c.b16 %v636_v34, %v632_v20  ;;  %v641_v26 = vunpack.c.l.b16 %v564_v4 }
 0x12e   : > { %5554 = vst [vmem:[#allocation57_spill] sm:$0xff] %v4400_v8  ;;  %v4416_v58 = vpack.c.b16 %v641_v26, %v641_v26 }
 0x133   : > { %1909 = vmatmul.bf16.gmra.mxu2 %v4383_v25  ;;  %1942 = vmatmul.bf16.gmra.mxu3 %v4387_v56  ;;  %v544_v56 = vunpack.c.h.bf16 %v4312_v9  ;;  %v4406_v25 = vcvt.f32.s32 %v5417_v62  ;;  %v642_v9 = vunpack.c.h.b16 %v564_v4  ;;  %v5571_v62 = vld [vmem:[#allocation10_spill] sm:$0xff] }
 0x135   : > { %5555 = vst [vmem:[#allocation58_spill] sm:$0xff] %v4406_v25  ;;  %vm823_vm10 = vcmp.gt.s32.totalorder %v4406_v25, 4294967295  ;;  %v556_v63 = vsub.f32 %v4287_v40, %v544_v56  ;;  %v4418_v34 = vpack.c.b16 %v642_v9, %v642_v9  ;;  %v5558_v9 = vld [vmem:[#allocation48_spill] sm:$0xff] }
 0x136   : > { %v824_v50 = vsel %vm823_vm10, %v4406_v25, 4294967295  ;;  %v5572_v25 = vld [vmem:[#allocation11_spill] sm:$0xff] }
 0x137   : > { %vm827_vm14 = vcmp.lt.s32.totalorder %v824_v50, 7  ;;  %v563_v10 = vpack.c.bf16 %v556_v63, %v555_v3 }
 0x138   : > { %v828_v51 = vsel %vm827_vm14, %v824_v50, 7 }
 0x139   : > { %v830_v49 = vmul.u32 64, %v828_v51  ;;  %v832_v54 = vmul.u32 8, %v828_v51  ;;  %v2761_v46 = vrot.slane %v828_v51, 10  ;;  %v639_v60 = vunpack.c.l.b16 %v563_v10  ;;  %v5559_v51 = vld [vmem:[#allocation21_spill] sm:$0xff] }
 0x13a   : > { %1843 = vmatmul.bf16.gmra.mxu0 %v4400_v8  ;;  %1876 = vmatmul.bf16.gmra.mxu1 %v4408_v7  ;;  %v640_v40 = vunpack.c.h.b16 %v563_v10  ;;  %v5562_v10 = vld [vmem:[#allocation7_spill] sm:$0xff] }
 0x13b   : > { %v2759_v15 = vrot.slane %v832_v54, 9  ;;  %v4422_v56 = vpack.c.b16 %v639_v60, %v639_v60  ;;  %v5561_v54 = vld [vmem:[#allocation6_spill] sm:$0xff]  ;;  %v5566_v60 = vld [vmem:[#allocation49_spill] sm:$0xff] }
 0x13c   : > { %v4426_v26 = vpack.c.b16 %v640_v40, %v640_v40  ;;  %v5568_v40 = vld [vmem:[#allocation29_spill] sm:$0xff] }
 0x13d   : > { %v838_v20 = vadd.s32 %v2759_v15, %v830_v49  ;;  %5556 = vst [vmem:[#allocation59_spill] sm:$0xff] %v4422_v56  ;;  %v5560_v49 = vld [vmem:[#allocation5_spill] sm:$0xff]  ;;  %v5563_v15 = vld [vmem:[#allocation8_spill] sm:$0xff] }
 0x13e   : > { %5557 = vst [vmem:[#allocation60_spill] sm:$0xff] %v4426_v26 }
 0x13f   : > { %v844_v32 = vadd.s32 %v2761_v46, %v838_v20  ;;  %v5564_v46 = vld [vmem:[#allocation26_spill] sm:$0xff]  ;;  %v5565_v20 = vld [vmem:[#allocation27_spill] sm:$0xff] }
 0x141   : > { %vm846_vm1 = vcmp.lt.s32.totalorder %v844_v32, 0  ;;  %v848_v4 = vadd.s32 512, %v844_v32 }
 0x143   : > { %1914 = vmatmul.bf16.gmra.mxu2 %v4416_v58  ;;  %1947 = vmatmul.bf16.gmra.mxu3 %v4418_v34  ;;  %v4424_v50 = vsel %vm846_vm1, %v848_v4, %v844_v32  ;;  %v5567_v32 = vld [vmem:[#allocation28_spill] sm:$0xff]  ;;  %v5569_v4 = vld [vmem:[#allocation50_spill] sm:$0xff] }
 0x144   : > { %v918_v3 = vperm.slane %v4424_v50, 0 }
 0x146   : > { %v4431_v63 = vperm.slane %v918_v3, 0  ;;  %v5570_v3 = vld [vmem:[#allocation9_spill] sm:$0xff] }
 0x148   : > { %vm1110_vm2 = vcmp.eq.s32.totalorder %v3524_v16, %v4431_v63  ;;  %vm1114_vm3 = vcmp.eq.s32.totalorder %v3527_v17, %v4431_v63  ;;  %vm1174_vm8 = vcmp.eq.s32.totalorder %v3530_v18, %v4431_v63  ;;  %vm1178_vm5 = vcmp.eq.s32.totalorder %v3533_v19, %v4431_v63 }
 0x149   : > { %vm3178_vm7 = vmpackc.low %vm1114_vm3, %vm1110_vm2  ;;  %vm982_vm11 = vcmp.eq.s32.totalorder %v3636_v42, %v4431_v63  ;;  %vm986_vm12 = vcmp.eq.s32.totalorder %v3639_v43, %v4431_v63  ;;  %vm1046_vm0 = vcmp.eq.s32.totalorder %v3642_v44, %v4431_v63  ;;  %vm1050_vm4 = vcmp.eq.s32.totalorder %v3652_v45, %v4431_v63 }
 0x14a   : > { %1848 = vmatmul.bf16.gmra.mxu0 %v4422_v56  ;;  %1881 = vmatmul.bf16.gmra.mxu1 %v4426_v26  ;;  %vm3194_vm13 = vmpackc.low %vm1178_vm5, %vm1174_vm8  ;;  %vm1102_vm6 = vcmp.eq.s32.totalorder %v3538_v5, %v4431_v63  ;;  %vm1106_vm10 = vcmp.eq.s32.totalorder %v3541_v21, %v4431_v63  ;;  %vm1166_vm1 = vcmp.eq.s32.totalorder %v3544_v22, %v4431_v63 }
 0x14b   : > { %3179 = vmatpush.bf16.msk.msra.mxu2 %vm3178_vm7, %v5479_v12  ;;  %3195 = vmatpush.bf16.msk.msra.mxu3 %vm3194_vm13, %v5479_v12  ;;  %vm3146_vm14 = vmpackc.low %vm986_vm12, %vm982_vm11  ;;  %vm1170_vm2 = vcmp.eq.s32.totalorder %v3559_v23, %v4431_v63  ;;  %vm974_vm8 = vcmp.eq.s32.totalorder %v3688_v52, %v4431_v63  ;;  %vm978_vm5 = vcmp.eq.s32.totalorder %v3691_v53, %v4431_v63 }
 0x14c   : > { %3147 = vmatpush.bf16.msk.msra.mxu0 %vm3146_vm14, %v5479_v12  ;;  %vm3162_vm3 = vmpackc.low %vm1050_vm4, %vm1046_vm0  ;;  %vm1038_vm11 = vcmp.eq.s32.totalorder %v3706_v55, %v4431_v63  ;;  %vm1042_vm12 = vcmp.eq.s32.totalorder %v3709_v57, %v4431_v63  ;;  %vm1094_vm4 = vcmp.eq.s32.totalorder %v3573_v27, %v4431_v63  ;;  %vm1098_vm13 = vcmp.eq.s32.totalorder %v3576_v28, %v4431_v63 }
 0x14d   : > { %3163 = vmatpush.bf16.msk.msra.mxu1 %vm3162_vm3, %v5479_v12  ;;  %vm3180_vm7 = vmpackc.low %vm1106_vm10, %vm1102_vm6  ;;  %vm1158_vm10 = vcmp.eq.s32.totalorder %v3580_v29, %v4431_v63  ;;  %vm1162_vm14 = vcmp.eq.s32.totalorder %v3583_v30, %v4431_v63 }
 0x14e   : > { %vm3196_vm0 = vmpackc.low %vm1170_vm2, %vm1166_vm1  ;;  %vm966_vm1 = vcmp.eq.s32.totalorder %v3734_v0, %v4431_v63  ;;  %vm970_vm2 = vcmp.eq.s32.totalorder %v3740_v1, %v4431_v63 }
 0x14f   : > { %3181 = vmatpush.bf16.msk.msra.mxu2 %vm3180_vm7, %v5479_v12  ;;  %3197 = vmatpush.bf16.msk.msra.mxu3 %vm3196_vm0, %v5479_v12  ;;  %vm3148_vm6 = vmpackc.low %vm978_vm5, %vm974_vm8  ;;  %vm1030_vm8 = vcmp.eq.s32.totalorder %v3743_v2, %v4431_v63  ;;  %vm1034_vm5 = vcmp.eq.s32.totalorder %v5559_v51, %v4431_v63 }
 0x150   : > { %3149 = vmatpush.bf16.msk.msra.mxu0 %vm3148_vm6, %v5479_v12  ;;  %vm3164_vm3 = vmpackc.low %vm1042_vm12, %vm1038_vm11  ;;  %vm1086_vm11 = vcmp.eq.s32.totalorder %v5560_v49, %v4431_v63  ;;  %vm1090_vm12 = vcmp.eq.s32.totalorder %v5561_v54, %v4431_v63 }
 0x151   : > { %3165 = vmatpush.bf16.msk.msra.mxu1 %vm3164_vm3, %v5479_v12  ;;  %vm3182_vm7 = vmpackc.low %vm1098_vm13, %vm1094_vm4  ;;  %vm1150_vm4 = vcmp.eq.s32.totalorder %v5562_v10, %v4431_v63  ;;  %vm1154_vm13 = vcmp.eq.s32.totalorder %v5563_v15, %v4431_v63 }
 0x152   : > { %vm3198_vm0 = vmpackc.low %vm1162_vm14, %vm1158_vm10  ;;  %vm958_vm10 = vcmp.eq.s32.totalorder %v5564_v46, %v4431_v63  ;;  %vm962_vm14 = vcmp.eq.s32.totalorder %v5565_v20, %v4431_v63 }
 0x153   : > { %2026 = vmatmul.bf16.vlgmr.msrb.gmra.mxu2 %v3983_v24  ;;  %2059 = vmatmul.bf16.vlgmr.msrb.gmra.mxu3 %v5558_v9  ;;  %vm3150_vm6 = vmpackc.low %vm970_vm2, %vm966_vm1  ;;  %vm1022_vm2 = vcmp.eq.s32.totalorder %v5567_v32, %v4431_v63 }
 0x154   : > { %3183 = vmatpush.bf16.msk.msra.mxu2 %vm3182_vm7, %v5479_v12  ;;  %3199 = vmatpush.bf16.msk.msra.mxu3 %vm3198_vm0, %v5479_v12  ;;  %vm3166_vm3 = vmpackc.low %vm1034_vm5, %vm1030_vm8  ;;  %vm1026_vm7 = vcmp.eq.s32.totalorder %v5568_v40, %v4431_v63  ;;  %vm1078_vm5 = vcmp.eq.s32.totalorder %v5570_v3, %v4431_v63  ;;  %vm1082_vm0 = vcmp.eq.s32.totalorder %v5571_v62, %v4431_v63  ;;  %v5577_v62 = vld [vmem:[#allocation34_spill] sm:$0xff]  ;;  %v5578_v40 = vld [vmem:[#allocation35_spill] sm:$0xff] }
 0x155   : > { %3151 = vmatpush.bf16.msk.msra.mxu0 %vm3150_vm6, %v5479_v12  ;;  %3167 = vmatpush.bf16.msk.msra.mxu1 %vm3166_vm3, %v5479_v12  ;;  %vm3184_vm1 = vmpackc.low %vm1090_vm12, %vm1086_vm11  ;;  %vm1142_vm12 = vcmp.eq.s32.totalorder %v5572_v25, %v4431_v63  ;;  %vm1146_vm6 = vcmp.eq.s32.totalorder %v5573_v48, %v4431_v63  ;;  %v5574_v25 = vld [vmem:[#allocation45_spill] sm:$0xff] }
 0x156   : > { %vm3200_vm8 = vmpackc.low %vm1154_vm13, %vm1150_vm4 }
 0x157   : > { %vm3152_vm11 = vmpackc.low %vm962_vm14, %vm958_vm10  ;;  %vm950_vm10 = vcmp.eq.s32.totalorder %v5518_v33, %v4431_v63  ;;  %vm954_vm14 = vcmp.eq.s32.totalorder %v5519_v41, %v4431_v63 }
 0x158   : > { %3185 = vmatpush.bf16.msk.msra.mxu2 %vm3184_vm1, %v5479_v12  ;;  %3201 = vmatpush.bf16.msk.msra.mxu3 %vm3200_vm8, %v5479_v12  ;;  %vm3168_vm3 = vmpackc.low %vm1026_vm7, %vm1022_vm2  ;;  %vm1014_vm1 = vcmp.eq.s32.totalorder %v5520_v36, %v4431_v63  ;;  %vm1018_vm2 = vcmp.eq.s32.totalorder %v5521_v39, %v4431_v63  ;;  %vm1070_vm8 = vcmp.eq.s32.totalorder %v5522_v38, %v4431_v63  ;;  %v5575_v38 = vld [vmem:[#allocation15_spill] sm:$0xff] }
 0x159   : > { %3153 = vmatpush.bf16.msk.msra.mxu0 %vm3152_vm11, %v5479_v12  ;;  %3169 = vmatpush.bf16.msk.msra.mxu1 %vm3168_vm3, %v5479_v12  ;;  %vm3186_vm4 = vmpackc.low %vm1082_vm0, %vm1078_vm5  ;;  %vm1074_vm5 = vcmp.eq.s32.totalorder %v5523_v37, %v4431_v63  ;;  %v5576_v37 = vld [vmem:[#allocation16_spill] sm:$0xff]  ;;  %vm942_vm3 = vcmp.eq.s32.totalorder %v5577_v62, %v4431_v63  ;;  %v5582_v62 = vld [vmem:[#allocation51_spill] sm:$0xff] }
 0x15a   : > { %1960 = vmatmul.bf16.vlgmr.msrb.gmra.mxu0 %v5566_v60  ;;  %1993 = vmatmul.bf16.vlgmr.msrb.gmra.mxu1 %v5569_v4  ;;  %vm3202_vm13 = vmpackc.low %vm1146_vm6, %vm1142_vm12  ;;  %vm1134_vm12 = vcmp.eq.s32.totalorder %v5575_v38, %v4431_v63  ;;  %vm1138_vm6 = vcmp.eq.s32.totalorder %v5576_v37, %v4431_v63 }
 0x15b   : > { %vm3154_vm7 = vmpackc.low %vm954_vm14, %vm950_vm10  ;;  %v1895_v48 = vpop.f32.mrf.mxu2 }
 0x15c   : > { %3187 = vmatpush.bf16.msk.msra.mxu2 %vm3186_vm4, %v5479_v12  ;;  %3203 = vmatpush.bf16.msk.msra.mxu3 %vm3202_vm13, %v5479_v12  ;;  %vm3170_vm0 = vmpackc.low %vm1018_vm2, %vm1014_vm1  ;;  %v1928_v3 = vpop.f32.mrf.mxu3  ;;  %vm946_vm13 = vcmp.eq.s32.totalorder %v5578_v40, %v4431_v63  ;;  %v5583_v40 = vld [vmem:[#allocation17_spill] sm:$0xff] }
 0x15d   : > { %3155 = vmatpush.bf16.msk.msra.mxu0 %vm3154_vm7, %v5479_v12  ;;  %3171 = vmatpush.bf16.msk.msra.mxu1 %vm3170_vm0, %v5479_v12  ;;  %vm3188_vm11 = vmpackc.low %vm1074_vm5, %vm1070_vm8  ;;  %vm1062_vm7 = vcmp.eq.s32.totalorder %v5583_v40, %v4431_v63  ;;  %v5588_v40 = vld [vmem:[#allocation39_spill] sm:$0xff] }
 0x15e   : > { %vm3204_vm4 = vmpackc.low %vm1138_vm6, %vm1134_vm12 }
 0x15f   : > { %vm3156_vm1 = vmpackc.low %vm946_vm13, %vm942_vm3  ;;  %vm938_vm3 = vcmp.eq.s32.totalorder %v5588_v40, %v4431_v63 }
 0x160   : > { %3189 = vmatpush.bf16.msk.msra.mxu2 %vm3188_vm11, %v5479_v12  ;;  %3205 = vmatpush.bf16.msk.msra.mxu3 %vm3204_vm4, %v5479_v12 }
 0x161   : > { %3157 = vmatpush.bf16.msk.msra.mxu0 %vm3156_vm1, %v5479_v12  ;;  %vm1054_vm1 = vcmp.eq.s32.totalorder %v5543_v6, %v4431_v63  ;;  %v5593_v6 = vld [vmem:[#allocation4_spill] sm:$0xff] }
 0x163   : > { %2031 = vmatmul.bf16.gmra.mxu2 %v4246_v11  ;;  %2064 = vmatmul.bf16.gmra.mxu3 %v4252_v31 }
 0x165   : > { %v1829_v41 = vpop.f32.mrf.mxu0  ;;  %v1862_v36 = vpop.f32.mrf.mxu1 }
 0x166   : > { %v1863_v33 = vadd.f32 %v1862_v36, %v1829_v41  ;;  %v5579_v41 = vld [vmem:[#allocation36_spill] sm:$0xff] }
 0x167   : > { %vm1006_vm10 = vcmp.eq.s32.totalorder %v5579_v41, %v4431_v63  ;;  %v5584_v41 = vld [vmem:[#allocation18_spill] sm:$0xff] }
 0x168   : > { %v1896_v39 = vadd.f32 %v1895_v48, %v1863_v33  ;;  %v5580_v33 = vld [vmem:[#allocation37_spill] sm:$0xff]  ;;  %v5581_v48 = vld [vmem:[#allocation46_spill] sm:$0xff]  ;;  %vm1066_vm8 = vcmp.eq.s32.totalorder %v5584_v41, %v4431_v63  ;;  %v5589_v41 = vld [vmem:[#allocation40_spill] sm:$0xff] }
 0x169   : > { %vm1010_vm14 = vcmp.eq.s32.totalorder %v5580_v33, %v4431_v63  ;;  %vm3190_vm0 = vmpackc.low %vm1066_vm8, %vm1062_vm7  ;;  %vm998_vm4 = vcmp.eq.s32.totalorder %v5589_v41, %v4431_v63  ;;  %vm1118_vm8 = vcmp.eq.s32.totalorder %v5545_v13, %v4431_v63  ;;  %v5595_v13 = vld [vmem:[#allocation43_spill] sm:$0xff] }
 0x16a   : > { %1965 = vmatmul.bf16.gmra.mxu0 %v4281_v61  ;;  %1998 = vmatmul.bf16.gmra.mxu1 %v5574_v25  ;;  %v4558_v36 = vadd.f32 %v1928_v3, %v1896_v39  ;;  %vm3172_vm2 = vmpackc.low %vm1010_vm14, %vm1006_vm10  ;;  %v5585_v39 = vld [vmem:[#allocation19_spill] sm:$0xff]  ;;  %v5586_v3 = vld [vmem:[#allocation20_spill] sm:$0xff] }
 0x16b   : > { %3173 = vmatpush.bf16.msk.msra.mxu1 %vm3172_vm2, %v5479_v12  ;;  %vm1126_vm5 = vcmp.eq.s32.totalorder %v5585_v39, %v4431_v63  ;;  %vm1130_vm11 = vcmp.eq.s32.totalorder %v5586_v3, %v4431_v63  ;;  %3191 = vmatpush.bf16.msk.msra.mxu2 %vm3190_vm0, %v5479_v12  ;;  %v5590_v39 = vld [vmem:[#allocation41_spill] sm:$0xff]  ;;  %vm1058_vm2 = vcmp.eq.s32.totalorder %v5544_v59, %v4431_v63  ;;  %v5594_v59 = vld [vmem:[#allocation42_spill] sm:$0xff] }
 0x16c   : > { %vm3206_vm12 = vmpackc.low %vm1130_vm11, %vm1126_vm5  ;;  %vm1002_vm13 = vcmp.eq.s32.totalorder %v5590_v39, %v4431_v63  ;;  %vm1122_vm5 = vcmp.eq.s32.totalorder %v5546_v35, %v4431_v63  ;;  %vm926_vm11 = vcmp.eq.s32.totalorder %v5593_v6, %v4431_v63  ;;  %v5596_v35 = vld [vmem:[#allocation44_spill] sm:$0xff]  ;;  %v919_v39 = vperm.slane %v4424_v50, 4  ;;  %v4620_v50 = vpop.f32.mrf.mxu3 }
 0x16d   : > { %3207 = vmatpush.bf16.msk.msra.mxu3 %vm3206_vm12, %v5479_v12  ;;  %vm3174_vm14 = vmpackc.low %vm1002_vm13, %vm998_vm4  ;;  %vm930_vm12 = vcmp.eq.s32.totalorder %v5594_v59, %v4431_v63 }
 0x16e   : > { %vm3192_vm7 = vmpackc.low %vm1058_vm2, %vm1054_vm1  ;;  %v4611_v6 = vperm.slane %v919_v39, 0 }
 0x16f   : > { %3175 = vmatpush.bf16.msk.msra.mxu1 %vm3174_vm14, %v5479_v12  ;;  %3193 = vmatpush.bf16.msk.msra.mxu2 %vm3192_vm7, %v5479_v12  ;;  %vm3208_vm0 = vmpackc.low %vm1122_vm5, %vm1118_vm8 }
 0x170   : > { %vm3160_vm4 = vmpackc.low %vm930_vm12, %vm926_vm11  ;;  %vm1115_vm14 = vcmp.eq.s32.totalorder %v3527_v17, %v4611_v6  ;;  %vm1175_vm2 = vcmp.eq.s32.totalorder %v3530_v18, %v4611_v6  ;;  %vm1179_vm7 = vcmp.eq.s32.totalorder %v3533_v19, %v4611_v6  ;;  %vm983_vm8 = vcmp.eq.s32.totalorder %v3636_v42, %v4611_v6 }
 0x171   : > { %3209 = vmatpush.bf16.msk.msra.mxu3 %vm3208_vm0, %v5479_v12  ;;  %vm987_vm5 = vcmp.eq.s32.totalorder %v3639_v43, %v4611_v6  ;;  %vm3258_vm0 = vmpackc.low %vm1179_vm7, %vm1175_vm2  ;;  %vm1047_vm11 = vcmp.eq.s32.totalorder %v3642_v44, %v4611_v6  ;;  %vm1051_vm12 = vcmp.eq.s32.totalorder %v3652_v45, %v4611_v6  ;;  %vm975_vm2 = vcmp.eq.s32.totalorder %v3688_v52, %v4611_v6  ;;  %v5598_v44 = vld [vmem:[#allocation2_spill] sm:$0xff] }
 0x172   : > { %vm979_vm7 = vcmp.eq.s32.totalorder %v3691_v53, %v4611_v6  ;;  %v5599_v45 = vfloor.f32 %v5598_v44 }
 0x173   : > { %2036 = vmatmul.bf16.gmra.mxu2 %v5581_v48  ;;  %2069 = vmatmul.bf16.gmra.mxu3 %v5582_v62  ;;  %v5587_v62 = vld [vmem:[#allocation38_spill] sm:$0xff] }
 0x174   : > { %vm934_vm6 = vcmp.eq.s32.totalorder %v5587_v62, %v4431_v63  ;;  %v4673_v52 = vsub.f32 %v5598_v44, %v5599_v45 }
 0x175   : > { %vm3158_vm10 = vmpackc.low %vm938_vm3, %vm934_vm6  ;;  %vm990_vm6 = vcmp.eq.s32.totalorder %v5595_v13, %v4431_v63  ;;  %vm994_vm3 = vcmp.eq.s32.totalorder %v5596_v35, %v4431_v63  ;;  %v4618_v63 = vpop.f32.mrf.mxu2  ;;  %3259 = vmatpush.bf16.msk.msrb.mxu3 %vm3258_vm0, %v5479_v12 }
 0x176   : > { %3159 = vmatpush.bf16.msk.msra.mxu0 %vm3158_vm10, %v5479_v12  ;;  %vm3176_vm13 = vmpackc.low %vm994_vm3, %vm990_vm6  ;;  %vm1111_vm10 = vcmp.eq.s32.totalorder %v3524_v16, %v4611_v6  ;;  %v4633_v16 = vpop.f32.mrf.mxu1 }
 0x177   : > { %3177 = vmatpush.bf16.msk.msra.mxu1 %vm3176_vm13, %v5479_v12  ;;  %vm3242_vm1 = vmpackc.low %vm1115_vm14, %vm1111_vm10  ;;  %vm1107_vm13 = vcmp.eq.s32.totalorder %v3541_v21, %v4611_v6  ;;  %vm1167_vm10 = vcmp.eq.s32.totalorder %v3544_v22, %v4611_v6  ;;  %vm1171_vm14 = vcmp.eq.s32.totalorder %v3559_v23, %v4611_v6  ;;  %v5597_v21 = vld [vmem:[#allocation3_spill] sm:$0xff] }
 0x178   : > { %3243 = vmatpush.bf16.msk.msrb.mxu2 %vm3242_vm1, %v5479_v12  ;;  %vm3210_vm6 = vmpackc.low %vm987_vm5, %vm983_vm8  ;;  %vm1039_vm8 = vcmp.eq.s32.totalorder %v3706_v55, %v4611_v6  ;;  %vm1043_vm5 = vcmp.eq.s32.totalorder %v3709_v57, %v4611_v6 }
 0x179   : > { %vm3226_vm3 = vmpackc.low %vm1051_vm12, %vm1047_vm11  ;;  %vm687_vm12 = vcmp.ge.s32.totalorder %v5597_v21, 0 }
 0x17a   : > { %1970 = vmatmul.bf16.gmra.mxu0 %v4350_v14  ;;  %2003 = vmatmul.bf16.gmra.mxu1 %v4354_v47  ;;  %v5591_v14 = vld [vmem:[#allocation54_spill] sm:$0xff]  ;;  %v5592_v47 = vld [vmem:[#allocation55_spill] sm:$0xff]  ;;  %vm3260_vm0 = vmpackc.low %vm1171_vm14, %vm1167_vm10  ;;  %vm695_vm10 = vcmp.le.s32.totalorder %v5597_v21, 6 }
 0x17b   : > { %3161 = vmatpush.bf16.msk.msra.mxu0 %vm3160_vm4, %v5479_v12  ;;  %3227 = vmatpush.bf16.msk.msrb.mxu1 %vm3226_vm3, %v5479_v12  ;;  %vm1103_vm4 = vcmp.eq.s32.totalorder %v3538_v5, %v4611_v6  ;;  %vm3212_vm11 = vmpackc.low %vm979_vm7, %vm975_vm2  ;;  %vm1099_vm2 = vcmp.eq.s32.totalorder %v3576_v28, %v4611_v6  ;;  %vm1159_vm7 = vcmp.eq.s32.totalorder %v3580_v29, %v4611_v6 }
 0x17c   : > { %vm3244_vm1 = vmpackc.low %vm1107_vm13, %vm1103_vm4  ;;  %3261 = vmatpush.bf16.msk.msrb.mxu3 %vm3260_vm0, %v5479_v12  ;;  %vm693_vm13 = vcmp.ge.s32.totalorder %v5597_v21, 4294967295 }
 0x17d   : > { %3245 = vmatpush.bf16.msk.msrb.mxu2 %vm3244_vm1, %v5479_v12  ;;  %vm3228_vm3 = vmpackc.low %vm1043_vm5, %vm1039_vm8  ;;  %vm1095_vm1 = vcmp.eq.s32.totalorder %v3573_v27, %v4611_v6  ;;  %vm1163_vm8 = vcmp.eq.s32.totalorder %v3583_v30, %v4611_v6 }
 0x17e   : > { %vm4686_vm14 = vmand %vm693_vm13, %vm695_vm10  ;;  %vm1035_vm10 = vcmp.eq.s32.totalorder %v5559_v51, %v4611_v6 }
 0x17f   : > { %3211 = vmatpush.bf16.msk.msrb.mxu0 %vm3210_vm6, %v5479_v12  ;;  %vm689_vm6 = vcmp.le.s32.totalorder %v5597_v21, 7  ;;  %3229 = vmatpush.bf16.msk.msrb.mxu1 %vm3228_vm3, %v5479_v12  ;;  %v751_v21 = vrot.slane %v4673_v52, 6  ;;  %vm3246_vm0 = vmpackc.low %vm1099_vm2, %vm1095_vm1  ;;  %vm1031_vm3 = vcmp.eq.s32.totalorder %v3743_v2, %v4611_v6 }
 0x180   : > { %vm4675_vm4 = vmand %vm687_vm12, %vm689_vm6  ;;  %vm967_vm12 = vcmp.eq.s32.totalorder %v3734_v0, %v4611_v6  ;;  %vm971_vm6 = vcmp.eq.s32.totalorder %v3740_v1, %v4611_v6  ;;  %v5646_v1 = vld [vmem:[#allocation19_spill] sm:$0xff] }
 0x181   : > { %3247 = vmatpush.bf16.msk.msrb.mxu2 %vm3246_vm0, %v5479_v12  ;;  %vm3214_vm13 = vmpackc.low %vm971_vm6, %vm967_vm12  ;;  %v4736_v2 = vrot.slane %v751_v21, 4 }
 0x182   : > { %vm3230_vm1 = vmpackc.low %vm1035_vm10, %vm1031_vm3  ;;  %vm1087_vm3 = vcmp.eq.s32.totalorder %v5560_v49, %v4611_v6  ;;  %vm1151_vm10 = vcmp.eq.s32.totalorder %v5562_v10, %v4611_v6 }
 0x183   : > { %2041 = vmatmul.bf16.gmra.mxu2 %v5591_v14  ;;  %2074 = vmatmul.bf16.gmra.mxu3 %v5592_v47 }
 0x184   : > { %3213 = vmatpush.bf16.msk.msrb.mxu0 %vm3212_vm11, %v5479_v12  ;;  %vm3262_vm11 = vmpackc.low %vm1163_vm8, %vm1159_vm7  ;;  %3231 = vmatpush.bf16.msk.msrb.mxu1 %vm3230_vm1, %v5479_v12 }
 0x185   : > { %3263 = vmatpush.bf16.msk.msrb.mxu3 %vm3262_vm11, %v5479_v12 }
 0x188   : > { %3215 = vmatpush.bf16.msk.msrb.mxu0 %vm3214_vm13, %v5479_v12  ;;  %vm1091_vm13 = vcmp.eq.s32.totalorder %v5561_v54, %v4611_v6  ;;  %v5630_v54 = vld [vmem:[#allocation31_spill] sm:$0xff] }
 0x189   : > { %vm3248_vm1 = vmpackc.low %vm1091_vm13, %vm1087_vm3 }
 0x18a   : > { %1975 = vmatmul.bf16.gmra.mxu0 %v4400_v8  ;;  %2008 = vmatmul.bf16.gmra.mxu1 %v4408_v7  ;;  %v4623_v8 = vpop.f32.mrf.mxu0 }
 0x18b   : > { %3249 = vmatpush.bf16.msk.msrb.mxu2 %vm3248_vm1, %v5479_v12  ;;  %v1865_v49 = vadd.f32 %v4633_v16, %v4623_v8  ;;  %vm1023_vm1 = vcmp.eq.s32.totalorder %v5567_v32, %v4611_v6  ;;  %v5628_v32 = vld [vmem:[#allocation12_spill] sm:$0xff] }
 0x193   : > { %2046 = vmatmul.bf16.gmra.mxu2 %v4416_v58  ;;  %2079 = vmatmul.bf16.gmra.mxu3 %v4418_v34 }
 0x196   : > { %v1900_v17 = vpop.f32.mrf.mxu2  ;;  %v1933_v18 = vpop.f32.mrf.mxu3 }
 0x197   : > { %v1834_v19 = vpop.f32.mrf.mxu0  ;;  %v1867_v42 = vpop.f32.mrf.mxu1 }
 0x198   : > { %v1868_v5 = vadd.f32 %v1867_v42, %v1834_v19  ;;  %v699_v42 = vsub.f32 1.0, %v4673_v52 }
 0x19a   : > { %1980 = vmatmul.bf16.gmra.mxu0 %v4422_v56  ;;  %v1901_v22 = vadd.f32 %v1900_v17, %v1868_v5  ;;  %2013 = vmatmul.bf16.gmra.mxu1 %v4426_v26  ;;  %v5443_v17 = vmov 0   ;;  %v721_v56 = vrot.slane %v699_v42, 5 }
 0x19c   : > { %v4668_v23 = vadd.f32 %v1933_v18, %v1901_v22  ;;  %v701_v18 = vsel %vm4675_vm4, 1, %v5443_v17  ;;  %v722_v29 = vrot.slane %v721_v56, 4 }
 0x19d   : > { %v2750_v44 = vrot.slane %v701_v18, 9  ;;  %v2752_v27 = vrot.slane %v701_v18, 10 }
 0x19e   : > { %v1902_v43 = vpop.f32.mrf.mxu2  ;;  %v1935_v55 = vpop.f32.mrf.mxu3 }
 0x19f   : > { %v1836_v57 = vpop.f32.mrf.mxu0  ;;  %v1869_v39 = vpop.f32.mrf.mxu1  ;;  %vm4707_vm5 = vcmp.ne.s32.totalorder %v2750_v44, 0  ;;  %vm4727_vm7 = vcmp.ne.s32.totalorder %v2752_v27, 0 }
 0x1a0   : > { %v1870_v19 = vadd.f32 %v1869_v39, %v1836_v57  ;;  %v739_v57 = vsel %vm4686_vm14, 1, %v5443_v17  ;;  %vm709_vm2 = vmand %vm4675_vm4, %vm4707_vm5 }
 0x1a1   : > { %v2756_v30 = vrot.slane %v739_v57, 9  ;;  %vm4756_vm11 = vmand %vm709_vm2, %vm4727_vm7 }
 0x1a2   : > { %v1903_v22 = vadd.f32 %v1902_v43, %v1870_v19  ;;  %vm789_vm13 = vmand %vm4686_vm14, %vm4707_vm5  ;;  %vm959_vm5 = vcmp.eq.s32.totalorder %v5564_v46, %v4611_v6  ;;  %v5624_v19 = vld [vmem:[#allocation29_spill] sm:$0xff]  ;;  %v5627_v46 = vld [vmem:[#allocation11_spill] sm:$0xff] }
 0x1a3   : > { %2158 = vmatmul.bf16.vlgmr.msra.gmra.mxu2 %v3983_v24  ;;  %2191 = vmatmul.bf16.vlgmr.msra.gmra.mxu3 %v5558_v9  ;;  %v771_v24 = vrot.slane %v4673_v52, 5  ;;  %v2754_v9 = vrot.slane %v739_v57, 10  ;;  %vm4745_vm0 = vcmp.ne.s32.totalorder %v2756_v30, 0 }
 0x1a4   : > { %v1936_v45 = vadd.f32 %v1935_v55, %v1903_v22  ;;  %v729_v22 = vrot.slane %v699_v42, 6  ;;  %vm767_vm6 = vmand %vm4675_vm4, %vm4745_vm0 }
 0x1a5   : > { %vm4732_vm8 = vcmp.ne.s32.totalorder %v2754_v9, 0  ;;  %v4738_v56 = vrot.slane %v771_v24, 4  ;;  %vm4798_vm3 = vmand %vm767_vm6, %vm4727_vm7 }
 0x1a6   : > { %v1905_v26 = vpop.f32.mrf.mxu2  ;;  %v1938_v39 = vpop.f32.mrf.mxu3  ;;  %v4705_v43 = vadd.f32 %v1936_v45, %v4558_v36  ;;  %v4743_v18 = vrot.slane %v729_v22, 4  ;;  %vm4767_vm12 = vmand %vm709_vm2, %vm4732_vm8  ;;  %vm1155_vm2 = vcmp.eq.s32.totalorder %v5563_v15, %v4611_v6 }
 0x1a7   : > { %v1839_v55 = vpop.f32.mrf.mxu0  ;;  %v1872_v17 = vpop.f32.mrf.mxu1  ;;  %vm3264_vm15 = vmpackc.low %vm1155_vm2, %vm1151_vm10  ;;  %vm963_vm10 = vcmp.eq.s32.totalorder %v5565_v20, %v4611_v6  ;;  %vm1027_vm2 = vcmp.eq.s32.totalorder %v5624_v19, %v4611_v6 }
 0x1a8   : > { %v1873_v28 = vadd.f32 %v1872_v17, %v1839_v55  ;;  %v727_v17 = vmul.f32 %v722_v29, %v699_v42  ;;  %3265 = vmatpush.bf16.msk.msrb.mxu3 %vm3264_vm15, %v5479_v12  ;;  %vm783_vm15 = vmand %vm767_vm6, %vm4732_vm8 }
 0x1a9   : > { %vm4842_vm4 = vmand %vm789_vm13, %vm4727_vm7 }
 0x1aa   : > { %2092 = vmatmul.bf16.vlgmr.msra.gmra.mxu0 %v5566_v60  ;;  %v1906_v36 = vadd.f32 %v1905_v26, %v1873_v28  ;;  %2125 = vmatmul.bf16.vlgmr.msra.gmra.mxu1 %v5569_v4  ;;  %v735_v27 = vmul.f32 %v4743_v18, %v727_v17  ;;  %v757_v22 = vmul.f32 %v4736_v2, %v727_v17  ;;  %vm3232_vm9 = vmpackc.low %vm1027_vm2, %vm1023_vm1 }
 0x1ab   : > { %3233 = vmatpush.bf16.msk.msrb.mxu1 %vm3232_vm9, %v5479_v12 }
 0x1ac   : > { %v4741_v26 = vadd.f32 %v1938_v39, %v1906_v36  ;;  %v777_v39 = vmul.f32 %v4738_v56, %v699_v42  ;;  %v4807_v8 = vsel %vm4756_vm11, %v735_v27, 0.0  ;;  %v4811_v16 = vsel %vm4767_vm12, %v757_v22, 0.0  ;;  %vm5448_vm11 = vmand %vm4686_vm14, %vm4745_vm0  ;;  %v5625_v22 = vld [vmem:[#allocation9_spill] sm:$0xff]  ;;  %v5645_v27 = vld [vmem:[#allocation18_spill] sm:$0xff] }
 0x1ad   : > { %v793_v36 = vmul.f32 %v722_v29, %v4673_v52  ;;  %v1898_v29 = vadd.f32 %v4618_v63, %v1865_v49  ;;  %v2392_v53 = vperm.slane %v4811_v16, 0  ;;  %vm4860_vm12 = vmand %vm789_vm13, %vm4732_vm8  ;;  %v5629_v49 = vld [vmem:[#allocation30_spill] sm:$0xff] }
 0x1ae   : > { %v1907_v51 = vpop.f32.mrf.mxu2  ;;  %v1940_v9 = vpop.f32.mrf.mxu3  ;;  %v779_v10 = vmul.f32 %v777_v39, %v4743_v18  ;;  %v785_v15 = vmul.f32 %v777_v39, %v4736_v2  ;;  %vm4872_vm6 = vmand %vm5448_vm11, %vm4727_vm7  ;;  %vm1079_vm7 = vcmp.eq.s32.totalorder %v5625_v22, %v4611_v6  ;;  %vm1147_vm11 = vcmp.eq.s32.totalorder %v5628_v32, %v4611_v6 }
 0x1af   : > { %v1841_v21 = vpop.f32.mrf.mxu0  ;;  %v1874_v57 = vpop.f32.mrf.mxu1  ;;  %v795_v39 = vmul.f32 %v793_v36, %v4743_v18  ;;  %v801_v20 = vmul.f32 %v793_v36, %v4736_v2  ;;  %v5632_v36 = vld [vmem:[#allocation33_spill] sm:$0xff] }
 0x1b0   : > { %v1875_v55 = vadd.f32 %v1874_v57, %v1841_v21  ;;  %v2374_v21 = vperm.slane %v4807_v8, 0  ;;  %v4848_v45 = vsel %vm4798_vm3, %v779_v10, 0.0  ;;  %v4850_v63 = vsel %vm783_vm15, %v785_v15, 0.0  ;;  %vm3216_vm3 = vmpackc.low %vm963_vm10, %vm959_vm5 }
 0x1b1   : > { %3217 = vmatpush.bf16.msk.msrb.mxu0 %vm3216_vm3, %v5479_v12  ;;  %vm951_vm5 = vcmp.eq.s32.totalorder %v5629_v49, %v4611_v6  ;;  %vm1019_vm2 = vcmp.eq.s32.totalorder %v5632_v36, %v4611_v6  ;;  %vm5633_vm3 = vcmp.eq.s32.totalorder %v5627_v46, %v4611_v6  ;;  %v4936_v22 = vsel %vm4860_vm12, %v801_v20, 0.0  ;;  %v5639_v46 = vld [vmem:[#allocation36_spill] sm:$0xff] }
 0x1b2   : > { %v1908_v42 = vadd.f32 %v1907_v51, %v1875_v55  ;;  %vm3266_vm10 = vmpackc.low %vm1147_vm11, %vm5633_vm3  ;;  %vm5636_vm11 = vcmp.eq.s32.totalorder %v5630_v54, %v4611_v6  ;;  %vm1139_vm3 = vcmp.eq.s32.totalorder %v5576_v37, %v4611_v6  ;;  %v1931_v20 = vadd.f32 %v4620_v50, %v1898_v29 }
 0x1b3   : > { %2163 = vmatmul.bf16.gmra.mxu2 %v4246_v11  ;;  %2196 = vmatmul.bf16.gmra.mxu3 %v4252_v31  ;;  %v2382_v32 = vperm.slane %v2374_v21, 0  ;;  %v2544_v29 = vperm.slane %v4936_v22, 0 }
 0x1b4   : > { %v1941_v28 = vadd.f32 %v1940_v9, %v1908_v42  ;;  %v5626_v42 = vld [vmem:[#allocation10_spill] sm:$0xff]  ;;  %3267 = vmatpush.bf16.msk.msrb.mxu3 %vm3266_vm10, %v5479_v12 }
 0x1b5   : > { %vm1083_vm13 = vcmp.eq.s32.totalorder %v5626_v42, %v4611_v6  ;;  %v5637_v42 = vld [vmem:[#allocation34_spill] sm:$0xff] }
 0x1b6   : > { %v1910_v30 = vpop.f32.mrf.mxu2  ;;  %v1943_v51 = vpop.f32.mrf.mxu3  ;;  %v4826_v17 = vadd.f32 %v1941_v28, %v4668_v23  ;;  %v809_v28 = vmul.f32 %v4738_v56, %v4673_v52  ;;  %vm3250_vm15 = vmpackc.low %vm1083_vm13, %vm1079_vm7  ;;  %v5634_v52 = vld [vmem:[#allocation13_spill] sm:$0xff]  ;;  %v5635_v56 = vld [vmem:[#allocation14_spill] sm:$0xff]  ;;  %vm943_vm10 = vcmp.eq.s32.totalorder %v5637_v42, %v4611_v6 }
 0x1b7   : > { %v1844_v9 = vpop.f32.mrf.mxu0  ;;  %v1877_v24 = vpop.f32.mrf.mxu1  ;;  %3251 = vmatpush.bf16.msk.msrb.mxu2 %vm3250_vm15, %v5479_v12  ;;  %vm1071_vm9 = vcmp.eq.s32.totalorder %v5634_v52, %v4611_v6  ;;  %vm1075_vm7 = vcmp.eq.s32.totalorder %v5635_v56, %v4611_v6  ;;  %vm3218_vm13 = vmpackc.low %vm5636_vm11, %vm951_vm5  ;;  %vm1135_vm15 = vcmp.eq.s32.totalorder %v5575_v38, %v4611_v6  ;;  %v5638_v23 = vld [vmem:[#allocation35_spill] sm:$0xff]  ;;  %v2352_v38 = vadd.f32 %v4741_v26, %v1931_v20 }
 0x1b8   : > { %v1878_v57 = vadd.f32 %v1877_v24, %v1844_v9  ;;  %v2400_v9 = vperm.slane %v2392_v53, 0  ;;  %v2426_v24 = vperm.slane %v4848_v45, 0  ;;  %v2476_v53 = vperm.slane %v4850_v63, 0  ;;  %3219 = vmatpush.bf16.msk.msrb.mxu0 %vm3218_vm13, %v5479_v12  ;;  %vm3252_vm12 = vmpackc.low %vm1075_vm7, %vm1071_vm9 }
 0x1b9   : > { %v811_v55 = vmul.f32 %v809_v28, %v4743_v18  ;;  %vm3268_vm11 = vmpackc.low %vm1139_vm3, %vm1135_vm15  ;;  %v817_v50 = vmul.f32 %v809_v28, %v4736_v2 }
 0x1ba   : > { %2097 = vmatmul.bf16.gmra.mxu0 %v4281_v61  ;;  %v1911_v0 = vadd.f32 %v1910_v30, %v1878_v57  ;;  %2130 = vmatmul.bf16.gmra.mxu1 %v5574_v25  ;;  %v5631_v30 = vld [vmem:[#allocation32_spill] sm:$0xff]  ;;  %v2434_v18 = vperm.slane %v2426_v24, 0  ;;  %v2484_v54 = vperm.slane %v2476_v53, 0  ;;  %vm5641_vm13 = vmand %vm4686_vm14, %vm4745_vm0  ;;  %vm1131_vm14 = vcmp.eq.s32.totalorder %v5586_v3, %v4611_v6 }
 0x1bb   : > { %vm1015_vm1 = vcmp.eq.s32.totalorder %v5631_v30, %v4611_v6  ;;  %v5640_v30 = vld [vmem:[#allocation51_spill] sm:$0xff]  ;;  %3253 = vmatpush.bf16.msk.msrb.mxu2 %vm3252_vm12, %v5479_v12  ;;  %3269 = vmatpush.bf16.msk.msrb.mxu3 %vm3268_vm11, %v5479_v12  ;;  %v4992_v26 = vsel %vm4872_vm6, %v811_v55, 0.0  ;;  %vm5001_vm15 = vmand %vm5641_vm13, %vm4732_vm8  ;;  %vm1067_vm6 = vcmp.eq.s32.totalorder %v5645_v27, %v4611_v6  ;;  %vm935_vm8 = vcmp.eq.s32.totalorder %v5587_v62, %v4611_v6  ;;  %v5648_v53 = vld [vmem:[#allocation52_spill] sm:$0xff] }
 0x1bc   : > { %v1944_v10 = vadd.f32 %v1943_v51, %v1911_v0  ;;  %vm3234_vm5 = vmpackc.low %vm1019_vm2, %vm1015_vm1  ;;  %vm1007_vm1 = vcmp.eq.s32.totalorder %v5639_v46, %v4611_v6  ;;  %vm1011_vm2 = vcmp.eq.s32.totalorder %v5580_v33, %v4611_v6  ;;  %v5644_v33 = vld [vmem:[#allocation17_spill] sm:$0xff]  ;;  %vm939_vm0 = vcmp.eq.s32.totalorder %v5588_v40, %v4611_v6 }
 0x1bd   : > { %3235 = vmatpush.bf16.msk.msrb.mxu1 %vm3234_vm5, %v5479_v12  ;;  %vm3236_vm7 = vmpackc.low %vm1011_vm2, %vm1007_vm1  ;;  %vm1063_vm3 = vcmp.eq.s32.totalorder %v5644_v33, %v4611_v6  ;;  %vm999_vm12 = vcmp.eq.s32.totalorder %v5589_v41, %v4611_v6  ;;  %v2594_v62 = vperm.slane %v4992_v26, 0  ;;  %v5028_v52 = vsel %vm5001_vm15, %v817_v50, 0.0  ;;  %v5649_v55 = vld [vmem:[#allocation53_spill] sm:$0xff] }
 0x1be   : > { %v1912_v15 = vpop.f32.mrf.mxu2  ;;  %v1945_v57 = vpop.f32.mrf.mxu3  ;;  %v4916_v51 = vadd.f32 %v4705_v43, %v1944_v10  ;;  %v4932_v43 = vsel %vm4842_vm4, %v795_v39, 0.0  ;;  %vm947_vm4 = vcmp.eq.s32.totalorder %v5638_v23, %v4611_v6  ;;  %vm3254_vm5 = vmpackc.low %vm1067_vm6, %vm1063_vm3 }
 0x1bf   : > { %v1846_v19 = vpop.f32.mrf.mxu0  ;;  %v1879_v0 = vpop.f32.mrf.mxu1  ;;  %v2510_v10 = vperm.slane %v4932_v43, 0  ;;  %vm3220_vm9 = vmpackc.low %vm947_vm4, %vm943_vm10  ;;  %vm1127_vm10 = vcmp.eq.s32.totalorder %v5646_v1, %v4611_v6  ;;  %3255 = vmatpush.bf16.msk.msrb.mxu2 %vm3254_vm5, %v5479_v12 }
 0x1c0   : > { %v1880_v39 = vadd.f32 %v1879_v0, %v1846_v19  ;;  %v2404_v37 = vmul.f32 %v2400_v9, %v4916_v51  ;;  %3221 = vmatpush.bf16.msk.msrb.mxu0 %vm3220_vm9, %v5479_v12  ;;  %v2438_v5 = vmul.f32 %v2434_v18, %v4916_v51  ;;  %vm3270_vm4 = vmpackc.low %vm1131_vm14, %vm1127_vm10  ;;  %v5647_v9 = vld [vmem:[#allocation41_spill] sm:$0xff]  ;;  %v2386_v41 = vmul.f32 %v2382_v32, %v4916_v51  ;;  %v5651_v32 = vld [vmem:[#allocation22_spill] sm:$0xff] }
 0x1c1   : > { %3237 = vmatpush.bf16.msk.msrb.mxu1 %vm3236_vm7, %v5479_v12  ;;  %vm1003_vm1 = vcmp.eq.s32.totalorder %v5647_v9, %v4611_v6  ;;  %v2518_v24 = vperm.slane %v2510_v10, 0  ;;  %3271 = vmatpush.bf16.msk.msrb.mxu3 %vm3270_vm4, %v5479_v12  ;;  %vm3222_vm2 = vmpackc.low %vm939_vm0, %vm935_vm8  ;;  %vm5650_vm9 = vcmask 1041408   ;;  %vm1055_vm7 = vcmp.eq.s32.totalorder %v5651_v32, %v4611_v6  ;;  %v5658_v32 = vld [vmem:[#allocation59_spill] sm:$0xff] }
 0x1c2   : > { %v1913_v49 = vadd.f32 %v1912_v15, %v1880_v39  ;;  %v2412_v3 = vrot.slane %v2404_v37, 3  ;;  %vm3238_vm11 = vmpackc.low %vm1003_vm1, %vm999_vm12  ;;  %v2454_v0 = vrot.slane %v2438_v5, 6  ;;  %v2552_v39 = vperm.slane %v2544_v29, 0 }
 0x1c3   : > { %2168 = vmatmul.bf16.gmra.mxu2 %v5581_v48  ;;  %2201 = vmatmul.bf16.gmra.mxu3 %v5640_v30  ;;  %vm5655_vm10 = vcmask 1040384   ;;  %vm931_vm8 = vcmp.eq.s32.totalorder %v5594_v59, %v4611_v6  ;;  %vm991_vm0 = vcmp.eq.s32.totalorder %v5595_v13, %v4611_v6  ;;  %vm995_vm4 = vcmp.eq.s32.totalorder %v5596_v35, %v4611_v6 }
 0x1c4   : > { %v1946_v21 = vadd.f32 %v1945_v57, %v1913_v49  ;;  %3223 = vmatpush.bf16.msk.msrb.mxu0 %vm3222_vm2, %v5479_v12  ;;  %v2420_v46 = vadd.f32 %v2412_v3, %v2386_v41  ;;  %v2628_v49 = vperm.slane %v5028_v52, 0  ;;  %vm3240_vm1 = vmpackc.low %vm995_vm4, %vm991_vm0 }
 0x1c5   : > { %3239 = vmatpush.bf16.msk.msrb.mxu1 %vm3238_vm11, %v5479_v12  ;;  %vm5662_vm2 = vmmov %vm5650_vm9 }
 0x1c6   : > { %v1915_v15 = vpop.f32.mrf.mxu2  ;;  %v1948_v28 = vpop.f32.mrf.mxu3  ;;  %v2364_v44 = vadd.f32 %v2352_v38, %v1946_v21  ;;  %v5653_v21 = vld [vmem:[#allocation24_spill] sm:$0xff]  ;;  %v2636_v5 = vperm.slane %v2628_v49, 0  ;;  %vm5663_vm11 = vmmov %vm5655_vm10 }
 0x1c7   : > { %v1849_v36 = vpop.f32.mrf.mxu0  ;;  %v1882_v57 = vpop.f32.mrf.mxu1  ;;  %vm1119_vm3 = vcmp.eq.s32.totalorder %v5653_v21, %v4611_v6  ;;  %v5660_v21 = vld [vmem:[#allocation47_spill] sm:$0xff] }
 0x1c8   : > { %v2442_v40 = vmul.f32 %v2434_v18, %v2364_v44  ;;  %v1883_v56 = vadd.f32 %v1882_v57, %v1849_v36  ;;  %v2488_v19 = vmul.f32 %v2484_v54, %v2364_v44  ;;  %v2522_v20 = vmul.f32 %v2518_v24, %v2364_v44  ;;  %v5652_v54 = vld [vmem:[#allocation23_spill] sm:$0xff] }
 0x1c9   : > { %v2602_v18 = vperm.slane %v2594_v62, 0  ;;  %vm1059_vm13 = vcmp.eq.s32.totalorder %v5652_v54, %v4611_v6  ;;  %v2556_v33 = vmul.f32 %v2552_v39, %v2364_v44  ;;  %3241 = vmatpush.bf16.msk.msrb.mxu1 %vm3240_vm1, %v5479_v12 }
 0x1ca   : > { %2102 = vmatmul.bf16.gmra.mxu0 %v5648_v53  ;;  %v2455_v42 = vrot.slane %v2442_v40, 6  ;;  %v1916_v23 = vadd.f32 %v1915_v15, %v1883_v56  ;;  %2135 = vmatmul.bf16.gmra.mxu1 %v5649_v55  ;;  %v2496_v50 = vrot.slane %v2488_v19, 1  ;;  %vm3256_vm15 = vmpackc.low %vm1059_vm13, %vm1055_vm7  ;;  %v5654_v15 = vld [vmem:[#allocation25_spill] sm:$0xff]  ;;  %v2530_v1 = vrot.slane %v2522_v20, 4 }
 0x1cb   : > { %vm1123_vm6 = vcmp.eq.s32.totalorder %v5654_v15, %v4611_v6  ;;  %3257 = vmatpush.bf16.msk.msrb.mxu2 %vm3256_vm15, %v5479_v12  ;;  %v2572_v57 = vrot.slane %v2556_v33, 7  ;;  %v5661_v15 = vld [vmem:[#allocation48_spill] sm:$0xff] }
 0x1cc   : > { %v2456_v10 = vsel %vm5650_vm9, %v2454_v0, %v2455_v42  ;;  %v1949_v38 = vadd.f32 %v1948_v28, %v1916_v23  ;;  %vm3272_vm5 = vmpackc.low %vm1123_vm6, %vm1119_vm3  ;;  %v5656_v42 = vld [vmem:[#allocation4_spill] sm:$0xff]  ;;  %vm5664_vm9 = vcmask 1043456  }
 0x1cd   : > { %v2470_v37 = vadd.f32 %v2456_v10, %v2420_v46  ;;  %3273 = vmatpush.bf16.msk.msrb.mxu3 %vm3272_vm5, %v5479_v12  ;;  %vm927_vm14 = vcmp.eq.s32.totalorder %v5656_v42, %v4611_v6 }
 0x1ce   : > { %v1917_v51 = vpop.f32.mrf.mxu2  ;;  %v1950_v29 = vpop.f32.mrf.mxu3  ;;  %v2368_v2 = vadd.f32 %v4826_v17, %v1949_v38  ;;  %vm3224_vm12 = vmpackc.low %vm931_vm8, %vm927_vm14 }
 0x1cf   : > { %v1851_v27 = vpop.f32.mrf.mxu0  ;;  %v2504_v28 = vadd.f32 %v2496_v50, %v2470_v37  ;;  %v1884_v36 = vpop.f32.mrf.mxu1  ;;  %3225 = vmatpush.bf16.msk.msrb.mxu0 %vm3224_vm12, %v5479_v12  ;;  %v5659_v12 = vld [vmem:[#allocation60_spill] sm:$0xff] }
 0x1d0   : > { %v2560_v9 = vmul.f32 %v2552_v39, %v2368_v2  ;;  %v2606_v24 = vmul.f32 %v2602_v18, %v2368_v2  ;;  %v2640_v17 = vmul.f32 %v2636_v5, %v2368_v2  ;;  %v5657_v18 = vld [vmem:[#allocation57_spill] sm:$0xff] }
 0x1d1   : > { %v2538_v3 = vadd.f32 %v2530_v1, %v2504_v28 }
 0x1d2   : > { %v2573_v62 = vrot.slane %v2560_v9, 7  ;;  %v2614_v41 = vrot.slane %v2606_v24, 2  ;;  %v2648_v39 = vrot.slane %v2640_v17, 5 }
 0x1d3   : > { %2173 = vmatmul.bf16.gmra.mxu2 %v5591_v14  ;;  %2206 = vmatmul.bf16.gmra.mxu3 %v5592_v47 }
 0x1d4   : > { %v2574_v44 = vsel %vm5655_vm10, %v2572_v57, %v2573_v62 }
 0x1d5   : > { %v2588_v56 = vadd.f32 %v2574_v44, %v2538_v3 }
 0x1d6   : > { %v2027_v40 = vpop.f32.mrf.mxu2  ;;  %v2060_v19 = vpop.f32.mrf.mxu3 }
 0x1d7   : > { %v1961_v0 = vpop.f32.mrf.mxu0  ;;  %v2622_v23 = vadd.f32 %v2614_v41, %v2588_v56  ;;  %v1994_v46 = vpop.f32.mrf.mxu1 }
 0x1d8   : > { %v1995_v24 = vadd.f32 %v1994_v46, %v1961_v0 }
 0x1d9   : > { %v5060_v20 = vadd.f32 %v2648_v39, %v2622_v23 }
 0x1da   : > { %2107 = vmatmul.bf16.gmra.mxu0 %v5657_v18  ;;  %2140 = vmatmul.bf16.gmra.mxu1 %v4408_v7  ;;  %v2028_v56 = vadd.f32 %v2027_v40, %v1995_v24  ;;  %v2427_v40 = vperm.slane %v4848_v45, 4 }
 0x1de   : > { %v2029_v59 = vpop.f32.mrf.mxu2  ;;  %v5065_v13 = vpop.f32.mrf.mxu3 }
 0x1df   : > { %v1963_v49 = vpop.f32.mrf.mxu0  ;;  %v1996_v6 = vpop.f32.mrf.mxu1 }
 0x1e3   : > { %2178 = vmatmul.bf16.gmra.mxu2 %v4416_v58  ;;  %2211 = vmatmul.bf16.gmra.mxu3 %v4418_v34 }
 0x1e6   : > { %v5069_v35 = vpop.f32.mrf.mxu2  ;;  %v5071_v10 = vpop.f32.mrf.mxu3 }
 0x1e7   : > { %v1966_v38 = vpop.f32.mrf.mxu0  ;;  %v1999_v51 = vpop.f32.mrf.mxu1 }
 0x1ea   : > { %2112 = vmatmul.bf16.gmra.mxu0 %v5658_v32  ;;  %2145 = vmatmul.bf16.gmra.mxu1 %v5659_v12 }
 0x1ee   : > { %v2034_v54 = vpop.f32.mrf.mxu2  ;;  %v2067_v37 = vpop.f32.mrf.mxu3 }
 0x1ef   : > { %v1968_v50 = vpop.f32.mrf.mxu0  ;;  %v2001_v29 = vpop.f32.mrf.mxu1 }
 0x1f0   : > { %v2002_v3 = vadd.f32 %v2001_v29, %v1968_v50  ;;  %v2061_v50 = vadd.f32 %v2060_v19, %v2028_v56 }
 0x1f2   : > { %v2035_v62 = vadd.f32 %v2034_v54, %v2002_v3 }
 0x1f3   : > { %2290 = vmatmul.bf16.vlgmr.msrb.gmra.mxu2 %v5660_v21  ;;  %2323 = vmatmul.bf16.vlgmr.msrb.gmra.mxu3 %v5661_v15 }
 0x1f4   : > { %v2068_v23 = vadd.f32 %v2067_v37, %v2035_v62 }
 0x1f6   : > { %v2037_v2 = vpop.f32.mrf.mxu2  ;;  %v2070_v33 = vpop.f32.mrf.mxu3  ;;  %v2349_v54 = vadd.f32 %v2068_v23, %v2061_v50 }
 0x1f7   : > { %v1971_v27 = vpop.f32.mrf.mxu0  ;;  %v2004_v28 = vpop.f32.mrf.mxu1 }
 0x1f8   : > { %v2005_v42 = vadd.f32 %v2004_v28, %v1971_v27 }
 0x1fa   : > { %2224 = vmatmul.bf16.vlgmr.msrb.gmra.mxu0 %v5566_v60  ;;  %2257 = vmatmul.bf16.vlgmr.msrb.gmra.mxu1 %v5569_v4  ;;  %v1997_v4 = vadd.f32 %v1996_v6, %v1963_v49 }
 0x1fc   : > { %v2030_v21 = vadd.f32 %v2029_v59, %v1997_v4  ;;  %v2595_v4 = vperm.slane %v4992_v26, 4 }
 0x1fe   : > { %v2039_v1 = vpop.f32.mrf.mxu2  ;;  %v2072_v5 = vpop.f32.mrf.mxu3  ;;  %v2063_v19 = vadd.f32 %v5065_v13, %v2030_v21  ;;  %v2545_v13 = vperm.slane %v4936_v22, 4  ;;  %v2603_v26 = vperm.slane %v2595_v4, 0 }
 0x1ff   : > { %v1973_v36 = vpop.f32.mrf.mxu0  ;;  %v2006_v9 = vpop.f32.mrf.mxu1 }
 0x200   : > { %v2007_v6 = vadd.f32 %v2006_v9, %v1973_v36 }
 0x203   : > { %2295 = vmatmul.bf16.gmra.mxu2 %v4246_v11  ;;  %2328 = vmatmul.bf16.gmra.mxu3 %v4252_v31  ;;  %v2393_v11 = vperm.slane %v4811_v16, 4  ;;  %v2038_v31 = vadd.f32 %v2037_v2, %v2005_v42  ;;  %v2477_v16 = vperm.slane %v4850_v63, 4  ;;  %v2435_v2 = vperm.slane %v2427_v40, 0 }
 0x205   : > { %v2401_v37 = vperm.slane %v2393_v11, 0  ;;  %v2071_v49 = vadd.f32 %v2070_v33, %v2038_v31  ;;  %v2485_v9 = vperm.slane %v2477_v16, 0  ;;  %v2553_v11 = vperm.slane %v2545_v13, 0 }
 0x206   : > { %v2042_v57 = vpop.f32.mrf.mxu2  ;;  %v2075_v17 = vpop.f32.mrf.mxu3  ;;  %v2629_v31 = vperm.slane %v5028_v52, 4 }
 0x207   : > { %v1976_v44 = vpop.f32.mrf.mxu0  ;;  %v2009_v41 = vpop.f32.mrf.mxu1 }
 0x208   : > { %v2010_v60 = vadd.f32 %v2009_v41, %v1976_v44 }
 0x20a   : > { %2229 = vmatmul.bf16.gmra.mxu0 %v4281_v61  ;;  %v2043_v39 = vadd.f32 %v2042_v57, %v2010_v60  ;;  %2262 = vmatmul.bf16.gmra.mxu1 %v5574_v25  ;;  %v2000_v61 = vadd.f32 %v1999_v51, %v1966_v38  ;;  %v2375_v25 = vperm.slane %v4807_v8, 4  ;;  %v2353_v57 = vadd.f32 %v2071_v49, %v2063_v19 }
 0x20b   : > { %v2040_v38 = vadd.f32 %v2039_v1, %v2007_v6  ;;  %v2511_v8 = vperm.slane %v4932_v43, 4 }
 0x20c   : > { %v2076_v0 = vadd.f32 %v2075_v17, %v2043_v39  ;;  %v2033_v24 = vadd.f32 %v5069_v35, %v2000_v61  ;;  %v2383_v36 = vperm.slane %v2375_v25, 0 }
 0x20d   : > { %v2073_v41 = vadd.f32 %v2072_v5, %v2040_v38  ;;  %v2519_v23 = vperm.slane %v2511_v8, 0 }
 0x20e   : > { %v2044_v46 = vpop.f32.mrf.mxu2  ;;  %v2077_v29 = vpop.f32.mrf.mxu3  ;;  %v2361_v27 = vadd.f32 %v2349_v54, %v2076_v0 }
 0x20f   : > { %v1978_v15 = vpop.f32.mrf.mxu0  ;;  %v2011_v28 = vpop.f32.mrf.mxu1 }
 0x210   : > { %v2012_v3 = vadd.f32 %v2011_v28, %v1978_v15  ;;  %v2405_v45 = vmul.f32 %v2401_v37, %v2361_v27  ;;  %v2439_v62 = vmul.f32 %v2435_v2, %v2361_v27  ;;  %v2387_v1 = vmul.f32 %v2383_v36, %v2361_v27 }
 0x211   : > { %v2637_v28 = vperm.slane %v2629_v31, 0  ;;  %v5667_v31 = vld [vmem:[#allocation58_spill] sm:$0xff] }
 0x212   : > { %v2045_v59 = vadd.f32 %v2044_v46, %v2012_v3  ;;  %v2413_v44 = vrot.slane %v2405_v45, 3  ;;  %v2457_v43 = vrot.slane %v2439_v62, 6  ;;  %vm688_vm7 = vcmp.ge.s32.totalorder %v5667_v31, 0 }
 0x213   : > { %2300 = vmatmul.bf16.gmra.mxu2 %v5581_v48  ;;  %2333 = vmatmul.bf16.gmra.mxu3 %v5640_v30  ;;  %v2066_v30 = vadd.f32 %v5071_v10, %v2033_v24  ;;  %vm690_vm13 = vcmp.le.s32.totalorder %v5667_v31, 7  ;;  %vm694_vm3 = vcmp.ge.s32.totalorder %v5667_v31, 4294967295  ;;  %vm696_vm6 = vcmp.le.s32.totalorder %v5667_v31, 6 }
 0x214   : > { %v2078_v51 = vadd.f32 %v2077_v29, %v2045_v59  ;;  %v2421_v22 = vadd.f32 %v2413_v44, %v2387_v1  ;;  %vm5119_vm15 = vmand %vm688_vm7, %vm690_vm13 }
 0x215   : > { %v2357_v10 = vadd.f32 %v2073_v41, %v2066_v30  ;;  %vm5128_vm5 = vmand %vm694_vm3, %vm696_vm6 }
 0x216   : > { %v2047_v33 = vpop.f32.mrf.mxu2  ;;  %v2080_v63 = vpop.f32.mrf.mxu3  ;;  %v2365_v48 = vadd.f32 %v2353_v57, %v2078_v51 }
 0x217   : > { %v1981_v17 = vpop.f32.mrf.mxu0  ;;  %v2014_v56 = vpop.f32.mrf.mxu1 }
 0x218   : > { %v2443_v35 = vmul.f32 %v2435_v2, %v2365_v48  ;;  %v2015_v42 = vadd.f32 %v2014_v56, %v1981_v17  ;;  %v2489_v60 = vmul.f32 %v2485_v9, %v2365_v48  ;;  %v2523_v21 = vmul.f32 %v2519_v23, %v2365_v48  ;;  %v3331_v17 = vld [vmem:[%s3433_s22] sm:$0x77] }
 0x219   : > { %v2557_v15 = vmul.f32 %v2553_v11, %v2365_v48 }
 0x21a   : > { %2234 = vmatmul.bf16.gmra.mxu0 %v5648_v53  ;;  %v2458_v39 = vrot.slane %v2443_v35, 6  ;;  %v2048_v50 = vadd.f32 %v2047_v33, %v2015_v42  ;;  %2267 = vmatmul.bf16.gmra.mxu1 %v5649_v55  ;;  %v2497_v29 = vrot.slane %v2489_v60, 1  ;;  %v2531_v49 = vrot.slane %v2523_v21, 4 }
 0x21b   : > { %v2575_v52 = vrot.slane %v2557_v15, 7 }
 0x21c   : > { %v2459_v5 = vsel %vm5662_vm2, %v2457_v43, %v2458_v39  ;;  %v2081_v0 = vadd.f32 %v2080_v63, %v2048_v50 }
 0x21d   : > { %v2471_v54 = vadd.f32 %v2459_v5, %v2421_v22 }
 0x21e   : > { %v2049_v46 = vpop.f32.mrf.mxu2  ;;  %v2082_v40 = vpop.f32.mrf.mxu3  ;;  %v2369_v53 = vadd.f32 %v2357_v10, %v2081_v0 }
 0x21f   : > { %v1983_v27 = vpop.f32.mrf.mxu0  ;;  %v2505_v37 = vadd.f32 %v2497_v29, %v2471_v54  ;;  %v2016_v61 = vpop.f32.mrf.mxu1  ;;  %v5672_v40 = vmov 0  }
 0x220   : > { %v2561_v55 = vmul.f32 %v2553_v11, %v2369_v53  ;;  %v2607_v6 = vmul.f32 %v2603_v26, %v2369_v53  ;;  %v2641_v16 = vmul.f32 %v2637_v28, %v2369_v53  ;;  %v5665_v11 = vld [vmem:[#allocation56_spill] sm:$0xff]  ;;  %v702_v53 = vsel %vm5119_vm15, 1, %v5672_v40 }
 0x221   : > { %v2539_v25 = vadd.f32 %v2531_v49, %v2505_v37  ;;  %v5666_v22 = vfloor.f32 %v5665_v11  ;;  %v2751_v28 = vrot.slane %v702_v53, 9  ;;  %v740_v61 = vsel %vm5128_vm5, 1, %v5672_v40 }
 0x222   : > { %v2576_v3 = vrot.slane %v2561_v55, 7  ;;  %v2615_v45 = vrot.slane %v2607_v6, 2  ;;  %v2649_v51 = vrot.slane %v2641_v16, 5  ;;  %v2755_v16 = vrot.slane %v740_v61, 10 }
 0x223   : > { %2305 = vmatmul.bf16.gmra.mxu2 %v5591_v14  ;;  %2338 = vmatmul.bf16.gmra.mxu3 %v5592_v47  ;;  %vm5142_vm10 = vcmp.ne.s32.totalorder %v2751_v28, 0 }
 0x224   : > { %v2577_v19 = vsel %vm5663_vm11, %v2575_v52, %v2576_v3  ;;  %vm710_vm14 = vmand %vm5119_vm15, %vm5142_vm10  ;;  %vm5150_vm8 = vcmp.ne.s32.totalorder %v2755_v16, 0 }
 0x225   : > { %v2589_v59 = vadd.f32 %v2577_v19, %v2539_v25  ;;  %vm748_vm4 = vmand %vm710_vm14, %vm5150_vm8 }
 0x226   : > { %v2159_v2 = vpop.f32.mrf.mxu2  ;;  %v2192_v24 = vpop.f32.mrf.mxu3 }
 0x227   : > { %v2093_v57 = vpop.f32.mrf.mxu0  ;;  %v2623_v38 = vadd.f32 %v2615_v45, %v2589_v59  ;;  %v2126_v33 = vpop.f32.mrf.mxu1  ;;  %v2757_v45 = vrot.slane %v740_v61, 9 }
 0x228   : > { %v2127_v36 = vadd.f32 %v2126_v33, %v2093_v57 }
 0x229   : > { %v2657_v14 = vadd.f32 %v2649_v51, %v2623_v38  ;;  %vm5154_vm0 = vcmp.ne.s32.totalorder %v2757_v45, 0 }
 0x22a   : > { %2239 = vmatmul.bf16.gmra.mxu0 %v5657_v18  ;;  %v2160_v9 = vadd.f32 %v2159_v2, %v2127_v36  ;;  %2272 = vmatmul.bf16.gmra.mxu1 %v4408_v7  ;;  %vm768_vm1 = vmand %vm5119_vm15, %vm5154_vm0 }
 0x22b   : > { %v2664_v47 = vrot.slane %v2657_v14, 4  ;;  %v2753_v14 = vrot.slane %v702_v53, 10  ;;  %vm784_vm7 = vmand %vm768_vm1, %vm5150_vm8 }
 0x22c   : > { %v2193_v8 = vadd.f32 %v2192_v24, %v2160_v9  ;;  %vm806_vm3 = vmand %vm5128_vm5, %vm5154_vm0 }
 0x22d   : > { %v2666_v62 = vsel %vm5664_vm9, %v5060_v20, %v2664_v47  ;;  %vm5165_vm12 = vcmp.ne.s32.totalorder %v2753_v14, 0  ;;  %vm790_vm9 = vmand %vm5128_vm5, %vm5142_vm10  ;;  %vm5681_vm5 = vcmask 1041408  }
 0x22e   : > { %v2161_v63 = vpop.f32.mrf.mxu2  ;;  %v2194_v48 = vpop.f32.mrf.mxu3  ;;  %v2670_v13 = vadd.f32 %v3331_v17, %v2666_v62  ;;  %vm770_vm2 = vmand %vm768_vm1, %vm5165_vm12 }
 0x22f   : > { %v2095_v44 = vpop.f32.mrf.mxu0  ;;  %v2128_v56 = vpop.f32.mrf.mxu1  ;;  %vm718_vm11 = vmand %vm710_vm14, %vm5165_vm12  ;;  %vm5682_vm14 = vcmask 1040384  }
 0x230   : > { %2672 = vst [vmem:[%s3433_s22] sm:$0x77] %v2670_v13  ;;  %v2129_v30 = vadd.f32 %v2128_v56, %v2095_v44  ;;  %vm792_vm13 = vmand %vm790_vm9, %vm5165_vm12 }
 0x231   : > { %vm800_vm15 = vmand %vm790_vm9, %vm5150_vm8 }
 0x232   : > { %v2162_v41 = vadd.f32 %v2161_v63, %v2129_v30  ;;  %vm808_vm6 = vmand %vm806_vm3, %vm5165_vm12 }
 0x233   : > { %2310 = vmatmul.bf16.gmra.mxu2 %v4416_v58  ;;  %2343 = vmatmul.bf16.gmra.mxu3 %v4418_v34  ;;  %v5115_v34 = vsub.f32 %v5665_v11, %v5666_v22  ;;  %vm816_vm10 = vmand %vm806_vm3, %vm5150_vm8 }
 0x234   : > { %v2195_v18 = vadd.f32 %v2194_v48, %v2162_v41  ;;  %vm5683_vm8 = vmmov %vm5681_vm5 }
 0x235   : > { %v700_v0 = vsub.f32 1.0, %v5115_v34  ;;  %v773_v55 = vrot.slane %v5115_v34, 5  ;;  %v753_v3 = vrot.slane %v5115_v34, 6  ;;  %vm5684_vm0 = vmmov %vm5682_vm14 }
 0x236   : > { %v2164_v7 = vpop.f32.mrf.mxu2  ;;  %v2197_v35 = vpop.f32.mrf.mxu3 }
 0x237   : > { %v2098_v42 = vpop.f32.mrf.mxu0  ;;  %v2131_v1 = vpop.f32.mrf.mxu1  ;;  %v723_v27 = vrot.slane %v700_v0, 5  ;;  %v731_v57 = vrot.slane %v700_v0, 6  ;;  %v774_v38 = vrot.slane %v773_v55, 4  ;;  %v754_v36 = vrot.slane %v753_v3, 4 }
 0x238   : > { %v2132_v60 = vadd.f32 %v2131_v1, %v2098_v42 }
 0x239   : > { %v724_v52 = vrot.slane %v723_v27, 4  ;;  %v732_v63 = vrot.slane %v731_v57, 4  ;;  %v778_v62 = vmul.f32 %v774_v38, %v700_v0 }
 0x23a   : > { %2244 = vmatmul.bf16.gmra.mxu0 %v5658_v32  ;;  %v2165_v20 = vadd.f32 %v2164_v7, %v2132_v60  ;;  %2277 = vmatmul.bf16.gmra.mxu1 %v5659_v12  ;;  %v810_v12 = vmul.f32 %v774_v38, %v5115_v34 }
 0x23b   : > { %v728_v33 = vmul.f32 %v724_v52, %v700_v0  ;;  %v794_v1 = vmul.f32 %v724_v52, %v5115_v34 }
 0x23c   : > { %v2198_v23 = vadd.f32 %v2197_v35, %v2165_v20  ;;  %v812_v27 = vmul.f32 %v810_v12, %v732_v63 }
 0x23d   : > { %v758_v13 = vmul.f32 %v754_v36, %v728_v33  ;;  %v736_v60 = vmul.f32 %v732_v63, %v728_v33 }
 0x23e   : > { %v2166_v4 = vpop.f32.mrf.mxu2  ;;  %v2199_v43 = vpop.f32.mrf.mxu3  ;;  %v5253_v45 = vsel %vm808_vm6, %v812_v27, 0.0 }
 0x23f   : > { %v2100_v39 = vpop.f32.mrf.mxu0  ;;  %v2133_v50 = vpop.f32.mrf.mxu1  ;;  %v5175_v35 = vsel %vm748_vm4, %v758_v13, 0.0  ;;  %v5206_v11 = vsel %vm718_vm11, %v736_v60, 0.0  ;;  %vm5685_vm4 = vcmask 1043456  }
 0x240   : > { %v2134_v58 = vadd.f32 %v2133_v50, %v2100_v39  ;;  %v2376_v34 = vperm.slane %v5206_v11, 0 }
 0x242   : > { %v2167_v10 = vadd.f32 %v2166_v4, %v2134_v58  ;;  %v796_v58 = vmul.f32 %v794_v1, %v732_v63  ;;  %v2384_v52 = vperm.slane %v2376_v34, 0 }
 0x244   : > { %v2200_v32 = vadd.f32 %v2199_v43, %v2167_v10  ;;  %v2394_v43 = vperm.slane %v5175_v35, 0 }
 0x246   : > { %v2169_v5 = vpop.f32.mrf.mxu2  ;;  %v2202_v46 = vpop.f32.mrf.mxu3  ;;  %v5126_v54 = vadd.f32 %v2200_v32, %v2193_v8  ;;  %v2402_v0 = vperm.slane %v2394_v43, 0 }
 0x247   : > { %v2103_v29 = vpop.f32.mrf.mxu0  ;;  %v2136_v21 = vpop.f32.mrf.mxu1 }
 0x248   : > { %v2137_v15 = vadd.f32 %v2136_v21, %v2103_v29  ;;  %v802_v29 = vmul.f32 %v794_v1, %v754_v36  ;;  %v5227_v21 = vsel %vm792_vm13, %v796_v58, 0.0 }
 0x249   : > { %v2512_v28 = vperm.slane %v5227_v21, 0 }
 0x24a   : > { %v2170_v37 = vadd.f32 %v2169_v5, %v2137_v15  ;;  %v5236_v61 = vsel %vm800_vm15, %v802_v29, 0.0 }
 0x24b   : > { %v2520_v38 = vperm.slane %v2512_v28, 0 }
 0x24c   : > { %v2203_v49 = vadd.f32 %v2202_v46, %v2170_v37 }
 0x24e   : > { %v2171_v6 = vpop.f32.mrf.mxu2  ;;  %v2204_v25 = vpop.f32.mrf.mxu3  ;;  %v5140_v19 = vadd.f32 %v2203_v49, %v2195_v18  ;;  %v780_v18 = vmul.f32 %v778_v62, %v732_v63 }
 0x24f   : > { %v2105_v2 = vpop.f32.mrf.mxu0  ;;  %v2138_v24 = vpop.f32.mrf.mxu1 }
 0x250   : > { %v2139_v51 = vadd.f32 %v2138_v24, %v2105_v2  ;;  %v5196_v4 = vsel %vm770_vm2, %v780_v18, 0.0  ;;  %v2546_v24 = vperm.slane %v5236_v61, 0 }
 0x251   : > { %v2428_v10 = vperm.slane %v5196_v4, 0 }
 0x252   : > { %v2172_v47 = vadd.f32 %v2171_v6, %v2139_v51  ;;  %v818_v6 = vmul.f32 %v810_v12, %v754_v36 }
 0x253   : > { %v2436_v53 = vperm.slane %v2428_v10, 0 }
 0x254   : > { %v2205_v48 = vadd.f32 %v2204_v25, %v2172_v47  ;;  %v2596_v47 = vperm.slane %v5253_v45, 0 }
 0x256   : > { %v2174_v17 = vpop.f32.mrf.mxu2  ;;  %v2207_v44 = vpop.f32.mrf.mxu3  ;;  %v5173_v30 = vadd.f32 %v2205_v48, %v2198_v23  ;;  %v786_v23 = vmul.f32 %v778_v62, %v754_v36  ;;  %v5256_v36 = vsel %vm816_vm10, %v818_v6, 0.0 }
 0x257   : > { %v2108_v41 = vpop.f32.mrf.mxu0  ;;  %v2141_v7 = vpop.f32.mrf.mxu1  ;;  %v2630_v13 = vperm.slane %v5256_v36, 0 }
 0x258   : > { %v2142_v42 = vadd.f32 %v2141_v7, %v2108_v41  ;;  %v5217_v5 = vsel %vm784_vm7, %v786_v23, 0.0 }
 0x259   : > { %v2478_v40 = vperm.slane %v5217_v5, 0 }
 0x25a   : > { %v2175_v20 = vadd.f32 %v2174_v17, %v2142_v42  ;;  %v2604_v42 = vperm.slane %v2596_v47, 0 }
 0x25b   : > { %v2486_v3 = vperm.slane %v2478_v40, 0 }
 0x25c   : > { %v2208_v39 = vadd.f32 %v2207_v44, %v2175_v20 }
 0x25e   : > { %v2176_v50 = vpop.f32.mrf.mxu2  ;;  %v2209_v22 = vpop.f32.mrf.mxu3  ;;  %v2362_v31 = vadd.f32 %v5126_v54, %v2208_v39 }
 0x25f   : > { %v2110_v32 = vpop.f32.mrf.mxu0  ;;  %v2143_v46 = vpop.f32.mrf.mxu1 }
 0x260   : > { %v2144_v54 = vadd.f32 %v2143_v46, %v2110_v32  ;;  %v2406_v37 = vmul.f32 %v2402_v0, %v2362_v31  ;;  %v2440_v16 = vmul.f32 %v2436_v53, %v2362_v31  ;;  %v2388_v26 = vmul.f32 %v2384_v52, %v2362_v31 }
 0x262   : > { %v2177_v15 = vadd.f32 %v2176_v50, %v2144_v54  ;;  %v2414_v57 = vrot.slane %v2406_v37, 3  ;;  %v2460_v8 = vrot.slane %v2440_v16, 6  ;;  %v2638_v50 = vperm.slane %v2630_v13, 0 }
 0x264   : > { %v2210_v55 = vadd.f32 %v2209_v22, %v2177_v15  ;;  %v2422_v48 = vadd.f32 %v2414_v57, %v2388_v26 }
 0x266   : > { %v2179_v49 = vpop.f32.mrf.mxu2  ;;  %v2212_v25 = vpop.f32.mrf.mxu3  ;;  %v2366_v2 = vadd.f32 %v5140_v19, %v2210_v55  ;;  %v2554_v19 = vperm.slane %v2546_v24, 0 }
 0x267   : > { %v2113_v59 = vpop.f32.mrf.mxu0  ;;  %v2146_v51 = vpop.f32.mrf.mxu1 }
 0x268   : > { %v2444_v33 = vmul.f32 %v2436_v53, %v2366_v2  ;;  %v2147_v14 = vadd.f32 %v2146_v51, %v2113_v59  ;;  %v2490_v9 = vmul.f32 %v2486_v3, %v2366_v2  ;;  %v2524_v17 = vmul.f32 %v2520_v38, %v2366_v2 }
 0x269   : > { %v2558_v20 = vmul.f32 %v2554_v19, %v2366_v2 }
 0x26a   : > { %v2461_v63 = vrot.slane %v2444_v33, 6  ;;  %v2180_v62 = vadd.f32 %v2179_v49, %v2147_v14  ;;  %v2498_v7 = vrot.slane %v2490_v9, 1  ;;  %v2532_v39 = vrot.slane %v2524_v17, 4 }
 0x26b   : > { %v2578_v32 = vrot.slane %v2558_v20, 7  ;;  %v2395_v20 = vperm.slane %v5175_v35, 4  ;;  %v2479_v35 = vperm.slane %v5217_v5, 4 }
 0x26c   : > { %v2462_v44 = vsel %vm5681_vm5, %v2460_v8, %v2461_v63  ;;  %v2213_v56 = vadd.f32 %v2212_v25, %v2180_v62 }
 0x26d   : > { %v2472_v18 = vadd.f32 %v2462_v44, %v2422_v48 }
 0x26e   : > { %v2181_v41 = vpop.f32.mrf.mxu2  ;;  %v2214_v1 = vpop.f32.mrf.mxu3  ;;  %v2370_v60 = vadd.f32 %v5173_v30, %v2213_v56 }
 0x26f   : > { %v2115_v23 = vpop.f32.mrf.mxu0  ;;  %v2506_v43 = vadd.f32 %v2498_v7, %v2472_v18  ;;  %v2148_v58 = vpop.f32.mrf.mxu1 }
 0x270   : > { %v2562_v22 = vmul.f32 %v2554_v19, %v2370_v60  ;;  %v2608_v10 = vmul.f32 %v2604_v42, %v2370_v60  ;;  %v2642_v0 = vmul.f32 %v2638_v50, %v2370_v60 }
 0x271   : > { %v2540_v31 = vadd.f32 %v2532_v39, %v2506_v43 }
 0x272   : > { %v2579_v12 = vrot.slane %v2562_v22, 7  ;;  %v2616_v34 = vrot.slane %v2608_v10, 2  ;;  %v2650_v15 = vrot.slane %v2642_v0, 5 }
 0x274   : > { %v2580_v46 = vsel %vm5682_vm14, %v2578_v32, %v2579_v12  ;;  %v2403_v12 = vperm.slane %v2395_v20, 0 }
 0x275   : > { %v2590_v54 = vadd.f32 %v2580_v46, %v2540_v31  ;;  %v2429_v31 = vperm.slane %v5196_v4, 4 }
 0x276   : > { %v2291_v29 = vpop.f32.mrf.mxu2  ;;  %v2324_v40 = vpop.f32.mrf.mxu3 }
 0x277   : > { %v2225_v53 = vpop.f32.mrf.mxu0  ;;  %v2624_v30 = vadd.f32 %v2616_v34, %v2590_v54  ;;  %v2258_v27 = vpop.f32.mrf.mxu1 }
 0x278   : > { %v2259_v62 = vadd.f32 %v2258_v27, %v2225_v53 }
 0x279   : > { %v5263_v37 = vadd.f32 %v2650_v15, %v2624_v30  ;;  %v2437_v30 = vperm.slane %v2429_v31, 0 }
 0x27a   : > { %v2292_v44 = vadd.f32 %v2291_v29, %v2259_v62  ;;  %v2597_v62 = vperm.slane %v5253_v45, 4 }
 0x27c   : > { %v2325_v60 = vadd.f32 %v2324_v40, %v2292_v44  ;;  %v2377_v40 = vperm.slane %v5206_v11, 4  ;;  %v2547_v11 = vperm.slane %v5236_v61, 4  ;;  %v2631_v44 = vperm.slane %v5256_v36, 4 }
 0x27e   : > { %v2293_v28 = vpop.f32.mrf.mxu2  ;;  %v2326_v55 = vpop.f32.mrf.mxu3 }
 0x27f   : > { %v2227_v49 = vpop.f32.mrf.mxu0  ;;  %v2260_v6 = vpop.f32.mrf.mxu1 }
 0x280   : > { %v2261_v42 = vadd.f32 %v2260_v6, %v2227_v49 }
 0x282   : > { %v2294_v22 = vadd.f32 %v2293_v28, %v2261_v42  ;;  %v2605_v42 = vperm.slane %v2597_v62, 0 }
 0x284   : > { %v2327_v53 = vadd.f32 %v2326_v55, %v2294_v22 }
 0x286   : > { %v2296_v52 = vpop.f32.mrf.mxu2  ;;  %v5265_v3 = vpop.f32.mrf.mxu3 }
 0x287   : > { %v2230_v25 = vpop.f32.mrf.mxu0  ;;  %v2263_v16 = vpop.f32.mrf.mxu1 }
 0x288   : > { %v2264_v46 = vadd.f32 %v2263_v16, %v2230_v25  ;;  %v2513_v25 = vperm.slane %v5227_v21, 4 }
 0x28a   : > { %v2297_v49 = vadd.f32 %v2296_v52, %v2264_v46 }
 0x28e   : > { %v2298_v2 = vpop.f32.mrf.mxu2  ;;  %v2331_v59 = vpop.f32.mrf.mxu3 }
 0x28f   : > { %v2232_v24 = vpop.f32.mrf.mxu0  ;;  %v2265_v57 = vpop.f32.mrf.mxu1 }
 0x290   : > { %v2266_v63 = vadd.f32 %v2265_v57, %v2232_v24  ;;  %v2487_v24 = vperm.slane %v2479_v35, 0 }
 0x292   : > { %v2299_v48 = vadd.f32 %v2298_v2, %v2266_v63  ;;  %v2521_v63 = vperm.slane %v2513_v25, 0 }
 0x294   : > { %v2332_v7 = vadd.f32 %v2331_v59, %v2299_v48  ;;  %v2385_v59 = vperm.slane %v2377_v40, 0 }
 0x296   : > { %v2301_v38 = vpop.f32.mrf.mxu2  ;;  %v2334_v51 = vpop.f32.mrf.mxu3  ;;  %v2351_v50 = vadd.f32 %v2332_v7, %v2325_v60 }
 0x297   : > { %v2235_v33 = vpop.f32.mrf.mxu0  ;;  %v2268_v14 = vpop.f32.mrf.mxu1 }
 0x298   : > { %v2269_v41 = vadd.f32 %v2268_v14, %v2235_v33  ;;  %v2330_v33 = vadd.f32 %v5265_v3, %v2297_v49 }
 0x29a   : > { %v2302_v23 = vadd.f32 %v2301_v38, %v2269_v41 }
 0x29c   : > { %v2335_v29 = vadd.f32 %v2334_v51, %v2302_v23 }
 0x29e   : > { %v2303_v26 = vpop.f32.mrf.mxu2  ;;  %v2336_v9 = vpop.f32.mrf.mxu3  ;;  %v2355_v28 = vadd.f32 %v2335_v29, %v2327_v53  ;;  %v3332_v53 = vld [vmem:[%s3433_s22 + $0x8] sm:$0x77] }
 0x29f   : > { %v2237_v47 = vpop.f32.mrf.mxu0  ;;  %v2270_v8 = vpop.f32.mrf.mxu1 }
 0x2a0   : > { %v2271_v54 = vadd.f32 %v2270_v8, %v2237_v47 }
 0x2a2   : > { %v2304_v6 = vadd.f32 %v2303_v26, %v2271_v54 }
 0x2a4   : > { %v2337_v14 = vadd.f32 %v2336_v9, %v2304_v6 }
 0x2a6   : > { %v2306_v19 = vpop.f32.mrf.mxu2  ;;  %v2339_v17 = vpop.f32.mrf.mxu3  ;;  %v2359_v61 = vadd.f32 %v2337_v14, %v2330_v33 }
 0x2a7   : > { %v2240_v13 = vpop.f32.mrf.mxu0  ;;  %v2273_v56 = vpop.f32.mrf.mxu1 }
 0x2a8   : > { %v2274_v18 = vadd.f32 %v2273_v56, %v2240_v13 }
 0x2aa   : > { %v2307_v1 = vadd.f32 %v2306_v19, %v2274_v18 }
 0x2ac   : > { %v2340_v43 = vadd.f32 %v2339_v17, %v2307_v1  ;;  %v2555_v17 = vperm.slane %v2547_v11, 0 }
 0x2ae   : > { %v2308_v39 = vpop.f32.mrf.mxu2  ;;  %v2341_v58 = vpop.f32.mrf.mxu3  ;;  %v2363_v32 = vadd.f32 %v2351_v50, %v2340_v43  ;;  %v2639_v43 = vperm.slane %v2631_v44, 0 }
 0x2af   : > { %v2242_v10 = vpop.f32.mrf.mxu0  ;;  %v2275_v0 = vpop.f32.mrf.mxu1 }
 0x2b0   : > { %v2276_v34 = vadd.f32 %v2275_v0, %v2242_v10  ;;  %v2407_v27 = vmul.f32 %v2403_v12, %v2363_v32  ;;  %v2441_v57 = vmul.f32 %v2437_v30, %v2363_v32  ;;  %v2389_v26 = vmul.f32 %v2385_v59, %v2363_v32 }
 0x2b2   : > { %v2309_v15 = vadd.f32 %v2308_v39, %v2276_v34  ;;  %v2415_v5 = vrot.slane %v2407_v27, 3  ;;  %v2463_v19 = vrot.slane %v2441_v57, 6 }
 0x2b4   : > { %v2342_v4 = vadd.f32 %v2341_v58, %v2309_v15  ;;  %v2423_v13 = vadd.f32 %v2415_v5, %v2389_v26 }
 0x2b6   : > { %v2311_v2 = vpop.f32.mrf.mxu2  ;;  %v2344_v16 = vpop.f32.mrf.mxu3  ;;  %v2367_v38 = vadd.f32 %v2355_v28, %v2342_v4 }
 0x2b7   : > { %v2245_v51 = vpop.f32.mrf.mxu0  ;;  %v2278_v55 = vpop.f32.mrf.mxu1 }
 0x2b8   : > { %v2445_v52 = vmul.f32 %v2437_v30, %v2367_v38  ;;  %v2279_v47 = vadd.f32 %v2278_v55, %v2245_v51  ;;  %v2491_v8 = vmul.f32 %v2487_v24, %v2367_v38  ;;  %v2525_v7 = vmul.f32 %v2521_v63, %v2367_v38 }
 0x2b9   : > { %v2559_v20 = vmul.f32 %v2555_v17, %v2367_v38 }
 0x2ba   : > { %v2464_v21 = vrot.slane %v2445_v52, 6  ;;  %v2312_v48 = vadd.f32 %v2311_v2, %v2279_v47  ;;  %v2499_v18 = vrot.slane %v2491_v8, 1  ;;  %v2533_v58 = vrot.slane %v2525_v7, 4 }
 0x2bb   : > { %v2581_v22 = vrot.slane %v2559_v20, 7 }
 0x2bc   : > { %v2465_v56 = vsel %vm5683_vm8, %v2463_v19, %v2464_v21  ;;  %v2345_v41 = vadd.f32 %v2344_v16, %v2312_v48 }
 0x2bd   : > { %v2473_v9 = vadd.f32 %v2465_v56, %v2423_v13 }
 0x2be   : > { %v2313_v3 = vpop.f32.mrf.mxu2  ;;  %v2346_v1 = vpop.f32.mrf.mxu3  ;;  %v2371_v60 = vadd.f32 %v2359_v61, %v2345_v41 }
 0x2bf   : > { %v2247_v45 = vpop.f32.mrf.mxu0  ;;  %v2507_v23 = vadd.f32 %v2499_v18, %v2473_v9  ;;  %v2280_v39 = vpop.f32.mrf.mxu1 }
 0x2c0   : > { %v2563_v50 = vmul.f32 %v2555_v17, %v2371_v60  ;;  %v2609_v36 = vmul.f32 %v2605_v42, %v2371_v60  ;;  %v2643_v32 = vmul.f32 %v2639_v43, %v2371_v60 }
 0x2c1   : > { %v2541_v10 = vadd.f32 %v2533_v58, %v2507_v23 }
 0x2c2   : > { %v2582_v31 = vrot.slane %v2563_v50, 7  ;;  %v2617_v46 = vrot.slane %v2609_v36, 2  ;;  %v2651_v54 = vrot.slane %v2643_v32, 5 }
 0x2c4   : > { %v2583_v12 = vsel %vm5684_vm0, %v2581_v22, %v2582_v31 }
 0x2c5   : > { %v2591_v0 = vadd.f32 %v2583_v12, %v2541_v10 }
 0x2c7   : > { %v2625_v29 = vadd.f32 %v2617_v46, %v2591_v0 }
 0x2c9   : > { %v2659_v34 = vadd.f32 %v2651_v54, %v2625_v29 }
 0x2cb   : > { %v2665_v40 = vrot.slane %v2659_v34, 4 }
 0x2cd   : > { %v2667_v35 = vsel %vm5685_vm4, %v5263_v37, %v2665_v40 }
 0x2ce   : > { %v2671_v30 = vadd.f32 %v3332_v53, %v2667_v35 }
 0x2d0   : > { %2673 = vst [vmem:[%s3433_s22 + $0x8] sm:$0x77] %v2671_v30 }
 0x2d1 PF: > { %s12_s13 = sadd.s32 1, %s3371_s13   ;;  %s5686_s9 = smov %s3363_s11 }
 0x2d2   : > { %p9_p7 = scmp.ge.s32.totalorder %s12_s13, 10   ;;  %s5687_s10 = smov %s3367_s12 }
 0x2d3   : > { %s5688_s11 = smov %s5691_s14  ;;  %s5689_s12 = smov %s5695_s15 }
 0x2d4   :  { %11 = sbr.rel (!%p9_p7) target bundleno = 3 (0x3), region = 70 }

</bundles_post_ra>
